<compile_context>
chip_gen: v6e
topology: v6e:2x2x1
jax: 0.10.0
libtpu: 0.0.40
codegen_flags: <defaults>
</compile_context>

<pallas_src>
import jax
import jax.numpy as jnp
from jax import lax
from jax.experimental import pallas as pl
from jax.experimental.pallas import tpu as pltpu

# ----- model / problem sizes (small, consistent with the module's forward) -----
B, C_IN, H, W = 2, 4, 16, 16
KH, KW = 3, 3
FEATURE_DIM = 32          # == backbone.classifier[0].in_features in the PyTorch module
NUM_CLASSES = 10
LOSS = {'xent', 'htri'}

K_IM2COL = KH * KW * C_IN          # 36
K_PACK = 128                       # lane-dense contraction dim for the conv GEMM
OUT_LANES = 128                    # lane-dense packed output: [v(32) | y(10) | 0...]
HW = H * W


def _tvmodel_kernel(x_ref, wconv_ref, bconv_ref, pool_ref, wpack_ref, bpack_ref,
                    out_ref, pad_ref, patch_ref):
    """Single grid step processes the whole batch.

    x_ref     : (B, H, W, C_IN)        unpadded NHWC images
    wconv_ref : (K_PACK, FEATURE_DIM)  im2col conv weights, rows >= 36 are zero
    bconv_ref : (1, FEATURE_DIM)
    pool_ref  : (B, B*H*W)             block-diagonal 1/(H*W) average-pool matrix
    wpack_ref : (FEATURE_DIM, OUT_LANES)   [I_32 | Wcls | 0]
    bpack_ref : (1, OUT_LANES)             [0    | bcls | 0]
    out_ref   : (B, OUT_LANES)         packed [features | logits | 0]
    pad_ref   : (B, H+2, W+2, C_IN)    VMEM scratch, zero-padded image
    patch_ref : (B*H*W, K_PACK)        VMEM scratch, lane-dense im2col matrix
    """
    # ---- in-kernel "same" padding: zero the scratch, store the interior ----
    pad_ref[...] = jnp.zeros_like(pad_ref)
    pad_ref[:, 1:1 + H, 1:1 + W, :] = x_ref[...]

    # ---- im2col: (B*H*W, 128) patch matrix; lanes >= 36 stay zero ----
    patch_ref[...] = jnp.zeros_like(patch_ref)
    for kh in range(KH):
        for kw in range(KW):
            k = kh * KW + kw
            col = pad_ref[:, kh:kh + H, kw:kw + W, :].reshape(B * HW, C_IN)
            patch_ref[:, k * C_IN:(k + 1) * C_IN] = col

    # ---- conv as ONE GEMM (M=512, K=128, N=32), bias, ReLU ----
    conv = jnp.dot(patch_ref[...], wconv_ref[...], preferred_element_type=jnp.float32)
    conv = jnp.maximum(conv + bconv_ref[...], 0.0)

    # ---- global average pool as a matmul: (B, B*H*W) @ (B*H*W, F) -> (B, F) ----
    v = jnp.dot(pool_ref[...], conv, preferred_element_type=jnp.float32)

    # ---- packed head: lanes [0:F) = v (identity cols), [F:F+C) = classifier logits ----
    packed = jnp.dot(v, wpack_ref[...], preferred_element_type=jnp.float32) + bpack_ref[...]
    out_ref[...] = packed


def _pack_params(params):
    """One-time parameter packing (XLA-side, tiny, weight prep only)."""
    wconv_mat = params["wconv"].astype(jnp.float32).reshape(K_IM2COL, FEATURE_DIM)
    wconv_pad = jnp.zeros((K_PACK, FEATURE_DIM), jnp.float32).at[:K_IM2COL].set(wconv_mat)

    bconv = params["bconv"].astype(jnp.float32).reshape(1, FEATURE_DIM)

    wpack = jnp.zeros((FEATURE_DIM, OUT_LANES), jnp.float32)
    wpack = wpack.at[:, :FEATURE_DIM].set(jnp.eye(FEATURE_DIM, dtype=jnp.float32))
    wpack = wpack.at[:, FEATURE_DIM:FEATURE_DIM + NUM_CLASSES].set(
        params["wcls"].astype(jnp.float32))

    bpack = jnp.zeros((1, OUT_LANES), jnp.float32)
    bpack = bpack.at[:, FEATURE_DIM:FEATURE_DIM + NUM_CLASSES].set(
        params["bcls"].astype(jnp.float32).reshape(1, NUM_CLASSES))

    # block-diagonal average-pool matrix: pool[b, b*HW:(b+1)*HW] = 1/HW
    pool = (jnp.arange(B)[:, None] == (jnp.arange(B * HW)[None, :] // HW))
    pool = pool.astype(jnp.float32) / float(HW)
    return wconv_pad, bconv, pool, wpack, bpack


def torchvision_model_forward(x_nchw, params, *, training=True, loss=LOSS):
    """Mirrors TorchVisionModel.forward semantics."""
    # NCHW (PyTorch) -> NHWC: layout glue only (no wrapper pad / im2col).
    x = jnp.transpose(x_nchw, (0, 2, 3, 1)).astype(jnp.float32)
    wconv_pad, bconv, pool, wpack, bpack = _pack_params(params)

    packed = pl.pallas_call(
        _tvmodel_kernel,
        out_shape=jax.ShapeDtypeStruct((B, OUT_LANES), jnp.float32),
        grid_spec=pltpu.PrefetchScalarGridSpec(
            num_scalar_prefetch=0,
            grid=(1,),
            in_specs=[
                pl.BlockSpec((B, H, W, C_IN), lambda i: (0, 0, 0, 0)),
                pl.BlockSpec((K_PACK, FEATURE_DIM), lambda i: (0, 0)),
                pl.BlockSpec((1, FEATURE_DIM), lambda i: (0, 0)),
                pl.BlockSpec((B, B * HW), lambda i: (0, 0)),
                pl.BlockSpec((FEATURE_DIM, OUT_LANES), lambda i: (0, 0)),
                pl.BlockSpec((1, OUT_LANES), lambda i: (0, 0)),
            ],
            out_specs=pl.BlockSpec((B, OUT_LANES), lambda i: (0, 0)),
            scratch_shapes=[
                pltpu.VMEM((B, H + 2, W + 2, C_IN), jnp.float32),
                pltpu.VMEM((B * HW, K_PACK), jnp.float32),
            ],
        ),
        compiler_params=pltpu.CompilerParams(dimension_semantics=("arbitrary",)),
    )(x, wconv_pad, bconv, pool, wpack, bpack)

    # split the lane-dense packed output (wrapper-side layout plumbing)
    v = packed[:, :FEATURE_DIM]
    y = packed[:, FEATURE_DIM:FEATURE_DIM + NUM_CLASSES]

    if not training:
        return v
    if loss == {'xent'}:
        return y
    elif loss == {'xent', 'htri'}:
        return (y, v)
    else:
        raise KeyError(f'Unsupported loss: {loss}')


def _reference_forward(x_nchw, params):
    """Plain-JAX reference for correctness check."""
    x = jnp.transpose(x_nchw, (0, 2, 3, 1)).astype(jnp.float32)
    conv = lax.conv_general_dilated(
        x, params["wconv"], window_strides=(1, 1), padding="SAME",
        dimension_numbers=("NHWC", "HWIO", "NHWC"))
    conv = jnp.maximum(conv + params["bconv"].reshape(1, 1, 1, FEATURE_DIM), 0.0)
    v = jnp.mean(conv, axis=(1, 2))
    y = v @ params["wcls"] + params["bcls"].reshape(NUM_CLASSES)
    return y, v


def _init_params(key):
    k1, k2, k3, k4 = jax.random.split(key, 4)
    return {
        "wconv": 0.1 * jax.random.normal(k1, (KH, KW, C_IN, FEATURE_DIM), jnp.float32),
        "bconv": 0.1 * jax.random.normal(k2, (1, FEATURE_DIM), jnp.float32),
        "wcls": 0.1 * jax.random.normal(k3, (FEATURE_DIM, NUM_CLASSES), jnp.float32),
        "bcls": 0.1 * jax.random.normal(k4, (1, NUM_CLASSES), jnp.float32),
    }


if __name__ == "__main__":
    key = jax.random.PRNGKey(0)
    kx, kp = jax.random.split(key)
    x = jax.random.normal(kx, (B, C_IN, H, W), jnp.float32)   # PyTorch-style NCHW input
    params = _init_params(kp)

    y, v = torchvision_model_forward(x, params, training=True, loss={'xent', 'htri'})
    jax.block_until_ready((y, v))

    y_ref, v_ref = _reference_forward(x, params)
    assert jnp.allclose(y, y_ref, atol=1e-3, rtol=1e-3), "logits mismatch"
    assert jnp.allclose(v, v_ref, atol=1e-3, rtol=1e-3), "features mismatch"

    print("KERNEL_OK")
</pallas_src>

<mosaic_0001>
module attributes {stable_mosaic.version = 11 : i64} {
  func.func @_tvmodel_kernel(%arg0: i32, %arg1: memref<2x16x16x4xf32, #tpu.memory_space<vmem>>, %arg2: memref<128x32xf32, #tpu.memory_space<vmem>>, %arg3: memref<1x32xf32, #tpu.memory_space<vmem>>, %arg4: memref<2x512xf32, #tpu.memory_space<vmem>>, %arg5: memref<32x128xf32, #tpu.memory_space<vmem>>, %arg6: memref<1x128xf32, #tpu.memory_space<vmem>>, %arg7: memref<2x128xf32, #tpu.memory_space<vmem>>, %arg8: memref<2x18x18x4xf32, #tpu.memory_space<vmem>>, %arg9: memref<512x128xf32, #tpu.memory_space<vmem>>) attributes {dimension_semantics = [#tpu.dimension_semantics<arbitrary>], iteration_bounds = array<i64: 1>, scalar_prefetch = 0 : i64, scratch_operands = 2 : i64, tpu.core_type = #tpu.core_type<tc>, window_params = [{pipeline_mode = #tpu.pipeline_mode<synchronous>, transform_indices = @transform_0, window_bounds = array<i64: 2, 16, 16, 4>}, {pipeline_mode = #tpu.pipeline_mode<synchronous>, transform_indices = @transform_1, window_bounds = array<i64: 128, 32>}, {pipeline_mode = #tpu.pipeline_mode<synchronous>, transform_indices = @transform_2, window_bounds = array<i64: 1, 32>}, {pipeline_mode = #tpu.pipeline_mode<synchronous>, transform_indices = @transform_3, window_bounds = array<i64: 2, 512>}, {pipeline_mode = #tpu.pipeline_mode<synchronous>, transform_indices = @transform_4, window_bounds = array<i64: 32, 128>}, {pipeline_mode = #tpu.pipeline_mode<synchronous>, transform_indices = @transform_5, window_bounds = array<i64: 1, 128>}, {pipeline_mode = #tpu.pipeline_mode<synchronous>, transform_indices = @transform_6, window_bounds = array<i64: 2, 128>}]} {
    %cst = arith.constant 0.000000e+00 : f32
    %0 = vector.broadcast %cst : f32 to vector<2x18x18x4xf32>
    %c0 = arith.constant 0 : index
    %c0_0 = arith.constant 0 : index
    %c0_1 = arith.constant 0 : index
    %c0_2 = arith.constant 0 : index
    %1 = vector.load %arg8[%c0, %c0_0, %c0_1, %c0_2] : memref<2x18x18x4xf32, #tpu.memory_space<vmem>>, vector<2x18x18x4xf32>
    tpu.vector_store %arg8[%c0, %c0_0, %c0_1, %c0_2], %0 {strides = array<i32>} : memref<2x18x18x4xf32, #tpu.memory_space<vmem>>, vector<2x18x18x4xf32>,
    %c0_3 = arith.constant 0 : index
    %c0_4 = arith.constant 0 : index
    %c0_5 = arith.constant 0 : index
    %c0_6 = arith.constant 0 : index
    %2 = vector.load %arg1[%c0_3, %c0_4, %c0_5, %c0_6] : memref<2x16x16x4xf32, #tpu.memory_space<vmem>>, vector<2x16x16x4xf32>
    %c0_7 = arith.constant 0 : index
    %c1 = arith.constant 1 : index
    %c1_8 = arith.constant 1 : index
    %c0_9 = arith.constant 0 : index
    %3 = vector.load %arg8[%c0_7, %c1, %c1_8, %c0_9] : memref<2x18x18x4xf32, #tpu.memory_space<vmem>>, vector<2x16x16x4xf32>
    tpu.vector_store %arg8[%c0_7, %c1, %c1_8, %c0_9], %2 {strides = array<i32>} : memref<2x18x18x4xf32, #tpu.memory_space<vmem>>, vector<2x16x16x4xf32>,
    %cst_10 = arith.constant 0.000000e+00 : f32
    %4 = vector.broadcast %cst_10 : f32 to vector<512x128xf32>
    %c0_11 = arith.constant 0 : index
    %c0_12 = arith.constant 0 : index
    %5 = vector.load %arg9[%c0_11, %c0_12] : memref<512x128xf32, #tpu.memory_space<vmem>>, vector<512x128xf32>
    tpu.vector_store %arg9[%c0_11, %c0_12], %4 {strides = array<i32>} : memref<512x128xf32, #tpu.memory_space<vmem>>, vector<512x128xf32>,
    %c0_13 = arith.constant 0 : index
    %c0_14 = arith.constant 0 : index
    %c0_15 = arith.constant 0 : index
    %c0_16 = arith.constant 0 : index
    %6 = vector.load %arg8[%c0_13, %c0_14, %c0_15, %c0_16] : memref<2x18x18x4xf32, #tpu.memory_space<vmem>>, vector<2x16x16x4xf32>
    %7 = vector.shape_cast %6 : vector<2x16x16x4xf32> to vector<512x4xf32>
    %c0_17 = arith.constant 0 : index
    %c0_18 = arith.constant 0 : index
    %8 = vector.load %arg9[%c0_17, %c0_18] : memref<512x128xf32, #tpu.memory_space<vmem>>, vector<512x4xf32>
    tpu.vector_store %arg9[%c0_17, %c0_18], %7 {strides = array<i32>} : memref<512x128xf32, #tpu.memory_space<vmem>>, vector<512x4xf32>,
    %c0_19 = arith.constant 0 : index
    %c0_20 = arith.constant 0 : index
    %c1_21 = arith.constant 1 : index
    %c0_22 = arith.constant 0 : index
    %9 = vector.load %arg8[%c0_19, %c0_20, %c1_21, %c0_22] : memref<2x18x18x4xf32, #tpu.memory_space<vmem>>, vector<2x16x16x4xf32>
    %10 = vector.shape_cast %9 : vector<2x16x16x4xf32> to vector<512x4xf32>
    %c0_23 = arith.constant 0 : index
    %c4 = arith.constant 4 : index
    %11 = vector.load %arg9[%c0_23, %c4] : memref<512x128xf32, #tpu.memory_space<vmem>>, vector<512x4xf32>
    tpu.vector_store %arg9[%c0_23, %c4], %10 {strides = array<i32>} : memref<512x128xf32, #tpu.memory_space<vmem>>, vector<512x4xf32>,
    %c0_24 = arith.constant 0 : index
    %c0_25 = arith.constant 0 : index
    %c2 = arith.constant 2 : index
    %c0_26 = arith.constant 0 : index
    %12 = vector.load %arg8[%c0_24, %c0_25, %c2, %c0_26] : memref<2x18x18x4xf32, #tpu.memory_space<vmem>>, vector<2x16x16x4xf32>
    %13 = vector.shape_cast %12 : vector<2x16x16x4xf32> to vector<512x4xf32>
    %c0_27 = arith.constant 0 : index
    %c8 = arith.constant 8 : index
    %14 = vector.load %arg9[%c0_27, %c8] : memref<512x128xf32, #tpu.memory_space<vmem>>, vector<512x4xf32>
    tpu.vector_store %arg9[%c0_27, %c8], %13 {strides = array<i32>} : memref<512x128xf32, #tpu.memory_space<vmem>>, vector<512x4xf32>,
    %c0_28 = arith.constant 0 : index
    %c1_29 = arith.constant 1 : index
    %c0_30 = arith.constant 0 : index
    %c0_31 = arith.constant 0 : index
    %15 = vector.load %arg8[%c0_28, %c1_29, %c0_30, %c0_31] : memref<2x18x18x4xf32, #tpu.memory_space<vmem>>, vector<2x16x16x4xf32>
    %16 = vector.shape_cast %15 : vector<2x16x16x4xf32> to vector<512x4xf32>
    %c0_32 = arith.constant 0 : index
    %c12 = arith.constant 12 : index
    %17 = vector.load %arg9[%c0_32, %c12] : memref<512x128xf32, #tpu.memory_space<vmem>>, vector<512x4xf32>
    tpu.vector_store %arg9[%c0_32, %c12], %16 {strides = array<i32>} : memref<512x128xf32, #tpu.memory_space<vmem>>, vector<512x4xf32>,
    %c0_33 = arith.constant 0 : index
    %c1_34 = arith.constant 1 : index
    %c1_35 = arith.constant 1 : index
    %c0_36 = arith.constant 0 : index
    %18 = vector.load %arg8[%c0_33, %c1_34, %c1_35, %c0_36] : memref<2x18x18x4xf32, #tpu.memory_space<vmem>>, vector<2x16x16x4xf32>
    %19 = vector.shape_cast %18 : vector<2x16x16x4xf32> to vector<512x4xf32>
    %c0_37 = arith.constant 0 : index
    %c16 = arith.constant 16 : index
    %20 = vector.load %arg9[%c0_37, %c16] : memref<512x128xf32, #tpu.memory_space<vmem>>, vector<512x4xf32>
    tpu.vector_store %arg9[%c0_37, %c16], %19 {strides = array<i32>} : memref<512x128xf32, #tpu.memory_space<vmem>>, vector<512x4xf32>,
    %c0_38 = arith.constant 0 : index
    %c1_39 = arith.constant 1 : index
    %c2_40 = arith.constant 2 : index
    %c0_41 = arith.constant 0 : index
    %21 = vector.load %arg8[%c0_38, %c1_39, %c2_40, %c0_41] : memref<2x18x18x4xf32, #tpu.memory_space<vmem>>, vector<2x16x16x4xf32>
    %22 = vector.shape_cast %21 : vector<2x16x16x4xf32> to vector<512x4xf32>
    %c0_42 = arith.constant 0 : index
    %c20 = arith.constant 20 : index
    %23 = vector.load %arg9[%c0_42, %c20] : memref<512x128xf32, #tpu.memory_space<vmem>>, vector<512x4xf32>
    tpu.vector_store %arg9[%c0_42, %c20], %22 {strides = array<i32>} : memref<512x128xf32, #tpu.memory_space<vmem>>, vector<512x4xf32>,
    %c0_43 = arith.constant 0 : index
    %c2_44 = arith.constant 2 : index
    %c0_45 = arith.constant 0 : index
    %c0_46 = arith.constant 0 : index
    %24 = vector.load %arg8[%c0_43, %c2_44, %c0_45, %c0_46] : memref<2x18x18x4xf32, #tpu.memory_space<vmem>>, vector<2x16x16x4xf32>
    %25 = vector.shape_cast %24 : vector<2x16x16x4xf32> to vector<512x4xf32>
    %c0_47 = arith.constant 0 : index
    %c24 = arith.constant 24 : index
    %26 = vector.load %arg9[%c0_47, %c24] : memref<512x128xf32, #tpu.memory_space<vmem>>, vector<512x4xf32>
    tpu.vector_store %arg9[%c0_47, %c24], %25 {strides = array<i32>} : memref<512x128xf32, #tpu.memory_space<vmem>>, vector<512x4xf32>,
    %c0_48 = arith.constant 0 : index
    %c2_49 = arith.constant 2 : index
    %c1_50 = arith.constant 1 : index
    %c0_51 = arith.constant 0 : index
    %27 = vector.load %arg8[%c0_48, %c2_49, %c1_50, %c0_51] : memref<2x18x18x4xf32, #tpu.memory_space<vmem>>, vector<2x16x16x4xf32>
    %28 = vector.shape_cast %27 : vector<2x16x16x4xf32> to vector<512x4xf32>
    %c0_52 = arith.constant 0 : index
    %c28 = arith.constant 28 : index
    %29 = vector.load %arg9[%c0_52, %c28] : memref<512x128xf32, #tpu.memory_space<vmem>>, vector<512x4xf32>
    tpu.vector_store %arg9[%c0_52, %c28], %28 {strides = array<i32>} : memref<512x128xf32, #tpu.memory_space<vmem>>, vector<512x4xf32>,
    %c0_53 = arith.constant 0 : index
    %c2_54 = arith.constant 2 : index
    %c2_55 = arith.constant 2 : index
    %c0_56 = arith.constant 0 : index
    %30 = vector.load %arg8[%c0_53, %c2_54, %c2_55, %c0_56] : memref<2x18x18x4xf32, #tpu.memory_space<vmem>>, vector<2x16x16x4xf32>
    %31 = vector.shape_cast %30 : vector<2x16x16x4xf32> to vector<512x4xf32>
    %c0_57 = arith.constant 0 : index
    %c32 = arith.constant 32 : index
    %32 = vector.load %arg9[%c0_57, %c32] : memref<512x128xf32, #tpu.memory_space<vmem>>, vector<512x4xf32>
    tpu.vector_store %arg9[%c0_57, %c32], %31 {strides = array<i32>} : memref<512x128xf32, #tpu.memory_space<vmem>>, vector<512x4xf32>,
    %c0_58 = arith.constant 0 : index
    %c0_59 = arith.constant 0 : index
    %33 = vector.load %arg9[%c0_58, %c0_59] : memref<512x128xf32, #tpu.memory_space<vmem>>, vector<512x128xf32>
    %c0_60 = arith.constant 0 : index
    %c0_61 = arith.constant 0 : index
    %34 = vector.load %arg2[%c0_60, %c0_61] : memref<128x32xf32, #tpu.memory_space<vmem>>, vector<128x32xf32>
    %cst_62 = arith.constant dense<0.000000e+00> : vector<512x32xf32>
    %35 = tpu.matmul %33, %34, %cst_62 {dimension_numbers = #tpu.dot_dimension_numbers<[1], [0], [0], [1], [0, 0, 1, 1], [], []>} : vector<512x128xf32>, vector<128x32xf32>, vector<512x32xf32> -> vector<512x32xf32>
    %c0_63 = arith.constant 0 : index
    %c0_64 = arith.constant 0 : index
    %36 = vector.load %arg3[%c0_63, %c0_64] : memref<1x32xf32, #tpu.memory_space<vmem>>, vector<1x32xf32>
    %37 = vector.broadcast %36 : vector<1x32xf32> to vector<512x32xf32>
    %38 = arith.addf %35, %37 : vector<512x32xf32>
    %cst_65 = arith.constant 0.000000e+00 : f32
    %39 = vector.broadcast %cst_65 : f32 to vector<512x32xf32>
    %40 = arith.maximumf %38, %39 : vector<512x32xf32>
    %c0_66 = arith.constant 0 : index
    %c0_67 = arith.constant 0 : index
    %41 = vector.load %arg4[%c0_66, %c0_67] : memref<2x512xf32, #tpu.memory_space<vmem>>, vector<2x512xf32>
    %cst_68 = arith.constant dense<0.000000e+00> : vector<2x32xf32>
    %42 = tpu.matmul %41, %40, %cst_68 {dimension_numbers = #tpu.dot_dimension_numbers<[1], [0], [0], [1], [0, 0, 1, 1], [], []>} : vector<2x512xf32>, vector<512x32xf32>, vector<2x32xf32> -> vector<2x32xf32>
    %c0_69 = arith.constant 0 : index
    %c0_70 = arith.constant 0 : index
    %43 = vector.load %arg5[%c0_69, %c0_70] : memref<32x128xf32, #tpu.memory_space<vmem>>, vector<32x128xf32>
    %cst_71 = arith.constant dense<0.000000e+00> : vector<2x128xf32>
    %44 = tpu.matmul %42, %43, %cst_71 {dimension_numbers = #tpu.dot_dimension_numbers<[1], [0], [0], [1], [0, 0, 1, 1], [], []>} : vector<2x32xf32>, vector<32x128xf32>, vector<2x128xf32> -> vector<2x128xf32>
    %c0_72 = arith.constant 0 : index
    %c0_73 = arith.constant 0 : index
    %45 = vector.load %arg6[%c0_72, %c0_73] : memref<1x128xf32, #tpu.memory_space<vmem>>, vector<1x128xf32>
    %46 = vector.broadcast %45 : vector<1x128xf32> to vector<2x128xf32>
    %47 = arith.addf %44, %46 : vector<2x128xf32>
    %c0_74 = arith.constant 0 : index
    %c0_75 = arith.constant 0 : index
    %48 = vector.load %arg7[%c0_74, %c0_75] : memref<2x128xf32, #tpu.memory_space<vmem>>, vector<2x128xf32>
    tpu.vector_store %arg7[%c0_74, %c0_75], %47 {strides = array<i32>} : memref<2x128xf32, #tpu.memory_space<vmem>>, vector<2x128xf32>,
    return
  }
  func.func @transform_0(%arg0: i32) -> (i32, i32, i32, i32) {
    %c0_i32 = arith.constant 0 : i32
    %c0_i32_0 = arith.constant 0 : i32
    %c0_i32_1 = arith.constant 0 : i32
    %c0_i32_2 = arith.constant 0 : i32
    %c0_i32_3 = arith.constant 0 : i32
    return %c0_i32, %c0_i32_0, %c0_i32_1, %c0_i32_2 : i32, i32, i32, i32
  }
  func.func @transform_1(%arg0: i32) -> (i32, i32) {
    %c0_i32 = arith.constant 0 : i32
    %c0_i32_0 = arith.constant 0 : i32
    %c0_i32_1 = arith.constant 0 : i32
    return %c0_i32, %c0_i32_0 : i32, i32
  }
  func.func @transform_2(%arg0: i32) -> (i32, i32) {
    %c0_i32 = arith.constant 0 : i32
    %c0_i32_0 = arith.constant 0 : i32
    %c0_i32_1 = arith.constant 0 : i32
    return %c0_i32, %c0_i32_0 : i32, i32
  }
  func.func @transform_3(%arg0: i32) -> (i32, i32) {
    %c0_i32 = arith.constant 0 : i32
    %c0_i32_0 = arith.constant 0 : i32
    %c0_i32_1 = arith.constant 0 : i32
    return %c0_i32, %c0_i32_0 : i32, i32
  }
  func.func @transform_4(%arg0: i32) -> (i32, i32) {
    %c0_i32 = arith.constant 0 : i32
    %c0_i32_0 = arith.constant 0 : i32
    %c0_i32_1 = arith.constant 0 : i32
    return %c0_i32, %c0_i32_0 : i32, i32
  }
  func.func @transform_5(%arg0: i32) -> (i32, i32) {
    %c0_i32 = arith.constant 0 : i32
    %c0_i32_0 = arith.constant 0 : i32
    %c0_i32_1 = arith.constant 0 : i32
    return %c0_i32, %c0_i32_0 : i32, i32
  }
  func.func @transform_6(%arg0: i32) -> (i32, i32) {
    %c0_i32 = arith.constant 0 : i32
    %c0_i32_0 = arith.constant 0 : i32
    %c0_i32_1 = arith.constant 0 : i32
    return %c0_i32, %c0_i32_0 : i32, i32
  }
}

</mosaic_0001>

<bundles_post_ra>
// kernel: tpu_custom_call.1
= control target key start
LH: loop header
LB: loop body
LE: loop exit
PB: predicated region body
PF: predicated region fallthrough
CT: control target
= control target key end

     0   :  { %vm24_vm0 = vcmask 31744   ;;  %vm27_vm1 = vcmask 25600   ;;  %v4699_v2 = vmov 0.0   ;;  %s4700_s21 = smov 4   ;;  %s6738_s0 = inlined_call_operand.vmem [shape: f32[2,16,16,4], index: 0, kind: input, shape index: {}]   ;;  %s6739_s1 = inlined_call_operand.vmem [shape: f32[128,32], index: 1, kind: input, shape index: {}]   ;;  %s6740_s2 = inlined_call_operand.vmem [shape: f32[1,32], index: 2, kind: input, shape index: {}]   ;;  %s6741_s3 = inlined_call_operand.vmem [shape: f32[2,512], index: 3, kind: input, shape index: {}]   ;;  %s6742_s4 = inlined_call_operand.vmem [shape: f32[32,128], index: 4, kind: input, shape index: {}]   ;;  %s6743_s5 = inlined_call_operand.vmem [shape: f32[1,128], index: 5, kind: input, shape index: {}]   ;;  %s6744_s6 = inlined_call_operand.hbm [shape: f32[2,128], index: 6, kind: output, shape index: {}]  }
   0x1   :  { %v4749_v0 = vld [vmem:[%s6738_s0] sm:$0xff]  ;;  %v4754_v1 = vld [vmem:[%s6738_s0 + $0x8] sm:$0xff]  ;;  %25 = vst.msk [vmem:[#allocation2] sm:$0xff] %vm24_vm0, %v4699_v2  ;;  %26 = vst.msk [vmem:[#allocation2 + $0x8] sm:$0xff] %vm24_vm0, %v4699_v2 }
   0x2   :  { %29 = vst.msk [vmem:[#allocation2 + $0x18] sm:$0xff] %vm24_vm0, %v4699_v2  ;;  %30 = vst.msk [vmem:[#allocation2 + $0x20] sm:$0xff] %vm24_vm0, %v4699_v2  ;;  %v136_v3 = vld [vmem:[%s6738_s0 + $0x10] sm:$0xff]  ;;  %v137_v4 = vld [vmem:[%s6738_s0 + $0x18] sm:$0xff] }
   0x3   :  { %32 = vst.msk [vmem:[#allocation2 + $0x30] sm:$0xff] %vm24_vm0, %v4699_v2  ;;  %33 = vst.msk [vmem:[#allocation2 + $0x38] sm:$0xff] %vm24_vm0, %v4699_v2  ;;  %v138_v5 = vld [vmem:[%s6738_s0 + $0x20] sm:$0xff]  ;;  %v139_v6 = vld [vmem:[%s6738_s0 + $0x28] sm:$0xff] }
   0x4   :  { %35 = vst.msk [vmem:[#allocation2 + $0x48] sm:$0xff] %vm24_vm0, %v4699_v2  ;;  %36 = vst.msk [vmem:[#allocation2 + $0x50] sm:$0xff] %vm24_vm0, %v4699_v2  ;;  %v140_v7 = vld [vmem:[%s6738_s0 + $0x30] sm:$0xff]  ;;  %v141_v8 = vld [vmem:[%s6738_s0 + $0x38] sm:$0xff] }
   0x5   :  { %38 = vst.msk [vmem:[#allocation2 + $0x60] sm:$0xff] %vm24_vm0, %v4699_v2  ;;  %39 = vst.msk [vmem:[#allocation2 + $0x68] sm:$0xff] %vm24_vm0, %v4699_v2  ;;  %v142_v9 = vld [vmem:[%s6738_s0 + $0x40] sm:$0xff]  ;;  %v143_v10 = vld [vmem:[%s6738_s0 + $0x48] sm:$0xff] }
   0x6   :  { %41 = vst.msk [vmem:[#allocation2 + $0x78] sm:$0xff] %vm24_vm0, %v4699_v2  ;;  %42 = vst.msk [vmem:[#allocation2 + $0x80] sm:$0xff] %vm24_vm0, %v4699_v2  ;;  %v144_v11 = vld [vmem:[%s6738_s0 + $0x50] sm:$0xff]  ;;  %v145_v12 = vld [vmem:[%s6738_s0 + $0x58] sm:$0xff] }
   0x7   :  { %44 = vst.msk [vmem:[#allocation2 + $0x90] sm:$0xff] %vm24_vm0, %v4699_v2  ;;  %45 = vst.msk [vmem:[#allocation2 + $0x98] sm:$0xff] %vm24_vm0, %v4699_v2  ;;  %v146_v13 = vld [vmem:[%s6738_s0 + $0x60] sm:$0xff]  ;;  %v147_v14 = vld [vmem:[%s6738_s0 + $0x68] sm:$0xff] }
   0x8   :  { %47 = vst.msk [vmem:[#allocation2 + $0xa8] sm:$0xff] %vm24_vm0, %v4699_v2  ;;  %48 = vst.msk [vmem:[#allocation2 + $0xb0] sm:$0xff] %vm24_vm0, %v4699_v2  ;;  %v148_v15 = vld [vmem:[%s6738_s0 + $0x70] sm:$0xff]  ;;  %v149_v16 = vld [vmem:[%s6738_s0 + $0x78] sm:$0xff] }
   0x9   :  { %50 = vst.msk [vmem:[#allocation2 + $0xc0] sm:$0xff] %vm24_vm0, %v4699_v2  ;;  %51 = vst.msk [vmem:[#allocation2 + $0xc8] sm:$0xff] %vm24_vm0, %v4699_v2  ;;  %v150_v17 = vld [vmem:[%s6738_s0 + $0x80] sm:$0xff]  ;;  %v151_v18 = vld [vmem:[%s6738_s0 + $0x88] sm:$0xff] }
   0xa   :  { %53 = vst.msk [vmem:[#allocation2 + $0xd8] sm:$0xff] %vm24_vm0, %v4699_v2  ;;  %54 = vst.msk [vmem:[#allocation2 + $0xe0] sm:$0xff] %vm24_vm0, %v4699_v2  ;;  %v152_v19 = vld [vmem:[%s6738_s0 + $0x90] sm:$0xff]  ;;  %v153_v20 = vld [vmem:[%s6738_s0 + $0x98] sm:$0xff] }
   0xb   :  { %56 = vst.msk [vmem:[#allocation2 + $0xf0] sm:$0xff] %vm24_vm0, %v4699_v2  ;;  %57 = vst.msk [vmem:[#allocation2 + $0xf8] sm:$0xff] %vm24_vm0, %v4699_v2  ;;  %v154_v21 = vld [vmem:[%s6738_s0 + $0xa0] sm:$0xff]  ;;  %v155_v22 = vld [vmem:[%s6738_s0 + $0xa8] sm:$0xff] }
   0xc   :  { %59 = vst.msk [vmem:[#allocation2 + $0x108] sm:$0xff] %vm24_vm0, %v4699_v2  ;;  %60 = vst.msk [vmem:[#allocation2 + $0x110] sm:$0xff] %vm24_vm0, %v4699_v2  ;;  %v156_v23 = vld [vmem:[%s6738_s0 + $0xb0] sm:$0xff]  ;;  %v455_v24 = vld [vmem:[#allocation2 + $0x1] sm:$0xff] }
   0xd   :  { %62 = vst.msk [vmem:[#allocation2 + $0x120] sm:$0xff] %vm24_vm0, %v4699_v2  ;;  %63 = vst.msk [vmem:[#allocation2 + $0x128] sm:$0xff] %vm24_vm0, %v4699_v2  ;;  %v157_v25 = vld [vmem:[%s6738_s0 + $0xb8] sm:$0xff]  ;;  %583 = vrot.lane.b32.xlu0 %v455_v24, %s4700_s21  ;;  %v158_v32 = vld [vmem:[%s6738_s0 + $0xc0] sm:$0xff] }
   0xe   :  { %65 = vst.msk [vmem:[#allocation2 + $0x138] sm:$0xff] %vm24_vm0, %v4699_v2  ;;  %66 = vst.msk [vmem:[#allocation2 + $0x140] sm:$0xff] %vm24_vm0, %v4699_v2  ;;  %v159_v33 = vld [vmem:[%s6738_s0 + $0xc8] sm:$0xff]  ;;  %v160_v34 = vld [vmem:[%s6738_s0 + $0xd0] sm:$0xff] }
   0xf   :  { %68 = vst.msk [vmem:[#allocation2 + $0x150] sm:$0xff] %vm24_vm0, %v4699_v2  ;;  %69 = vst.msk [vmem:[#allocation2 + $0x158] sm:$0xff] %vm24_vm0, %v4699_v2  ;;  %v161_v35 = vld [vmem:[%s6738_s0 + $0xd8] sm:$0xff]  ;;  %v162_v36 = vld [vmem:[%s6738_s0 + $0xe0] sm:$0xff] }
  0x10   :  { %71 = vst.msk [vmem:[#allocation2 + $0x168] sm:$0xff] %vm24_vm0, %v4699_v2  ;;  %72 = vst.msk [vmem:[#allocation2 + $0x170] sm:$0xff] %vm24_vm0, %v4699_v2  ;;  %v163_v37 = vld [vmem:[%s6738_s0 + $0xe8] sm:$0xff]  ;;  %v166_v39 = vld [vmem:[%s6738_s0 + $0x100] sm:$0xff] }
  0x11   :  { %74 = vst.msk [vmem:[#allocation2 + $0x180] sm:$0xff] %vm24_vm0, %v4699_v2  ;;  %75 = vst.msk [vmem:[#allocation2 + $0x188] sm:$0xff] %vm24_vm0, %v4699_v2  ;;  %v167_v41 = vld [vmem:[%s6738_s0 + $0x108] sm:$0xff]  ;;  %v168_v42 = vld [vmem:[%s6738_s0 + $0x110] sm:$0xff] }
  0x12   :  { %77 = vst.msk [vmem:[#allocation2 + $0x198] sm:$0xff] %vm24_vm0, %v4699_v2  ;;  %78 = vst.msk [vmem:[#allocation2 + $0x1a0] sm:$0xff] %vm24_vm0, %v4699_v2  ;;  %v169_v43 = vld [vmem:[%s6738_s0 + $0x118] sm:$0xff]  ;;  %v170_v45 = vld [vmem:[%s6738_s0 + $0x120] sm:$0xff] }
  0x13   :  { %80 = vst.msk [vmem:[#allocation2 + $0x1b0] sm:$0xff] %vm24_vm0, %v4699_v2  ;;  %81 = vst.msk [vmem:[#allocation2 + $0x1b8] sm:$0xff] %vm24_vm0, %v4699_v2  ;;  %v171_v46 = vld [vmem:[%s6738_s0 + $0x128] sm:$0xff]  ;;  %v172_v47 = vld [vmem:[%s6738_s0 + $0x130] sm:$0xff] }
  0x14   :  { %83 = vst.msk [vmem:[#allocation2 + $0x1c8] sm:$0xff] %vm24_vm0, %v4699_v2  ;;  %84 = vst.msk [vmem:[#allocation2 + $0x1d0] sm:$0xff] %vm24_vm0, %v4699_v2  ;;  %v173_v48 = vld [vmem:[%s6738_s0 + $0x138] sm:$0xff]  ;;  %v174_v49 = vld [vmem:[%s6738_s0 + $0x140] sm:$0xff] }
  0x15   :  { %86 = vst.msk [vmem:[#allocation2 + $0x1e0] sm:$0xff] %vm24_vm0, %v4699_v2  ;;  %87 = vst.msk [vmem:[#allocation2 + $0x1e8] sm:$0xff] %vm24_vm0, %v4699_v2  ;;  %v175_v50 = vld [vmem:[%s6738_s0 + $0x148] sm:$0xff]  ;;  %v176_v51 = vld [vmem:[%s6738_s0 + $0x150] sm:$0xff] }
  0x16   :  { %89 = vst.msk [vmem:[#allocation2 + $0x1f8] sm:$0xff] %vm24_vm0, %v4699_v2  ;;  %90 = vst.msk [vmem:[#allocation2 + $0x200] sm:$0xff] %vm24_vm0, %v4699_v2  ;;  %v177_v52 = vld [vmem:[%s6738_s0 + $0x158] sm:$0xff]  ;;  %v178_v53 = vld [vmem:[%s6738_s0 + $0x160] sm:$0xff] }
  0x17   :  { %92 = vst.msk [vmem:[#allocation2 + $0x210] sm:$0xff] %vm24_vm0, %v4699_v2  ;;  %93 = vst.msk [vmem:[#allocation2 + $0x218] sm:$0xff] %vm24_vm0, %v4699_v2  ;;  %v179_v54 = vld [vmem:[%s6738_s0 + $0x168] sm:$0xff]  ;;  %v180_v55 = vld [vmem:[%s6738_s0 + $0x170] sm:$0xff] }
  0x18   :  { %95 = vst.msk [vmem:[#allocation2 + $0x228] sm:$0xff] %vm24_vm0, %v4699_v2  ;;  %96 = vst.msk [vmem:[#allocation2 + $0x230] sm:$0xff] %vm24_vm0, %v4699_v2  ;;  %v181_v56 = vld [vmem:[%s6738_s0 + $0x178] sm:$0xff]  ;;  %v182_v59 = vld [vmem:[%s6738_s0 + $0x180] sm:$0xff] }
  0x19   :  { %98 = vst.msk [vmem:[#allocation2 + $0x240] sm:$0xff] %vm24_vm0, %v4699_v2  ;;  %99 = vst.msk [vmem:[#allocation2 + $0x248] sm:$0xff] %vm24_vm0, %v4699_v2  ;;  %v183_v60 = vld [vmem:[%s6738_s0 + $0x188] sm:$0xff] }
  0x1a   :  { %101 = vst.msk [vmem:[#allocation2 + $0x258] sm:$0xff] %vm24_vm0, %v4699_v2  ;;  %102 = vst.msk [vmem:[#allocation2 + $0x260] sm:$0xff] %vm24_vm0, %v4699_v2 }
  0x1b   :  { %104 = vst.msk [vmem:[#allocation2 + $0x270] sm:$0xff] %vm24_vm0, %v4699_v2  ;;  %105 = vst.msk [vmem:[#allocation2 + $0x278] sm:$0xff] %vm24_vm0, %v4699_v2 }
  0x1c   :  { %107 = vst.msk [vmem:[#allocation2 + $0x288] sm:$0xff] %vm24_vm0, %v4699_v2  ;;  %108 = vst.msk [vmem:[#allocation2 + $0x290] sm:$0xff] %vm24_vm0, %v4699_v2 }
  0x1d   :  { %110 = vst.msk [vmem:[#allocation2 + $0x2a0] sm:$0xff] %vm24_vm0, %v4699_v2  ;;  %111 = vst.msk [vmem:[#allocation2 + $0x2a8] sm:$0xff] %vm24_vm0, %v4699_v2 }
  0x1e   :  { %113 = vst.msk [vmem:[#allocation2 + $0x2b8] sm:$0xff] %vm24_vm0, %v4699_v2  ;;  %114 = vst.msk [vmem:[#allocation2 + $0x2c0] sm:$0xff] %vm24_vm0, %v4699_v2 }
  0x1f   :  { %116 = vst.msk [vmem:[#allocation2 + $0x2d0] sm:$0xff] %vm24_vm0, %v4699_v2  ;;  %117 = vst.msk [vmem:[#allocation2 + $0x2d8] sm:$0xff] %vm24_vm0, %v4699_v2 }
  0x20   :  { %119 = vst.msk [vmem:[#allocation2 + $0x2e8] sm:$0xff] %vm24_vm0, %v4699_v2  ;;  %120 = vst.msk [vmem:[#allocation2 + $0x2f0] sm:$0xff] %vm24_vm0, %v4699_v2 }
  0x21   :  { %122 = vst.msk [vmem:[#allocation2 + $0x300] sm:$0xff] %vm24_vm0, %v4699_v2  ;;  %123 = vst.msk [vmem:[#allocation2 + $0x308] sm:$0xff] %vm24_vm0, %v4699_v2 }
  0x22   :  { %125 = vst.msk [vmem:[#allocation2 + $0x318] sm:$0xff] %vm24_vm0, %v4699_v2  ;;  %126 = vst.msk [vmem:[#allocation2 + $0x320] sm:$0xff] %vm24_vm0, %v4699_v2 }
  0x23   :  { %128 = vst.msk [vmem:[#allocation2 + $0x330] sm:$0xff] %vm24_vm0, %v4699_v2  ;;  %129 = vst.msk [vmem:[#allocation2 + $0x338] sm:$0xff] %vm24_vm0, %v4699_v2 }
  0x24   :  { %131 = vst.msk [vmem:[#allocation2 + $0x348] sm:$0xff] %vm24_vm0, %v4699_v2  ;;  %132 = vst.msk [vmem:[#allocation2 + $0x350] sm:$0xff] %vm24_vm0, %v4699_v2 }
  0x25   :  { %263 = vst [vmem:[#allocation3] sm:$0xff] %v4699_v2  ;;  %264 = vst [vmem:[#allocation3 + $0x8] sm:$0xff] %v4699_v2 }
  0x26   :  { %265 = vst [vmem:[#allocation3 + $0x10] sm:$0xff] %v4699_v2  ;;  %266 = vst [vmem:[#allocation3 + $0x18] sm:$0xff] %v4699_v2 }
  0x27   :  { %267 = vst [vmem:[#allocation3 + $0x20] sm:$0xff] %v4699_v2  ;;  %268 = vst [vmem:[#allocation3 + $0x28] sm:$0xff] %v4699_v2 }
  0x28   :  { %269 = vst [vmem:[#allocation3 + $0x30] sm:$0xff] %v4699_v2  ;;  %270 = vst [vmem:[#allocation3 + $0x38] sm:$0xff] %v4699_v2 }
  0x29   :  { %271 = vst [vmem:[#allocation3 + $0x40] sm:$0xff] %v4699_v2  ;;  %272 = vst [vmem:[#allocation3 + $0x48] sm:$0xff] %v4699_v2 }
  0x2a   :  { %273 = vst [vmem:[#allocation3 + $0x50] sm:$0xff] %v4699_v2  ;;  %274 = vst [vmem:[#allocation3 + $0x58] sm:$0xff] %v4699_v2 }
  0x2b   :  { %275 = vst [vmem:[#allocation3 + $0x60] sm:$0xff] %v4699_v2  ;;  %276 = vst [vmem:[#allocation3 + $0x68] sm:$0xff] %v4699_v2 }
  0x2c   :  { %277 = vst [vmem:[#allocation3 + $0x70] sm:$0xff] %v4699_v2  ;;  %278 = vst [vmem:[#allocation3 + $0x78] sm:$0xff] %v4699_v2 }
  0x2d   :  { %279 = vst [vmem:[#allocation3 + $0x80] sm:$0xff] %v4699_v2  ;;  %280 = vst [vmem:[#allocation3 + $0x88] sm:$0xff] %v4699_v2 }
  0x2e   :  { %281 = vst [vmem:[#allocation3 + $0x90] sm:$0xff] %v4699_v2  ;;  %282 = vst [vmem:[#allocation3 + $0x98] sm:$0xff] %v4699_v2 }
  0x2f   :  { %283 = vst [vmem:[#allocation3 + $0xa0] sm:$0xff] %v4699_v2  ;;  %284 = vst [vmem:[#allocation3 + $0xa8] sm:$0xff] %v4699_v2 }
  0x30   :  { %285 = vst [vmem:[#allocation3 + $0xb0] sm:$0xff] %v4699_v2  ;;  %286 = vst [vmem:[#allocation3 + $0xb8] sm:$0xff] %v4699_v2 }
  0x31   :  { %287 = vst [vmem:[#allocation3 + $0xc0] sm:$0xff] %v4699_v2  ;;  %288 = vst [vmem:[#allocation3 + $0xc8] sm:$0xff] %v4699_v2 }
  0x32   :  { %289 = vst [vmem:[#allocation3 + $0xd0] sm:$0xff] %v4699_v2  ;;  %290 = vst [vmem:[#allocation3 + $0xd8] sm:$0xff] %v4699_v2 }
  0x33   :  { %291 = vst [vmem:[#allocation3 + $0xe0] sm:$0xff] %v4699_v2  ;;  %292 = vst [vmem:[#allocation3 + $0xe8] sm:$0xff] %v4699_v2 }
  0x34   :  { %293 = vst [vmem:[#allocation3 + $0xf0] sm:$0xff] %v4699_v2  ;;  %294 = vst [vmem:[#allocation3 + $0xf8] sm:$0xff] %v4699_v2 }
  0x35   :  { %295 = vst [vmem:[#allocation3 + $0x100] sm:$0xff] %v4699_v2  ;;  %296 = vst [vmem:[#allocation3 + $0x108] sm:$0xff] %v4699_v2 }
  0x36   :  { %297 = vst [vmem:[#allocation3 + $0x110] sm:$0xff] %v4699_v2  ;;  %298 = vst [vmem:[#allocation3 + $0x118] sm:$0xff] %v4699_v2 }
  0x37   :  { %299 = vst [vmem:[#allocation3 + $0x120] sm:$0xff] %v4699_v2  ;;  %300 = vst [vmem:[#allocation3 + $0x128] sm:$0xff] %v4699_v2 }
  0x38   :  { %301 = vst [vmem:[#allocation3 + $0x130] sm:$0xff] %v4699_v2  ;;  %302 = vst [vmem:[#allocation3 + $0x138] sm:$0xff] %v4699_v2 }
  0x39   :  { %303 = vst [vmem:[#allocation3 + $0x140] sm:$0xff] %v4699_v2  ;;  %304 = vst [vmem:[#allocation3 + $0x148] sm:$0xff] %v4699_v2 }
  0x3a   :  { %305 = vst [vmem:[#allocation3 + $0x150] sm:$0xff] %v4699_v2  ;;  %306 = vst [vmem:[#allocation3 + $0x158] sm:$0xff] %v4699_v2 }
  0x3b   :  { %307 = vst [vmem:[#allocation3 + $0x160] sm:$0xff] %v4699_v2  ;;  %308 = vst [vmem:[#allocation3 + $0x168] sm:$0xff] %v4699_v2 }
  0x3c   :  { %309 = vst [vmem:[#allocation3 + $0x170] sm:$0xff] %v4699_v2  ;;  %310 = vst [vmem:[#allocation3 + $0x178] sm:$0xff] %v4699_v2 }
  0x3d   :  { %311 = vst [vmem:[#allocation3 + $0x180] sm:$0xff] %v4699_v2  ;;  %312 = vst [vmem:[#allocation3 + $0x188] sm:$0xff] %v4699_v2 }
  0x3e   :  { %313 = vst [vmem:[#allocation3 + $0x190] sm:$0xff] %v4699_v2  ;;  %314 = vst [vmem:[#allocation3 + $0x198] sm:$0xff] %v4699_v2 }
  0x3f   :  { %315 = vst [vmem:[#allocation3 + $0x1a0] sm:$0xff] %v4699_v2  ;;  %316 = vst [vmem:[#allocation3 + $0x1a8] sm:$0xff] %v4699_v2 }
  0x40   :  { %317 = vst [vmem:[#allocation3 + $0x1b0] sm:$0xff] %v4699_v2  ;;  %318 = vst [vmem:[#allocation3 + $0x1b8] sm:$0xff] %v4699_v2 }
  0x41   :  { %319 = vst [vmem:[#allocation3 + $0x1c0] sm:$0xff] %v4699_v2  ;;  %320 = vst [vmem:[#allocation3 + $0x1c8] sm:$0xff] %v4699_v2 }
  0x42   :  { %321 = vst [vmem:[#allocation3 + $0x1d0] sm:$0xff] %v4699_v2  ;;  %322 = vst [vmem:[#allocation3 + $0x1d8] sm:$0xff] %v4699_v2 }
  0x43   :  { %323 = vst [vmem:[#allocation3 + $0x1e0] sm:$0xff] %v4699_v2  ;;  %324 = vst [vmem:[#allocation3 + $0x1e8] sm:$0xff] %v4699_v2 }
  0x44   :  { %325 = vst [vmem:[#allocation3 + $0x1f0] sm:$0xff] %v4699_v2  ;;  %326 = vst [vmem:[#allocation3 + $0x1f8] sm:$0xff] %v4699_v2 }
  0x45   :  { %28 = vst.msk [vmem:[#allocation2 + $0x10] sm:$0x3] %vm27_vm1, %v4699_v2  ;;  %31 = vst.msk [vmem:[#allocation2 + $0x28] sm:$0x3] %vm27_vm1, %v4699_v2 }
  0x46   :  { %34 = vst.msk [vmem:[#allocation2 + $0x40] sm:$0x3] %vm27_vm1, %v4699_v2  ;;  %37 = vst.msk [vmem:[#allocation2 + $0x58] sm:$0x3] %vm27_vm1, %v4699_v2 }
  0x47   :  { %40 = vst.msk [vmem:[#allocation2 + $0x70] sm:$0x3] %vm27_vm1, %v4699_v2  ;;  %43 = vst.msk [vmem:[#allocation2 + $0x88] sm:$0x3] %vm27_vm1, %v4699_v2 }
  0x48   :  { %46 = vst.msk [vmem:[#allocation2 + $0xa0] sm:$0x3] %vm27_vm1, %v4699_v2  ;;  %49 = vst.msk [vmem:[#allocation2 + $0xb8] sm:$0x3] %vm27_vm1, %v4699_v2 }
  0x49   :  { %52 = vst.msk [vmem:[#allocation2 + $0xd0] sm:$0x3] %vm27_vm1, %v4699_v2  ;;  %55 = vst.msk [vmem:[#allocation2 + $0xe8] sm:$0x3] %vm27_vm1, %v4699_v2 }
  0x4a   :  { %58 = vst.msk [vmem:[#allocation2 + $0x100] sm:$0x3] %vm27_vm1, %v4699_v2  ;;  %61 = vst.msk [vmem:[#allocation2 + $0x118] sm:$0x3] %vm27_vm1, %v4699_v2 }
  0x4b   :  { %64 = vst.msk [vmem:[#allocation2 + $0x130] sm:$0x3] %vm27_vm1, %v4699_v2  ;;  %67 = vst.msk [vmem:[#allocation2 + $0x148] sm:$0x3] %vm27_vm1, %v4699_v2 }
  0x4c   :  { %70 = vst.msk [vmem:[#allocation2 + $0x160] sm:$0x3] %vm27_vm1, %v4699_v2  ;;  %73 = vst.msk [vmem:[#allocation2 + $0x178] sm:$0x3] %vm27_vm1, %v4699_v2  ;;  %v456_v27 = vld [vmem:[#allocation2 + $0x9] sm:$0xff] }
  0x4d   :  { %76 = vst.msk [vmem:[#allocation2 + $0x190] sm:$0x3] %vm27_vm1, %v4699_v2  ;;  %79 = vst.msk [vmem:[#allocation2 + $0x1a8] sm:$0x3] %vm27_vm1, %v4699_v2  ;;  %585 = vrot.lane.b32.xlu0 %v456_v27, %s4700_s21 }
  0x4e   :  { %82 = vst.msk [vmem:[#allocation2 + $0x1c0] sm:$0x3] %vm27_vm1, %v4699_v2  ;;  %85 = vst.msk [vmem:[#allocation2 + $0x1d8] sm:$0x3] %vm27_vm1, %v4699_v2 }
  0x4f   :  { %88 = vst.msk [vmem:[#allocation2 + $0x1f0] sm:$0x3] %vm27_vm1, %v4699_v2  ;;  %91 = vst.msk [vmem:[#allocation2 + $0x208] sm:$0x3] %vm27_vm1, %v4699_v2 }
  0x50   :  { %94 = vst.msk [vmem:[#allocation2 + $0x220] sm:$0x3] %vm27_vm1, %v4699_v2  ;;  %97 = vst.msk [vmem:[#allocation2 + $0x238] sm:$0x3] %vm27_vm1, %v4699_v2 }
  0x51   :  { %100 = vst.msk [vmem:[#allocation2 + $0x250] sm:$0x3] %vm27_vm1, %v4699_v2  ;;  %103 = vst.msk [vmem:[#allocation2 + $0x268] sm:$0x3] %vm27_vm1, %v4699_v2 }
  0x52   :  { %106 = vst.msk [vmem:[#allocation2 + $0x280] sm:$0x3] %vm27_vm1, %v4699_v2  ;;  %109 = vst.msk [vmem:[#allocation2 + $0x298] sm:$0x3] %vm27_vm1, %v4699_v2 }
  0x53   :  { %112 = vst.msk [vmem:[#allocation2 + $0x2b0] sm:$0x3] %vm27_vm1, %v4699_v2  ;;  %115 = vst.msk [vmem:[#allocation2 + $0x2c8] sm:$0x3] %vm27_vm1, %v4699_v2 }
  0x54   :  { %118 = vst.msk [vmem:[#allocation2 + $0x2e0] sm:$0x3] %vm27_vm1, %v4699_v2  ;;  %121 = vst.msk [vmem:[#allocation2 + $0x2f8] sm:$0x3] %vm27_vm1, %v4699_v2 }
  0x55   :  { %124 = vst.msk [vmem:[#allocation2 + $0x310] sm:$0x3] %vm27_vm1, %v4699_v2  ;;  %127 = vst.msk [vmem:[#allocation2 + $0x328] sm:$0x3] %vm27_vm1, %v4699_v2 }
  0x56   :  { %130 = vst.msk [vmem:[#allocation2 + $0x340] sm:$0x3] %vm27_vm1, %v4699_v2  ;;  %133 = vst.msk [vmem:[#allocation2 + $0x358] sm:$0x3] %vm27_vm1, %v4699_v2 }
  0x57   :  { %199 = vst.msk [vmem:[#allocation2 + $0x19] sm:$0xff] %vm24_vm0, %v4749_v0  ;;  %200 = vst.msk [vmem:[#allocation2 + $0x21] sm:$0xff] %vm24_vm0, %v4754_v1  ;;  %v184_v0 = vld [vmem:[%s6738_s0 + $0x190] sm:$0xff]  ;;  %v185_v1 = vld [vmem:[%s6738_s0 + $0x198] sm:$0xff] }
  0x58   :  { %201 = vst.msk [vmem:[#allocation2 + $0x31] sm:$0xff] %vm24_vm0, %v136_v3  ;;  %202 = vst.msk [vmem:[#allocation2 + $0x39] sm:$0xff] %vm24_vm0, %v137_v4  ;;  %v186_v3 = vld [vmem:[%s6738_s0 + $0x1a0] sm:$0xff]  ;;  %v187_v4 = vld [vmem:[%s6738_s0 + $0x1a8] sm:$0xff] }
  0x59   :  { %203 = vst.msk [vmem:[#allocation2 + $0x49] sm:$0xff] %vm24_vm0, %v138_v5  ;;  %204 = vst.msk [vmem:[#allocation2 + $0x51] sm:$0xff] %vm24_vm0, %v139_v6  ;;  %v188_v5 = vld [vmem:[%s6738_s0 + $0x1b0] sm:$0xff]  ;;  %v189_v6 = vld [vmem:[%s6738_s0 + $0x1b8] sm:$0xff] }
  0x5a   :  { %205 = vst.msk [vmem:[#allocation2 + $0x61] sm:$0xff] %vm24_vm0, %v140_v7  ;;  %206 = vst.msk [vmem:[#allocation2 + $0x69] sm:$0xff] %vm24_vm0, %v141_v8  ;;  %v327_v8 = vld [vmem:[#allocation2] sm:$0xff] }
  0x5b   :  { %207 = vst.msk [vmem:[#allocation2 + $0x79] sm:$0xff] %vm24_vm0, %v142_v9  ;;  %208 = vst.msk [vmem:[#allocation2 + $0x81] sm:$0xff] %vm24_vm0, %v143_v10 }
  0x5c   :  { %209 = vst.msk [vmem:[#allocation2 + $0x91] sm:$0xff] %vm24_vm0, %v144_v11  ;;  %210 = vst.msk [vmem:[#allocation2 + $0x99] sm:$0xff] %vm24_vm0, %v145_v12  ;;  %v190_v11 = vld [vmem:[%s6738_s0 + $0x1c0] sm:$0xff]  ;;  %v191_v12 = vld [vmem:[%s6738_s0 + $0x1c8] sm:$0xff] }
  0x5d   :  { %211 = vst.msk [vmem:[#allocation2 + $0xa9] sm:$0xff] %vm24_vm0, %v146_v13  ;;  %212 = vst.msk [vmem:[#allocation2 + $0xb1] sm:$0xff] %vm24_vm0, %v147_v14  ;;  %v328_v14 = vld [vmem:[#allocation2 + $0x8] sm:$0xff] }
  0x5e   :  { %213 = vst.msk [vmem:[#allocation2 + $0xc1] sm:$0xff] %vm24_vm0, %v148_v15  ;;  %214 = vst.msk [vmem:[#allocation2 + $0xc9] sm:$0xff] %vm24_vm0, %v149_v16  ;;  %v457_v26 = vld [vmem:[#allocation2 + $0x19] sm:$0xff]  ;;  %v458_v28 = vld [vmem:[#allocation2 + $0x21] sm:$0xff] }
  0x5f   :  { %215 = vst.msk [vmem:[#allocation2 + $0xd9] sm:$0xff] %vm24_vm0, %v150_v17  ;;  %216 = vst.msk [vmem:[#allocation2 + $0xe1] sm:$0xff] %vm24_vm0, %v151_v18  ;;  %587 = vrot.lane.b32.xlu1 %v457_v26, %s4700_s21  ;;  %v459_v29 = vld [vmem:[#allocation2 + $0x31] sm:$0xff]  ;;  %v460_v30 = vld [vmem:[#allocation2 + $0x39] sm:$0xff] }
  0x60   :  { %217 = vst.msk [vmem:[#allocation2 + $0xf1] sm:$0xff] %vm24_vm0, %v152_v19  ;;  %218 = vst.msk [vmem:[#allocation2 + $0xf9] sm:$0xff] %vm24_vm0, %v153_v20  ;;  %v461_v31 = vld [vmem:[#allocation2 + $0x49] sm:$0xff]  ;;  %591 = vrot.lane.b32.xlu0 %v459_v29, %s4700_s21  ;;  %v462_v38 = vld [vmem:[#allocation2 + $0x51] sm:$0xff] }
  0x61   :  { %219 = vst.msk [vmem:[#allocation2 + $0x109] sm:$0xff] %vm24_vm0, %v154_v21  ;;  %220 = vst.msk [vmem:[#allocation2 + $0x111] sm:$0xff] %vm24_vm0, %v155_v22  ;;  %v463_v40 = vld [vmem:[#allocation2 + $0x61] sm:$0xff]  ;;  %v464_v44 = vld [vmem:[#allocation2 + $0x69] sm:$0xff] }
  0x62   :  { %221 = vst.msk [vmem:[#allocation2 + $0x121] sm:$0xff] %vm24_vm0, %v156_v23  ;;  %222 = vst.msk [vmem:[#allocation2 + $0x129] sm:$0xff] %vm24_vm0, %v157_v25  ;;  %v465_v57 = vld [vmem:[#allocation2 + $0x79] sm:$0xff]  ;;  %v466_v58 = vld [vmem:[#allocation2 + $0x81] sm:$0xff] }
  0x63   :  { %589 = vrot.lane.b32.xlu1 %v458_v28, %s4700_s21  ;;  %223 = vst.msk [vmem:[#allocation2 + $0x139] sm:$0xff] %vm24_vm0, %v158_v32  ;;  %224 = vst.msk [vmem:[#allocation2 + $0x141] sm:$0xff] %vm24_vm0, %v159_v33  ;;  %v467_v61 = vld [vmem:[#allocation2 + $0x91] sm:$0xff]  ;;  %v468_v62 = vld [vmem:[#allocation2 + $0x99] sm:$0xff] }
  0x64   :  { %225 = vst.msk [vmem:[#allocation2 + $0x151] sm:$0xff] %vm24_vm0, %v160_v34  ;;  %226 = vst.msk [vmem:[#allocation2 + $0x159] sm:$0xff] %vm24_vm0, %v161_v35  ;;  %595 = vrot.lane.b32.xlu0 %v461_v31, %s4700_s21  ;;  %v469_v63 = vld [vmem:[#allocation2 + $0xa9] sm:$0xff]  ;;  %v470_v7 = vld [vmem:[#allocation2 + $0xb1] sm:$0xff] }
  0x65   :  { %227 = vst.msk [vmem:[#allocation2 + $0x169] sm:$0xff] %vm24_vm0, %v162_v36  ;;  %228 = vst.msk [vmem:[#allocation2 + $0x171] sm:$0xff] %vm24_vm0, %v163_v37  ;;  %v471_v9 = vld [vmem:[#allocation2 + $0xc1] sm:$0xff]  ;;  %v5263_v10 = vld [vmem:[#allocation2 + $0x18] sm:$0xff] }
  0x66   :  { %231 = vst.msk [vmem:[#allocation2 + $0x1c9] sm:$0xff] %vm24_vm0, %v166_v39  ;;  %232 = vst.msk [vmem:[#allocation2 + $0x1d1] sm:$0xff] %vm24_vm0, %v167_v41  ;;  %v472_v13 = vld [vmem:[#allocation2 + $0xc9] sm:$0xff]  ;;  %v5276_v15 = vld [vmem:[#allocation2 + $0x20] sm:$0xff] }
  0x67   :  { %593 = vrot.lane.b32.xlu1 %v460_v30, %s4700_s21  ;;  %233 = vst.msk [vmem:[#allocation2 + $0x1e1] sm:$0xff] %vm24_vm0, %v168_v42  ;;  %234 = vst.msk [vmem:[#allocation2 + $0x1e9] sm:$0xff] %vm24_vm0, %v169_v43  ;;  %v192_v16 = vld [vmem:[%s6738_s0 + $0x1d0] sm:$0xff]  ;;  %v193_v17 = vld [vmem:[%s6738_s0 + $0x1d8] sm:$0xff] }
  0x68   :  { %235 = vst.msk [vmem:[#allocation2 + $0x1f9] sm:$0xff] %vm24_vm0, %v170_v45  ;;  %236 = vst.msk [vmem:[#allocation2 + $0x201] sm:$0xff] %vm24_vm0, %v171_v46  ;;  %599 = vrot.lane.b32.xlu0 %v463_v40, %s4700_s21  ;;  %v5289_v18 = vld [vmem:[#allocation2 + $0x30] sm:$0xff]  ;;  %v5291_v19 = vld [vmem:[#allocation2 + $0x38] sm:$0xff] }
  0x69   :  { %237 = vst.msk [vmem:[#allocation2 + $0x211] sm:$0xff] %vm24_vm0, %v172_v47  ;;  %238 = vst.msk [vmem:[#allocation2 + $0x219] sm:$0xff] %vm24_vm0, %v173_v48  ;;  %v194_v20 = vld [vmem:[%s6738_s0 + $0x1e0] sm:$0xff]  ;;  %v195_v21 = vld [vmem:[%s6738_s0 + $0x1e8] sm:$0xff] }
  0x6a   :  { %239 = vst.msk [vmem:[#allocation2 + $0x229] sm:$0xff] %vm24_vm0, %v174_v49  ;;  %240 = vst.msk [vmem:[#allocation2 + $0x231] sm:$0xff] %vm24_vm0, %v175_v50  ;;  %v5304_v22 = vld [vmem:[#allocation2 + $0x48] sm:$0xff]  ;;  %v5310_v23 = vld [vmem:[#allocation2 + $0x50] sm:$0xff] }
  0x6b   :  { %597 = vrot.lane.b32.xlu1 %v462_v38, %s4700_s21  ;;  %241 = vst.msk [vmem:[#allocation2 + $0x241] sm:$0xff] %vm24_vm0, %v176_v51  ;;  %242 = vst.msk [vmem:[#allocation2 + $0x249] sm:$0xff] %vm24_vm0, %v177_v52  ;;  %v473_v24 = vld [vmem:[#allocation2 + $0xd9] sm:$0xff]  ;;  %v474_v25 = vld [vmem:[#allocation2 + $0xe1] sm:$0xff] }
  0x6c   :  { %243 = vst.msk [vmem:[#allocation2 + $0x259] sm:$0xff] %vm24_vm0, %v178_v53  ;;  %244 = vst.msk [vmem:[#allocation2 + $0x261] sm:$0xff] %vm24_vm0, %v179_v54  ;;  %603 = vrot.lane.b32.xlu0 %v465_v57, %s4700_s21  ;;  %v5316_v26 = vld [vmem:[#allocation2 + $0x60] sm:$0xff]  ;;  %v5318_v27 = vld [vmem:[#allocation2 + $0x68] sm:$0xff] }
  0x6d   :  { %245 = vst.msk [vmem:[#allocation2 + $0x271] sm:$0xff] %vm24_vm0, %v180_v55  ;;  %246 = vst.msk [vmem:[#allocation2 + $0x279] sm:$0xff] %vm24_vm0, %v181_v56  ;;  %v5325_v28 = vld [vmem:[#allocation2 + $0x78] sm:$0xff]  ;;  %v5327_v29 = vld [vmem:[#allocation2 + $0x80] sm:$0xff] }
  0x6e   :  { %247 = vst.msk [vmem:[#allocation2 + $0x289] sm:$0xff] %vm24_vm0, %v182_v59  ;;  %248 = vst.msk [vmem:[#allocation2 + $0x291] sm:$0xff] %vm24_vm0, %v183_v60  ;;  %v475_v30 = vld [vmem:[#allocation2 + $0xf1] sm:$0xff]  ;;  %v476_v31 = vld [vmem:[#allocation2 + $0xf9] sm:$0xff] }
  0x6f   :  { %601 = vrot.lane.b32.xlu1 %v464_v44, %s4700_s21  ;;  %249 = vst.msk [vmem:[#allocation2 + $0x2a1] sm:$0xff] %vm24_vm0, %v184_v0  ;;  %250 = vst.msk [vmem:[#allocation2 + $0x2a9] sm:$0xff] %vm24_vm0, %v185_v1  ;;  %v339_v32 = vld [vmem:[#allocation2 + $0x90] sm:$0xff]  ;;  %v340_v33 = vld [vmem:[#allocation2 + $0x98] sm:$0xff] }
  0x70   :  { %607 = vrot.lane.b32.xlu0 %v467_v61, %s4700_s21  ;;  %251 = vst.msk [vmem:[#allocation2 + $0x2b9] sm:$0xff] %vm24_vm0, %v186_v3  ;;  %252 = vst.msk [vmem:[#allocation2 + $0x2c1] sm:$0xff] %vm24_vm0, %v187_v4  ;;  %v341_v34 = vld [vmem:[#allocation2 + $0xa8] sm:$0xff]  ;;  %v342_v35 = vld [vmem:[#allocation2 + $0xb0] sm:$0xff] }
  0x71   :  { %253 = vst.msk [vmem:[#allocation2 + $0x2d1] sm:$0xff] %vm24_vm0, %v188_v5  ;;  %254 = vst.msk [vmem:[#allocation2 + $0x2d9] sm:$0xff] %vm24_vm0, %v189_v6  ;;  %v477_v36 = vld [vmem:[#allocation2 + $0x109] sm:$0xff]  ;;  %v343_v37 = vld [vmem:[#allocation2 + $0xc0] sm:$0xff] }
  0x72   :  { %391 = vst.msk [vmem:[#allocation3] sm:$0xff] %vm24_vm0, %v327_v8  ;;  %393 = vst.msk [vmem:[#allocation3 + $0x10] sm:$0xff] %vm24_vm0, %v5263_v10  ;;  %v344_v38 = vld [vmem:[#allocation2 + $0xc8] sm:$0xff]  ;;  %v478_v39 = vld [vmem:[#allocation2 + $0x111] sm:$0xff] }
  0x73   :  { %605 = vrot.lane.b32.xlu1 %v466_v58, %s4700_s21  ;;  %255 = vst.msk [vmem:[#allocation2 + $0x2e9] sm:$0xff] %vm24_vm0, %v190_v11  ;;  %256 = vst.msk [vmem:[#allocation2 + $0x2f1] sm:$0xff] %vm24_vm0, %v191_v12  ;;  %v345_v40 = vld [vmem:[#allocation2 + $0xd8] sm:$0xff]  ;;  %v346_v41 = vld [vmem:[#allocation2 + $0xe0] sm:$0xff] }
  0x74   :  { %611 = vrot.lane.b32.xlu0 %v469_v63, %s4700_s21  ;;  %392 = vst.msk [vmem:[#allocation3 + $0x8] sm:$0xff] %vm24_vm0, %v328_v14  ;;  %394 = vst.msk [vmem:[#allocation3 + $0x18] sm:$0xff] %vm24_vm0, %v5276_v15  ;;  %v347_v42 = vld [vmem:[#allocation2 + $0xf0] sm:$0xff]  ;;  %v348_v43 = vld [vmem:[#allocation2 + $0xf8] sm:$0xff] }
  0x75   :  { %257 = vst.msk [vmem:[#allocation2 + $0x301] sm:$0xff] %vm24_vm0, %v192_v16  ;;  %258 = vst.msk [vmem:[#allocation2 + $0x309] sm:$0xff] %vm24_vm0, %v193_v17  ;;  %v479_v44 = vld [vmem:[#allocation2 + $0x121] sm:$0xff]  ;;  %v350_v46 = vld [vmem:[#allocation2 + $0x110] sm:$0xff] }
  0x76   :  { %395 = vst.msk [vmem:[#allocation3 + $0x20] sm:$0xff] %vm24_vm0, %v5289_v18  ;;  %396 = vst.msk [vmem:[#allocation3 + $0x28] sm:$0xff] %vm24_vm0, %v5291_v19  ;;  %v349_v45 = vld [vmem:[#allocation2 + $0x108] sm:$0xff]  ;;  %v351_v48 = vld [vmem:[#allocation2 + $0x120] sm:$0xff] }
  0x77   :  { %609 = vrot.lane.b32.xlu1 %v468_v62, %s4700_s21  ;;  %259 = vst.msk [vmem:[#allocation2 + $0x319] sm:$0xff] %vm24_vm0, %v194_v20  ;;  %260 = vst.msk [vmem:[#allocation2 + $0x321] sm:$0xff] %vm24_vm0, %v195_v21  ;;  %v480_v47 = vld [vmem:[#allocation2 + $0x129] sm:$0xff]  ;;  %v353_v50 = vld [vmem:[#allocation2 + $0x138] sm:$0xff] }
  0x78   :  { %397 = vst.msk [vmem:[#allocation3 + $0x30] sm:$0xff] %vm24_vm0, %v5304_v22  ;;  %615 = vrot.lane.b32.xlu0 %v471_v9, %s4700_s21  ;;  %398 = vst.msk [vmem:[#allocation3 + $0x38] sm:$0xff] %vm24_vm0, %v5310_v23  ;;  %v352_v49 = vld [vmem:[#allocation2 + $0x128] sm:$0xff]  ;;  %v354_v51 = vld [vmem:[#allocation2 + $0x140] sm:$0xff] }
  0x79   :  { %399 = vst.msk [vmem:[#allocation3 + $0x40] sm:$0xff] %vm24_vm0, %v5316_v26  ;;  %400 = vst.msk [vmem:[#allocation3 + $0x48] sm:$0xff] %vm24_vm0, %v5318_v27  ;;  %v481_v52 = vld [vmem:[#allocation2 + $0x139] sm:$0xff]  ;;  %v355_v53 = vld [vmem:[#allocation2 + $0x150] sm:$0xff] }
  0x7a   :  { %401 = vst.msk [vmem:[#allocation3 + $0x50] sm:$0xff] %vm24_vm0, %v5325_v28  ;;  %402 = vst.msk [vmem:[#allocation3 + $0x58] sm:$0xff] %vm24_vm0, %v5327_v29  ;;  %v356_v54 = vld [vmem:[#allocation2 + $0x158] sm:$0xff]  ;;  %v482_v55 = vld [vmem:[#allocation2 + $0x141] sm:$0xff] }
  0x7b   :  { %613 = vrot.lane.b32.xlu1 %v470_v7, %s4700_s21  ;;  %403 = vst.msk [vmem:[#allocation3 + $0x60] sm:$0xff] %vm24_vm0, %v339_v32  ;;  %404 = vst.msk [vmem:[#allocation3 + $0x68] sm:$0xff] %vm24_vm0, %v340_v33  ;;  %v357_v56 = vld [vmem:[#allocation2 + $0x168] sm:$0xff]  ;;  %v358_v57 = vld [vmem:[#allocation2 + $0x170] sm:$0xff] }
  0x7c   :  { %619 = vrot.lane.b32.xlu0 %v473_v24, %s4700_s21  ;;  %405 = vst.msk [vmem:[#allocation3 + $0x70] sm:$0xff] %vm24_vm0, %v341_v34  ;;  %406 = vst.msk [vmem:[#allocation3 + $0x78] sm:$0xff] %vm24_vm0, %v342_v35  ;;  %v359_v58 = vld [vmem:[#allocation2 + $0x1b0] sm:$0xff]  ;;  %v360_v59 = vld [vmem:[#allocation2 + $0x1b8] sm:$0xff] }
  0x7d   :  { %407 = vst.msk [vmem:[#allocation3 + $0x80] sm:$0xff] %vm24_vm0, %v343_v37  ;;  %408 = vst.msk [vmem:[#allocation3 + $0x88] sm:$0xff] %vm24_vm0, %v344_v38  ;;  %v483_v60 = vld [vmem:[#allocation2 + $0x151] sm:$0xff]  ;;  %v361_v61 = vld [vmem:[#allocation2 + $0x1c8] sm:$0xff] }
  0x7e   :  { %409 = vst.msk [vmem:[#allocation3 + $0x90] sm:$0xff] %vm24_vm0, %v345_v40  ;;  %410 = vst.msk [vmem:[#allocation3 + $0x98] sm:$0xff] %vm24_vm0, %v346_v41 }
  0x7f   :  { %617 = vrot.lane.b32.xlu1 %v472_v13, %s4700_s21  ;;  %411 = vst.msk [vmem:[#allocation3 + $0xa0] sm:$0xff] %vm24_vm0, %v347_v42  ;;  %412 = vst.msk [vmem:[#allocation3 + $0xa8] sm:$0xff] %vm24_vm0, %v348_v43 }
  0x80   :  { %623 = vrot.lane.b32.xlu0 %v475_v30, %s4700_s21  ;;  %413 = vst.msk [vmem:[#allocation3 + $0xb0] sm:$0xff] %vm24_vm0, %v349_v45  ;;  %414 = vst.msk [vmem:[#allocation3 + $0xb8] sm:$0xff] %vm24_vm0, %v350_v46 }
  0x81   :  { %415 = vst.msk [vmem:[#allocation3 + $0xc0] sm:$0xff] %vm24_vm0, %v351_v48  ;;  %416 = vst.msk [vmem:[#allocation3 + $0xc8] sm:$0xff] %vm24_vm0, %v352_v49 }
  0x82   :  { %417 = vst.msk [vmem:[#allocation3 + $0xd0] sm:$0xff] %vm24_vm0, %v353_v50  ;;  %418 = vst.msk [vmem:[#allocation3 + $0xd8] sm:$0xff] %vm24_vm0, %v354_v51 }
  0x83   :  { %621 = vrot.lane.b32.xlu1 %v474_v25, %s4700_s21  ;;  %419 = vst.msk [vmem:[#allocation3 + $0xe0] sm:$0xff] %vm24_vm0, %v355_v53  ;;  %420 = vst.msk [vmem:[#allocation3 + $0xe8] sm:$0xff] %vm24_vm0, %v356_v54 }
  0x84   :  { %627 = vrot.lane.b32.xlu0 %v477_v36, %s4700_s21  ;;  %421 = vst.msk [vmem:[#allocation3 + $0xf0] sm:$0xff] %vm24_vm0, %v357_v56  ;;  %422 = vst.msk [vmem:[#allocation3 + $0xf8] sm:$0xff] %vm24_vm0, %v358_v57 }
  0x85   :  { %423 = vst.msk [vmem:[#allocation3 + $0x100] sm:$0xff] %vm24_vm0, %v359_v58  ;;  %424 = vst.msk [vmem:[#allocation3 + $0x108] sm:$0xff] %vm24_vm0, %v360_v59 }
  0x87   :  { %625 = vrot.lane.b32.xlu1 %v476_v31, %s4700_s21 }
  0x88   :  { %631 = vrot.lane.b32.xlu0 %v479_v44, %s4700_s21 }
  0x8b   :  { %629 = vrot.lane.b32.xlu1 %v478_v39, %s4700_s21 }
  0x8c   :  { %635 = vrot.lane.b32.xlu0 %v481_v52, %s4700_s21 }
  0x8f   :  { %633 = vrot.lane.b32.xlu1 %v480_v47, %s4700_s21 }
  0x93   :  { %637 = vrot.lane.b32.xlu1 %v482_v55, %s4700_s21 }
  0x94   :  { %11 = vsyncpa [#allocation5], 0  ;;  %v484_v62 = vld [vmem:[#allocation2 + $0x159] sm:$0xff]  ;;  %425 = vst.msk [vmem:[#allocation3 + $0x110] sm:$0xff] %vm24_vm0, %v361_v61  ;;  %v362_v63 = vld [vmem:[#allocation2 + $0x1d0] sm:$0xff]  ;;  %639 = vrot.lane.b32.xlu0 %v483_v60, %s4700_s21  ;;  %vm775_vm2 = vcmask 64544  }
  0x95   :  { %426 = vst.msk [vmem:[#allocation3 + $0x118] sm:$0xff] %vm24_vm0, %v362_v63  ;;  %v485_v0 = vld [vmem:[#allocation2 + $0x169] sm:$0xff]  ;;  %v363_v1 = vld [vmem:[#allocation2 + $0x1e0] sm:$0xff]  ;;  %v486_v3 = vld [vmem:[#allocation2 + $0x171] sm:$0xff]  ;;  %s4701_s25 = smov 8   ;;  %s4702_s7 = smov 12  }
  0x96   :  { %427 = vst.msk [vmem:[#allocation3 + $0x120] sm:$0xff] %vm24_vm0, %v363_v1  ;;  %v364_v4 = vld [vmem:[#allocation2 + $0x1e8] sm:$0xff]  ;;  %v487_v5 = vld [vmem:[#allocation2 + $0x1b1] sm:$0xff]  ;;  %v488_v7 = vld [vmem:[#allocation2 + $0x1b9] sm:$0xff]  ;;  %s4703_s12 = smov 16   ;;  %vm1160_vm3 = vcmask 97344  }
  0x97   :  { %641 = vrot.lane.b32.xlu1 %v484_v62, %s4700_s21  ;;  %428 = vst.msk [vmem:[#allocation3 + $0x128] sm:$0xff] %vm24_vm0, %v364_v4  ;;  %v365_v6 = vld [vmem:[#allocation2 + $0x1f8] sm:$0xff]  ;;  %v366_v8 = vld [vmem:[#allocation2 + $0x200] sm:$0xff]  ;;  %v489_v9 = vld [vmem:[#allocation2 + $0x1c9] sm:$0xff]  ;;  %s4704_s17 = smov 20   ;;  %s4705_s23 = smov 24  }
  0x98   :  { %643 = vrot.lane.b32.xlu0 %v485_v0, %s4700_s21  ;;  %429 = vst.msk [vmem:[#allocation3 + $0x130] sm:$0xff] %vm24_vm0, %v365_v6  ;;  %430 = vst.msk [vmem:[#allocation3 + $0x138] sm:$0xff] %vm24_vm0, %v366_v8  ;;  %v367_v11 = vld [vmem:[#allocation2 + $0x210] sm:$0xff]  ;;  %v368_v13 = vld [vmem:[#allocation2 + $0x218] sm:$0xff]  ;;  %s4706_s30 = smov 28   ;;  %s4707_s18 = smov 32  }
  0x99   :  { %v490_v12 = vld [vmem:[#allocation2 + $0x1d1] sm:$0xff]  ;;  %431 = vst.msk [vmem:[#allocation3 + $0x140] sm:$0xff] %vm24_vm0, %v367_v11  ;;  %432 = vst.msk [vmem:[#allocation3 + $0x148] sm:$0xff] %vm24_vm0, %v368_v13  ;;  %v491_v14 = vld [vmem:[#allocation2 + $0x1e1] sm:$0xff]  ;;  %vm1545_vm4 = vcmask 130144   ;;  %vm1930_vm5 = vcmask 162944  }
  0x9a   :  { %v369_v16 = vld [vmem:[#allocation2 + $0x228] sm:$0xff]  ;;  %v370_v20 = vld [vmem:[#allocation2 + $0x230] sm:$0xff]  ;;  %v493_v21 = vld [vmem:[#allocation2 + $0x1f9] sm:$0xff]  ;;  %vm2315_vm6 = vcmask 195744   ;;  %vm2701_vm7 = vcmask 228544   ;;  %vm3086_vm8 = vcmask 261344  }
  0x9b   :  { %645 = vrot.lane.b32.xlu1 %v486_v3, %s4700_s21  ;;  %v492_v17 = vld [vmem:[#allocation2 + $0x1e9] sm:$0xff]  ;;  %433 = vst.msk [vmem:[#allocation3 + $0x150] sm:$0xff] %vm24_vm0, %v369_v16  ;;  %434 = vst.msk [vmem:[#allocation3 + $0x158] sm:$0xff] %vm24_vm0, %v370_v20  ;;  %v371_v24 = vld [vmem:[#allocation2 + $0x240] sm:$0xff]  ;;  %vm3471_vm9 = vcmask 294144   ;;  %vm4709_vm10 = vmmov 0  }
  0x9c   :  { %647 = vrot.lane.b32.xlu0 %v487_v5, %s4700_s21  ;;  %v494_v25 = vld [vmem:[#allocation2 + $0x201] sm:$0xff]  ;;  %435 = vst.msk [vmem:[#allocation3 + $0x160] sm:$0xff] %vm24_vm0, %v371_v24  ;;  %v495_v31 = vld [vmem:[#allocation2 + $0x211] sm:$0xff]  ;;  %v496_v33 = vld [vmem:[#allocation2 + $0x219] sm:$0xff]  ;;  %v584_v5 = vpop.permute.xlu0 %583  ;;  %vm4246_vm11 = vcmask 261120   ;;  %s4710_s11 = smov [#allocation4]  }
  0x9d   :  { %v372_v30 = vld [vmem:[#allocation2 + $0x248] sm:$0xff]  ;;  %v373_v32 = vld [vmem:[#allocation2 + $0x258] sm:$0xff]  ;;  %v374_v34 = vld [vmem:[#allocation2 + $0x260] sm:$0xff]  ;;  %776 = vst.msk [vmem:[#allocation3] sm:$0xff] %vm775_vm2, %v584_v5  ;;  %s4327_s13 = sshll.u32 %s4710_s11, 4  ;;  %s4328_s13 = int_to_ptr.vmem [resolvable:$true] %s4327_s13 }
  0x9e   :  { %436 = vst.msk [vmem:[#allocation3 + $0x168] sm:$0xff] %vm24_vm0, %v372_v30  ;;  %437 = vst.msk [vmem:[#allocation3 + $0x170] sm:$0xff] %vm24_vm0, %v373_v32  ;;  %v497_v35 = vld [vmem:[#allocation2 + $0x229] sm:$0xff]  ;;  %v498_v37 = vld [vmem:[#allocation2 + $0x231] sm:$0xff]  ;;  %p4682_p1 = scmp.lt.s32.totalorder %s4328_s13, %s4328_s13 }
  0x9f   :  { %649 = vrot.lane.b32.xlu1 %v488_v7, %s4700_s21  ;;  %438 = vst.msk [vmem:[#allocation3 + $0x178] sm:$0xff] %vm24_vm0, %v374_v34  ;;  %v375_v36 = vld [vmem:[#allocation2 + $0x270] sm:$0xff]  ;;  %v376_v38 = vld [vmem:[#allocation2 + $0x278] sm:$0xff]  ;;  %v499_v39 = vld [vmem:[#allocation2 + $0x241] sm:$0xff] }
  0xa0   :  { %651 = vrot.lane.b32.xlu0 %v489_v9, %s4700_s21  ;;  %439 = vst.msk [vmem:[#allocation3 + $0x180] sm:$0xff] %vm24_vm0, %v375_v36  ;;  %440 = vst.msk [vmem:[#allocation3 + $0x188] sm:$0xff] %vm24_vm0, %v376_v38  ;;  %v377_v40 = vld [vmem:[#allocation2 + $0x288] sm:$0xff]  ;;  %v378_v42 = vld [vmem:[#allocation2 + $0x290] sm:$0xff] }
  0xa1   :  { %v500_v41 = vld [vmem:[#allocation2 + $0x249] sm:$0xff]  ;;  %441 = vst.msk [vmem:[#allocation3 + $0x190] sm:$0xff] %vm24_vm0, %v377_v40  ;;  %442 = vst.msk [vmem:[#allocation3 + $0x198] sm:$0xff] %vm24_vm0, %v378_v42  ;;  %v501_v43 = vld [vmem:[#allocation2 + $0x259] sm:$0xff] }
  0xa2   :  { %v379_v44 = vld [vmem:[#allocation2 + $0x2a0] sm:$0xff]  ;;  %v380_v46 = vld [vmem:[#allocation2 + $0x2a8] sm:$0xff]  ;;  %v503_v47 = vld [vmem:[#allocation2 + $0x271] sm:$0xff] }
  0xa3   :  { %653 = vrot.lane.b32.xlu1 %v490_v12, %s4700_s21  ;;  %v502_v45 = vld [vmem:[#allocation2 + $0x261] sm:$0xff]  ;;  %443 = vst.msk [vmem:[#allocation3 + $0x1a0] sm:$0xff] %vm24_vm0, %v379_v44  ;;  %444 = vst.msk [vmem:[#allocation3 + $0x1a8] sm:$0xff] %vm24_vm0, %v380_v46  ;;  %v381_v48 = vld [vmem:[#allocation2 + $0x2b8] sm:$0xff] }
  0xa4   :  { %655 = vrot.lane.b32.xlu0 %v491_v14, %s4700_s21  ;;  %v504_v49 = vld [vmem:[#allocation2 + $0x279] sm:$0xff]  ;;  %445 = vst.msk [vmem:[#allocation3 + $0x1b0] sm:$0xff] %vm24_vm0, %v381_v48  ;;  %v505_v51 = vld [vmem:[#allocation2 + $0x289] sm:$0xff]  ;;  %v506_v53 = vld [vmem:[#allocation2 + $0x291] sm:$0xff] }
  0xa5   :  { %v382_v50 = vld [vmem:[#allocation2 + $0x2c0] sm:$0xff]  ;;  %v383_v52 = vld [vmem:[#allocation2 + $0x2d0] sm:$0xff]  ;;  %v384_v54 = vld [vmem:[#allocation2 + $0x2d8] sm:$0xff] }
  0xa6   :  { %446 = vst.msk [vmem:[#allocation3 + $0x1b8] sm:$0xff] %vm24_vm0, %v382_v50  ;;  %447 = vst.msk [vmem:[#allocation3 + $0x1c0] sm:$0xff] %vm24_vm0, %v383_v52  ;;  %v507_v55 = vld [vmem:[#allocation2 + $0x2a1] sm:$0xff]  ;;  %v508_v57 = vld [vmem:[#allocation2 + $0x2a9] sm:$0xff] }
  0xa7   :  { %657 = vrot.lane.b32.xlu1 %v492_v17, %s4700_s21  ;;  %448 = vst.msk [vmem:[#allocation3 + $0x1c8] sm:$0xff] %vm24_vm0, %v384_v54  ;;  %v385_v56 = vld [vmem:[#allocation2 + $0x2e8] sm:$0xff]  ;;  %v386_v58 = vld [vmem:[#allocation2 + $0x2f0] sm:$0xff]  ;;  %v509_v59 = vld [vmem:[#allocation2 + $0x2b9] sm:$0xff] }
  0xa8   :  { %659 = vrot.lane.b32.xlu0 %v493_v21, %s4700_s21  ;;  %449 = vst.msk [vmem:[#allocation3 + $0x1d0] sm:$0xff] %vm24_vm0, %v385_v56  ;;  %450 = vst.msk [vmem:[#allocation3 + $0x1d8] sm:$0xff] %vm24_vm0, %v386_v58  ;;  %v387_v60 = vld [vmem:[#allocation2 + $0x300] sm:$0xff]  ;;  %v388_v62 = vld [vmem:[#allocation2 + $0x308] sm:$0xff] }
  0xa9   :  { %v510_v61 = vld [vmem:[#allocation2 + $0x2c1] sm:$0xff]  ;;  %451 = vst.msk [vmem:[#allocation3 + $0x1e0] sm:$0xff] %vm24_vm0, %v387_v60  ;;  %452 = vst.msk [vmem:[#allocation3 + $0x1e8] sm:$0xff] %vm24_vm0, %v388_v62  ;;  %v511_v63 = vld [vmem:[#allocation2 + $0x2d1] sm:$0xff] }
  0xaa   :  { %v389_v0 = vld [vmem:[#allocation2 + $0x318] sm:$0xff]  ;;  %v390_v3 = vld [vmem:[#allocation2 + $0x320] sm:$0xff]  ;;  %v513_v4 = vld [vmem:[#allocation2 + $0x2e9] sm:$0xff] }
  0xab   :  { %661 = vrot.lane.b32.xlu1 %v494_v25, %s4700_s21  ;;  %v512_v1 = vld [vmem:[#allocation2 + $0x2d9] sm:$0xff]  ;;  %453 = vst.msk [vmem:[#allocation3 + $0x1f0] sm:$0xff] %vm24_vm0, %v389_v0  ;;  %454 = vst.msk [vmem:[#allocation3 + $0x1f8] sm:$0xff] %vm24_vm0, %v390_v3  ;;  %v514_v6 = vld [vmem:[#allocation2 + $0x2f1] sm:$0xff] }
  0xac   :  { %663 = vrot.lane.b32.xlu0 %v495_v31, %s4700_s21  ;;  %v515_v8 = vld [vmem:[#allocation2 + $0x301] sm:$0xff]  ;;  %v516_v11 = vld [vmem:[#allocation2 + $0x309] sm:$0xff]  ;;  %v517_v13 = vld [vmem:[#allocation2 + $0x319] sm:$0xff] }
  0xad   :  { %v518_v16 = vld [vmem:[#allocation2 + $0x321] sm:$0xff]  ;;  %v841_v24 = vld [vmem:[#allocation2 + $0xa] sm:$0xff]  ;;  %v5450_v34 = vld [vmem:[#allocation2 + $0x32] sm:$0xff] }
  0xae   :  { %v840_v20 = vld [vmem:[#allocation2 + $0x2] sm:$0xff]  ;;  %v5440_v30 = vld [vmem:[#allocation2 + $0x1a] sm:$0xff]  ;;  %v5460_v38 = vld [vmem:[#allocation2 + $0x4a] sm:$0xff] }
  0xaf   :  { %665 = vrot.lane.b32.xlu1 %v496_v33, %s4700_s21  ;;  %v5442_v32 = vld [vmem:[#allocation2 + $0x22] sm:$0xff]  ;;  %v5452_v36 = vld [vmem:[#allocation2 + $0x3a] sm:$0xff]  ;;  %v5462_v40 = vld [vmem:[#allocation2 + $0x52] sm:$0xff] }
  0xb0   :  { %667 = vrot.lane.b32.xlu0 %v497_v35, %s4700_s21  ;;  %v5470_v42 = vld [vmem:[#allocation2 + $0x62] sm:$0xff]  ;;  %v5472_v44 = vld [vmem:[#allocation2 + $0x6a] sm:$0xff]  ;;  %v5480_v46 = vld [vmem:[#allocation2 + $0x7a] sm:$0xff] }
  0xb1   :  { %v5482_v48 = vld [vmem:[#allocation2 + $0x82] sm:$0xff]  ;;  %v5490_v50 = vld [vmem:[#allocation2 + $0x92] sm:$0xff]  ;;  %v853_v52 = vld [vmem:[#allocation2 + $0x9a] sm:$0xff] }
  0xb2   :  { %v854_v54 = vld [vmem:[#allocation2 + $0xaa] sm:$0xff]  ;;  %v855_v56 = vld [vmem:[#allocation2 + $0xb2] sm:$0xff]  ;;  %v856_v58 = vld [vmem:[#allocation2 + $0xc2] sm:$0xff] }
  0xb3   :  { %669 = vrot.lane.b32.xlu1 %v498_v37, %s4700_s21  ;;  %v857_v60 = vld [vmem:[#allocation2 + $0xca] sm:$0xff]  ;;  %v858_v62 = vld [vmem:[#allocation2 + $0xda] sm:$0xff]  ;;  %v859_v0 = vld [vmem:[#allocation2 + $0xe2] sm:$0xff] }
  0xb4   :  { %671 = vrot.lane.b32.xlu0 %v499_v39, %s4700_s21  ;;  %v860_v3 = vld [vmem:[#allocation2 + $0xf2] sm:$0xff]  ;;  %v861_v5 = vld [vmem:[#allocation2 + $0xfa] sm:$0xff] }
  0xb7   :  { %673 = vrot.lane.b32.xlu1 %v500_v41, %s4700_s21 }
  0xb8   :  { %675 = vrot.lane.b32.xlu0 %v501_v43, %s4700_s21 }
  0xbb   :  { %677 = vrot.lane.b32.xlu1 %v502_v45, %s4700_s21 }
  0xbc   :  { %679 = vrot.lane.b32.xlu0 %v503_v47, %s4700_s21 }
  0xbf   :  { %681 = vrot.lane.b32.xlu1 %v504_v49, %s4700_s21  ;;  %v586_v9 = vpop.permute.xlu0 %585 }
  0xc0   :  { %683 = vrot.lane.b32.xlu0 %v505_v51, %s4700_s21  ;;  %777 = vst.msk [vmem:[#allocation3 + $0x8] sm:$0xff] %vm775_vm2, %v586_v9  ;;  %v863_v9 = vld [vmem:[#allocation2 + $0x112] sm:$0xff] }
  0xc3   :  { %685 = vrot.lane.b32.xlu1 %v506_v53, %s4700_s21 }
  0xc4   :  { %687 = vrot.lane.b32.xlu0 %v507_v55, %s4700_s21 }
  0xc7   :  { %689 = vrot.lane.b32.xlu1 %v508_v57, %s4700_s21 }
  0xc8   :  { %691 = vrot.lane.b32.xlu0 %v509_v59, %s4700_s21 }
  0xcb   :  { %693 = vrot.lane.b32.xlu1 %v510_v61, %s4700_s21 }
  0xcc   :  { %695 = vrot.lane.b32.xlu0 %v511_v63, %s4700_s21 }
  0xcf   :  { %697 = vrot.lane.b32.xlu1 %v512_v1, %s4700_s21 }
  0xd0   :  { %699 = vrot.lane.b32.xlu0 %v513_v4, %s4700_s21 }
  0xd1   :  { %v588_v7 = vpop.permute.xlu1 %587 }
  0xd2   :  { %778 = vst.msk [vmem:[#allocation3 + $0x10] sm:$0xff] %vm775_vm2, %v588_v7  ;;  %v592_v14 = vpop.permute.xlu0 %591  ;;  %v862_v7 = vld [vmem:[#allocation2 + $0x10a] sm:$0xff] }
  0xd3   :  { %701 = vrot.lane.b32.xlu1 %v514_v6, %s4700_s21  ;;  %780 = vst.msk [vmem:[#allocation3 + $0x20] sm:$0xff] %vm775_vm2, %v592_v14  ;;  %v865_v14 = vld [vmem:[#allocation2 + $0x12a] sm:$0xff] }
  0xd4   :  { %703 = vrot.lane.b32.xlu0 %v515_v8, %s4700_s21 }
  0xd5   :  { %v590_v12 = vpop.permute.xlu1 %589 }
  0xd6   :  { %779 = vst.msk [vmem:[#allocation3 + $0x18] sm:$0xff] %vm775_vm2, %v590_v12  ;;  %v596_v21 = vpop.permute.xlu0 %595  ;;  %v864_v12 = vld [vmem:[#allocation2 + $0x122] sm:$0xff] }
  0xd7   :  { %705 = vrot.lane.b32.xlu1 %v516_v11, %s4700_s21  ;;  %782 = vst.msk [vmem:[#allocation3 + $0x30] sm:$0xff] %vm775_vm2, %v596_v21  ;;  %v867_v21 = vld [vmem:[#allocation2 + $0x142] sm:$0xff] }
  0xd8   :  { %707 = vrot.lane.b32.xlu0 %v517_v13, %s4700_s21 }
  0xd9   :  { %v594_v17 = vpop.permute.xlu1 %593 }
  0xda   :  { %781 = vst.msk [vmem:[#allocation3 + $0x28] sm:$0xff] %vm775_vm2, %v594_v17  ;;  %v600_v31 = vpop.permute.xlu0 %599  ;;  %v866_v17 = vld [vmem:[#allocation2 + $0x13a] sm:$0xff] }
  0xdb   :  { %709 = vrot.lane.b32.xlu1 %v518_v16, %s4700_s21  ;;  %784 = vst.msk [vmem:[#allocation3 + $0x40] sm:$0xff] %vm775_vm2, %v600_v31 }
  0xdc   :  { %968 = vrot.lane.b32.xlu0 %v840_v20, %s4701_s25 }
  0xdd   :  { %v598_v25 = vpop.permute.xlu1 %597 }
  0xde   :  { %783 = vst.msk [vmem:[#allocation3 + $0x38] sm:$0xff] %vm775_vm2, %v598_v25  ;;  %v604_v35 = vpop.permute.xlu0 %603  ;;  %v868_v25 = vld [vmem:[#allocation2 + $0x152] sm:$0xff] }
  0xdf   :  { %970 = vrot.lane.b32.xlu1 %v841_v24, %s4701_s25  ;;  %786 = vst.msk [vmem:[#allocation3 + $0x50] sm:$0xff] %vm775_vm2, %v604_v35 }
  0xe0   :  { %972 = vrot.lane.b32.xlu0 %v5440_v30, %s4701_s25 }
  0xe1   :  { %v602_v33 = vpop.permute.xlu1 %601 }
  0xe2   :  { %785 = vst.msk [vmem:[#allocation3 + $0x48] sm:$0xff] %vm775_vm2, %v602_v33  ;;  %v608_v39 = vpop.permute.xlu0 %607  ;;  %v869_v33 = vld [vmem:[#allocation2 + $0x15a] sm:$0xff] }
  0xe3   :  { %974 = vrot.lane.b32.xlu1 %v5442_v32, %s4701_s25  ;;  %788 = vst.msk [vmem:[#allocation3 + $0x60] sm:$0xff] %vm775_vm2, %v608_v39 }
  0xe4   :  { %976 = vrot.lane.b32.xlu0 %v5450_v34, %s4701_s25 }
  0xe5   :  { %v606_v37 = vpop.permute.xlu1 %605 }
  0xe6   :  { %787 = vst.msk [vmem:[#allocation3 + $0x58] sm:$0xff] %vm775_vm2, %v606_v37  ;;  %v612_v43 = vpop.permute.xlu0 %611  ;;  %v870_v37 = vld [vmem:[#allocation2 + $0x16a] sm:$0xff] }
  0xe7   :  { %978 = vrot.lane.b32.xlu1 %v5452_v36, %s4701_s25  ;;  %790 = vst.msk [vmem:[#allocation3 + $0x70] sm:$0xff] %vm775_vm2, %v612_v43 }
  0xe8   :  { %980 = vrot.lane.b32.xlu0 %v5460_v38, %s4701_s25 }
  0xe9   :  { %v610_v41 = vpop.permute.xlu1 %609 }
  0xea   :  { %789 = vst.msk [vmem:[#allocation3 + $0x68] sm:$0xff] %vm775_vm2, %v610_v41  ;;  %v616_v47 = vpop.permute.xlu0 %615  ;;  %v871_v41 = vld [vmem:[#allocation2 + $0x172] sm:$0xff] }
  0xeb   :  { %982 = vrot.lane.b32.xlu1 %v5462_v40, %s4701_s25  ;;  %792 = vst.msk [vmem:[#allocation3 + $0x80] sm:$0xff] %vm775_vm2, %v616_v47 }
  0xec   :  { %984 = vrot.lane.b32.xlu0 %v5470_v42, %s4701_s25 }
  0xed   :  { %v614_v45 = vpop.permute.xlu1 %613 }
  0xee   :  { %791 = vst.msk [vmem:[#allocation3 + $0x78] sm:$0xff] %vm775_vm2, %v614_v45  ;;  %v620_v51 = vpop.permute.xlu0 %619  ;;  %v872_v45 = vld [vmem:[#allocation2 + $0x1b2] sm:$0xff] }
  0xef   :  { %986 = vrot.lane.b32.xlu1 %v5472_v44, %s4701_s25  ;;  %794 = vst.msk [vmem:[#allocation3 + $0x90] sm:$0xff] %vm775_vm2, %v620_v51 }
  0xf0   :  { %988 = vrot.lane.b32.xlu0 %v5480_v46, %s4701_s25 }
  0xf1   :  { %v618_v49 = vpop.permute.xlu1 %617 }
  0xf2   :  { %793 = vst.msk [vmem:[#allocation3 + $0x88] sm:$0xff] %vm775_vm2, %v618_v49  ;;  %v624_v55 = vpop.permute.xlu0 %623  ;;  %v873_v49 = vld [vmem:[#allocation2 + $0x1ba] sm:$0xff] }
  0xf3   :  { %990 = vrot.lane.b32.xlu1 %v5482_v48, %s4701_s25  ;;  %796 = vst.msk [vmem:[#allocation3 + $0xa0] sm:$0xff] %vm775_vm2, %v624_v55 }
  0xf4   :  { %992 = vrot.lane.b32.xlu0 %v5490_v50, %s4701_s25 }
  0xf5   :  { %v622_v53 = vpop.permute.xlu1 %621 }
  0xf6   :  { %795 = vst.msk [vmem:[#allocation3 + $0x98] sm:$0xff] %vm775_vm2, %v622_v53  ;;  %v628_v59 = vpop.permute.xlu0 %627 }
  0xf7   :  { %994 = vrot.lane.b32.xlu1 %v853_v52, %s4701_s25  ;;  %798 = vst.msk [vmem:[#allocation3 + $0xb0] sm:$0xff] %vm775_vm2, %v628_v59  ;;  %v874_v52 = vld [vmem:[#allocation2 + $0x1ca] sm:$0xff] }
  0xf8   :  { %996 = vrot.lane.b32.xlu0 %v854_v54, %s4701_s25  ;;  %v875_v54 = vld [vmem:[#allocation2 + $0x1d2] sm:$0xff] }
  0xf9   :  { %v626_v57 = vpop.permute.xlu1 %625 }
  0xfa   :  { %797 = vst.msk [vmem:[#allocation3 + $0xa8] sm:$0xff] %vm775_vm2, %v626_v57  ;;  %v632_v63 = vpop.permute.xlu0 %631 }
  0xfb   :  { %998 = vrot.lane.b32.xlu1 %v855_v56, %s4701_s25  ;;  %800 = vst.msk [vmem:[#allocation3 + $0xc0] sm:$0xff] %vm775_vm2, %v632_v63  ;;  %v876_v56 = vld [vmem:[#allocation2 + $0x1e2] sm:$0xff] }
  0xfc   :  { %1000 = vrot.lane.b32.xlu0 %v856_v58, %s4701_s25  ;;  %v877_v58 = vld [vmem:[#allocation2 + $0x1ea] sm:$0xff] }
  0xfd   :  { %v630_v61 = vpop.permute.xlu1 %629 }
  0xfe   :  { %799 = vst.msk [vmem:[#allocation3 + $0xb8] sm:$0xff] %vm775_vm2, %v630_v61  ;;  %v636_v4 = vpop.permute.xlu0 %635 }
  0xff   :  { %1002 = vrot.lane.b32.xlu1 %v857_v60, %s4701_s25  ;;  %802 = vst.msk [vmem:[#allocation3 + $0xd0] sm:$0xff] %vm775_vm2, %v636_v4  ;;  %v878_v60 = vld [vmem:[#allocation2 + $0x1fa] sm:$0xff] }
 0x100   :  { %1004 = vrot.lane.b32.xlu0 %v858_v62, %s4701_s25  ;;  %v879_v62 = vld [vmem:[#allocation2 + $0x202] sm:$0xff] }
 0x101   :  { %v634_v1 = vpop.permute.xlu1 %633 }
 0x102   :  { %801 = vst.msk [vmem:[#allocation3 + $0xc8] sm:$0xff] %vm775_vm2, %v634_v1 }
 0x103   :  { %1006 = vrot.lane.b32.xlu1 %v859_v0, %s4701_s25  ;;  %v880_v0 = vld [vmem:[#allocation2 + $0x212] sm:$0xff] }
 0x104   :  { %1008 = vrot.lane.b32.xlu0 %v860_v3, %s4701_s25  ;;  %v881_v3 = vld [vmem:[#allocation2 + $0x21a] sm:$0xff] }
 0x105   :  { %v638_v6 = vpop.permute.xlu1 %637 }
 0x106   :  { %803 = vst.msk [vmem:[#allocation3 + $0xd8] sm:$0xff] %vm775_vm2, %v638_v6  ;;  %v640_v8 = vpop.permute.xlu0 %639 }
 0x107   :  { %1010 = vrot.lane.b32.xlu1 %v861_v5, %s4701_s25  ;;  %804 = vst.msk [vmem:[#allocation3 + $0xe0] sm:$0xff] %vm775_vm2, %v640_v8  ;;  %v882_v5 = vld [vmem:[#allocation2 + $0x22a] sm:$0xff] }
 0x108   :  { %1012 = vrot.lane.b32.xlu0 %v862_v7, %s4701_s25  ;;  %v883_v7 = vld [vmem:[#allocation2 + $0x232] sm:$0xff] }
 0x109   :  { %v642_v11 = vpop.permute.xlu1 %641 }
 0x10a   :  { %805 = vst.msk [vmem:[#allocation3 + $0xe8] sm:$0xff] %vm775_vm2, %v642_v11  ;;  %v644_v13 = vpop.permute.xlu0 %643 }
 0x10b   :  { %1014 = vrot.lane.b32.xlu1 %v863_v9, %s4701_s25  ;;  %806 = vst.msk [vmem:[#allocation3 + $0xf0] sm:$0xff] %vm775_vm2, %v644_v13  ;;  %v884_v9 = vld [vmem:[#allocation2 + $0x242] sm:$0xff] }
 0x10c   :  { %1016 = vrot.lane.b32.xlu0 %v864_v12, %s4701_s25  ;;  %v885_v12 = vld [vmem:[#allocation2 + $0x24a] sm:$0xff] }
 0x10d   :  { %v646_v16 = vpop.permute.xlu1 %645 }
 0x10e   :  { %807 = vst.msk [vmem:[#allocation3 + $0xf8] sm:$0xff] %vm775_vm2, %v646_v16  ;;  %v648_v20 = vpop.permute.xlu0 %647 }
 0x10f   :  { %1018 = vrot.lane.b32.xlu1 %v865_v14, %s4701_s25  ;;  %808 = vst.msk [vmem:[#allocation3 + $0x100] sm:$0xff] %vm775_vm2, %v648_v20  ;;  %v886_v14 = vld [vmem:[#allocation2 + $0x25a] sm:$0xff] }
 0x110   :  { %1020 = vrot.lane.b32.xlu0 %v866_v17, %s4701_s25  ;;  %v887_v17 = vld [vmem:[#allocation2 + $0x262] sm:$0xff] }
 0x111   :  { %v650_v24 = vpop.permute.xlu1 %649 }
 0x112   :  { %809 = vst.msk [vmem:[#allocation3 + $0x108] sm:$0xff] %vm775_vm2, %v650_v24  ;;  %v652_v31 = vpop.permute.xlu0 %651 }
 0x113   :  { %1022 = vrot.lane.b32.xlu1 %v867_v21, %s4701_s25  ;;  %810 = vst.msk [vmem:[#allocation3 + $0x110] sm:$0xff] %vm775_vm2, %v652_v31  ;;  %v888_v21 = vld [vmem:[#allocation2 + $0x272] sm:$0xff] }
 0x114   :  { %1024 = vrot.lane.b32.xlu0 %v868_v25, %s4701_s25  ;;  %v889_v25 = vld [vmem:[#allocation2 + $0x27a] sm:$0xff] }
 0x115   :  { %v654_v35 = vpop.permute.xlu1 %653 }
 0x116   :  { %811 = vst.msk [vmem:[#allocation3 + $0x118] sm:$0xff] %vm775_vm2, %v654_v35  ;;  %v656_v39 = vpop.permute.xlu0 %655 }
 0x117   :  { %1026 = vrot.lane.b32.xlu1 %v869_v33, %s4701_s25  ;;  %812 = vst.msk [vmem:[#allocation3 + $0x120] sm:$0xff] %vm775_vm2, %v656_v39  ;;  %v890_v33 = vld [vmem:[#allocation2 + $0x28a] sm:$0xff] }
 0x118   :  { %1028 = vrot.lane.b32.xlu0 %v870_v37, %s4701_s25  ;;  %v891_v37 = vld [vmem:[#allocation2 + $0x292] sm:$0xff] }
 0x119   :  { %v658_v43 = vpop.permute.xlu1 %657 }
 0x11a   :  { %813 = vst.msk [vmem:[#allocation3 + $0x128] sm:$0xff] %vm775_vm2, %v658_v43  ;;  %v660_v47 = vpop.permute.xlu0 %659 }
 0x11b   :  { %1030 = vrot.lane.b32.xlu1 %v871_v41, %s4701_s25  ;;  %814 = vst.msk [vmem:[#allocation3 + $0x130] sm:$0xff] %vm775_vm2, %v660_v47  ;;  %v892_v41 = vld [vmem:[#allocation2 + $0x2a2] sm:$0xff]  ;;  %v3615_v47 = vld [vmem:[%s6739_s1 + $0x78] sm:$0xff] }
 0x11c   :  { %1032 = vrot.lane.b32.xlu0 %v872_v45, %s4701_s25  ;;  %v893_v45 = vld [vmem:[#allocation2 + $0x2aa] sm:$0xff]  ;;  %4493 = vmatprep.subr.mxu0 %v3615_v47 }
 0x11d   :  { %v662_v51 = vpop.permute.xlu1 %661  ;;  %4632 = vmatprep.subr.mxu1 %v3615_v47  ;;  %4494 = vmatpush3.msra.mxu0 %v3615_v47 }
 0x11e   :  { %815 = vst.msk [vmem:[#allocation3 + $0x138] sm:$0xff] %vm775_vm2, %v662_v51  ;;  %v664_v53 = vpop.permute.xlu0 %663  ;;  %v3614_v51 = vld [vmem:[%s6739_s1 + $0x70] sm:$0xff]  ;;  %4648 = vmatpush3.msra.mxu1 %v3615_v47 }
 0x11f   :  { %1034 = vrot.lane.b32.xlu1 %v873_v49, %s4701_s25  ;;  %816 = vst.msk [vmem:[#allocation3 + $0x140] sm:$0xff] %vm775_vm2, %v664_v53  ;;  %4495 = vmatprep.subr.mxu0 %v3614_v51  ;;  %v3613_v53 = vld [vmem:[%s6739_s1 + $0x68] sm:$0xff] }
 0x120   :  { %1036 = vrot.lane.b32.xlu0 %v874_v52, %s4701_s25  ;;  %4496 = vmatpush3.msra.mxu0 %v3614_v51 }
 0x121   :  { %v666_v55 = vpop.permute.xlu1 %665  ;;  %4497 = vmatprep.subr.mxu0 %v3613_v53  ;;  %4633 = vmatprep.subr.mxu1 %v3614_v51 }
 0x122   :  { %817 = vst.msk [vmem:[#allocation3 + $0x148] sm:$0xff] %vm775_vm2, %v666_v55  ;;  %v668_v57 = vpop.permute.xlu0 %667  ;;  %4498 = vmatpush3.msra.mxu0 %v3613_v53  ;;  %v3612_v55 = vld [vmem:[%s6739_s1 + $0x60] sm:$0xff]  ;;  %4649 = vmatpush3.msra.mxu1 %v3614_v51 }
 0x123   :  { %1038 = vrot.lane.b32.xlu1 %v875_v54, %s4701_s25  ;;  %818 = vst.msk [vmem:[#allocation3 + $0x150] sm:$0xff] %vm775_vm2, %v668_v57  ;;  %4499 = vmatprep.subr.mxu0 %v3612_v55 }
 0x124   :  { %1040 = vrot.lane.b32.xlu0 %v876_v56, %s4701_s25  ;;  %v1610_v56 = vld [vmem:[#allocation2 + $0x19] sm:$0xff]  ;;  %4500 = vmatpush3.msra.mxu0 %v3612_v55 }
 0x125   :  { %v670_v59 = vpop.permute.xlu1 %669  ;;  %4634 = vmatprep.subr.mxu1 %v3613_v53 }
 0x126   :  { %819 = vst.msk [vmem:[#allocation3 + $0x158] sm:$0xff] %vm775_vm2, %v670_v59  ;;  %v672_v61 = vpop.permute.xlu0 %671  ;;  %v3611_v59 = vld [vmem:[%s6739_s1 + $0x58] sm:$0xff]  ;;  %4650 = vmatpush3.msra.mxu1 %v3613_v53 }
 0x127   :  { %1042 = vrot.lane.b32.xlu1 %v877_v58, %s4701_s25  ;;  %820 = vst.msk [vmem:[#allocation3 + $0x160] sm:$0xff] %vm775_vm2, %v672_v61  ;;  %v1611_v58 = vld [vmem:[#allocation2 + $0x21] sm:$0xff]  ;;  %4501 = vmatprep.subr.mxu0 %v3611_v59 }
 0x128   :  { %1044 = vrot.lane.b32.xlu0 %v878_v60, %s4701_s25  ;;  %4502 = vmatpush3.msra.mxu0 %v3611_v59  ;;  %v3609_v61 = vld [vmem:[%s6739_s1 + $0x48] sm:$0xff] }
 0x129   :  { %v674_v63 = vpop.permute.xlu1 %673  ;;  %4635 = vmatprep.subr.mxu1 %v3612_v55 }
 0x12a   :  { %821 = vst.msk [vmem:[#allocation3 + $0x168] sm:$0xff] %vm775_vm2, %v674_v63  ;;  %v676_v1 = vpop.permute.xlu0 %675  ;;  %v5615_v63 = vld [vmem:[%s6739_s1 + $0x40] sm:$0xff]  ;;  %4651 = vmatpush3.msra.mxu1 %v3612_v55 }
 0x12b   :  { %1046 = vrot.lane.b32.xlu1 %v879_v62, %s4701_s25  ;;  %822 = vst.msk [vmem:[#allocation3 + $0x170] sm:$0xff] %vm775_vm2, %v676_v1  ;;  %v5624_v1 = vld [vmem:[%s6739_s1 + $0x38] sm:$0xff]  ;;  %4636 = vmatprep.subr.mxu1 %v3611_v59 }
 0x12c   :  { %1048 = vrot.lane.b32.xlu0 %v880_v0, %s4701_s25  ;;  %4652 = vmatpush3.msra.mxu1 %v3611_v59 }
 0x12d   :  { %v678_v4 = vpop.permute.xlu1 %677 }
 0x12e   :  { %823 = vst.msk [vmem:[#allocation3 + $0x178] sm:$0xff] %vm775_vm2, %v678_v4  ;;  %v680_v6 = vpop.permute.xlu0 %679  ;;  %v2766_v4 = vld [vmem:[#allocation2 + $0x31] sm:$0xff] }
 0x12f   :  { %1050 = vrot.lane.b32.xlu1 %v881_v3, %s4701_s25  ;;  %824 = vst.msk [vmem:[#allocation3 + $0x180] sm:$0xff] %vm775_vm2, %v680_v6 }
 0x130   :  { %1052 = vrot.lane.b32.xlu0 %v882_v5, %s4701_s25  ;;  %v3605_v5 = vld [vmem:[%s6739_s1 + $0x28] sm:$0xff] }
 0x131   :  { %v682_v8 = vpop.permute.xlu1 %681 }
 0x132   :  { %825 = vst.msk [vmem:[#allocation3 + $0x188] sm:$0xff] %vm775_vm2, %v682_v8  ;;  %v684_v11 = vpop.permute.xlu0 %683  ;;  %v3603_v8 = vld [vmem:[%s6739_s1 + $0x18] sm:$0xff] }
 0x133   :  { %1054 = vrot.lane.b32.xlu1 %v883_v7, %s4701_s25  ;;  %826 = vst.msk [vmem:[#allocation3 + $0x190] sm:$0xff] %vm775_vm2, %v684_v11  ;;  %v3602_v11 = vld [vmem:[%s6739_s1 + $0x10] sm:$0xff] }
 0x134   :  { %1056 = vrot.lane.b32.xlu0 %v884_v9, %s4701_s25 }
 0x135   :  { %v686_v13 = vpop.permute.xlu1 %685 }
 0x136   :  { %827 = vst.msk [vmem:[#allocation3 + $0x198] sm:$0xff] %vm775_vm2, %v686_v13  ;;  %v688_v16 = vpop.permute.xlu0 %687 }
 0x137   :  { %1058 = vrot.lane.b32.xlu1 %v885_v12, %s4701_s25  ;;  %828 = vst.msk [vmem:[#allocation3 + $0x1a0] sm:$0xff] %vm775_vm2, %v688_v16  ;;  %v2767_v12 = vld [vmem:[#allocation2 + $0x39] sm:$0xff] }
 0x138   :  { %1060 = vrot.lane.b32.xlu0 %v886_v14, %s4701_s25  ;;  %v3601_v14 = vld [vmem:[%s6739_s1 + $0x8] sm:$0xff] }
 0x139   :  { %v690_v20 = vpop.permute.xlu1 %689 }
 0x13a   :  { %829 = vst.msk [vmem:[#allocation3 + $0x1a8] sm:$0xff] %vm775_vm2, %v690_v20  ;;  %v692_v24 = vpop.permute.xlu0 %691 }
 0x13b   :  { %1062 = vrot.lane.b32.xlu1 %v887_v17, %s4701_s25  ;;  %830 = vst.msk [vmem:[#allocation3 + $0x1b0] sm:$0xff] %vm775_vm2, %v692_v24 }
 0x13c   :  { %1064 = vrot.lane.b32.xlu0 %v888_v21, %s4701_s25 }
 0x13d   :  { %v694_v31 = vpop.permute.xlu1 %693 }
 0x13e   :  { %831 = vst.msk [vmem:[#allocation3 + $0x1b8] sm:$0xff] %vm775_vm2, %v694_v31  ;;  %v696_v35 = vpop.permute.xlu0 %695 }
 0x13f   :  { %1066 = vrot.lane.b32.xlu1 %v889_v25, %s4701_s25  ;;  %832 = vst.msk [vmem:[#allocation3 + $0x1c0] sm:$0xff] %vm775_vm2, %v696_v35 }
 0x140   :  { %1068 = vrot.lane.b32.xlu0 %v890_v33, %s4701_s25  ;;  %v2768_v33 = vld [vmem:[#allocation2 + $0x49] sm:$0xff] }
 0x141   :  { %v698_v39 = vpop.permute.xlu1 %697 }
 0x142   :  { %833 = vst.msk [vmem:[#allocation3 + $0x1c8] sm:$0xff] %vm775_vm2, %v698_v39  ;;  %v700_v43 = vpop.permute.xlu0 %699 }
 0x143   :  { %1070 = vrot.lane.b32.xlu1 %v891_v37, %s4701_s25  ;;  %834 = vst.msk [vmem:[#allocation3 + $0x1d0] sm:$0xff] %vm775_vm2, %v700_v43  ;;  %v2769_v37 = vld [vmem:[#allocation2 + $0x51] sm:$0xff] }
 0x144   :  { %1072 = vrot.lane.b32.xlu0 %v892_v41, %s4701_s25 }
 0x145   :  { %v702_v49 = vpop.permute.xlu1 %701 }
 0x146   :  { %835 = vst.msk [vmem:[#allocation3 + $0x1d8] sm:$0xff] %vm775_vm2, %v702_v49  ;;  %v704_v52 = vpop.permute.xlu0 %703 }
 0x147   :  { %1074 = vrot.lane.b32.xlu1 %v893_v45, %s4701_s25  ;;  %836 = vst.msk [vmem:[#allocation3 + $0x1e0] sm:$0xff] %vm775_vm2, %v704_v52  ;;  %v2770_v52 = vld [vmem:[#allocation2 + $0x61] sm:$0xff] }
 0x148   :  { %1353 = vrot.lane.b32.xlu0 %v5263_v10, %s4702_s7 }
 0x149   :  { %v706_v54 = vpop.permute.xlu1 %705 }
 0x14a   :  { %837 = vst.msk [vmem:[#allocation3 + $0x1e8] sm:$0xff] %vm775_vm2, %v706_v54  ;;  %v708_v57 = vpop.permute.xlu0 %707 }
 0x14b   :  { %1355 = vrot.lane.b32.xlu1 %v5276_v15, %s4702_s7  ;;  %838 = vst.msk [vmem:[#allocation3 + $0x1f0] sm:$0xff] %vm775_vm2, %v708_v57  ;;  %v3610_v15 = vld [vmem:[%s6739_s1 + $0x50] sm:$0xff] }
 0x14c   :  { %1738 = vrot.lane.b32.xlu0 %v1610_v56, %s4703_s12  ;;  %4503 = vmatprep.subr.mxu0 %v3610_v15 }
 0x14d   :  { %v710_v10 = vpop.permute.xlu1 %709  ;;  %4504 = vmatpush3.msra.mxu0 %v3610_v15  ;;  %4637 = vmatprep.subr.mxu1 %v3610_v15 }
 0x14e   :  { %839 = vst.msk [vmem:[#allocation3 + $0x1f8] sm:$0xff] %vm775_vm2, %v710_v10  ;;  %v969_v60 = vpop.permute.xlu0 %968  ;;  %4505 = vmatprep.subr.mxu0 %v3609_v61  ;;  %4653 = vmatpush3.msra.mxu1 %v3610_v15 }
 0x14f   :  { %1740 = vrot.lane.b32.xlu1 %v1611_v58, %s4703_s12  ;;  %1161 = vst.msk [vmem:[#allocation3] sm:$0xff] %vm1160_vm3, %v969_v60  ;;  %4506 = vmatpush3.msra.mxu0 %v3609_v61  ;;  %v2772_v60 = vld [vmem:[#allocation2 + $0x79] sm:$0xff] }
 0x150   :  { %2123 = vrot.lane.b32.xlu0 %v5440_v30, %s4704_s17  ;;  %4507 = vmatprep.subr.mxu0 %v5615_v63 }
 0x151   :  { %v971_v62 = vpop.permute.xlu1 %970  ;;  %4508 = vmatpush3.msra.mxu0 %v5615_v63  ;;  %4638 = vmatprep.subr.mxu1 %v3609_v61 }
 0x152   :  { %1162 = vst.msk [vmem:[#allocation3 + $0x8] sm:$0xff] %vm1160_vm3, %v971_v62  ;;  %v973_v0 = vpop.permute.xlu0 %972  ;;  %4509 = vmatprep.subr.mxu0 %v5624_v1  ;;  %4654 = vmatpush3.msra.mxu1 %v3609_v61 }
 0x153   :  { %2125 = vrot.lane.b32.xlu1 %v5442_v32, %s4704_s17  ;;  %1163 = vst.msk [vmem:[#allocation3 + $0x10] sm:$0xff] %vm1160_vm3, %v973_v0  ;;  %4510 = vmatpush3.msra.mxu0 %v5624_v1  ;;  %v3606_v32 = vld [vmem:[%s6739_s1 + $0x30] sm:$0xff] }
 0x154   :  { %2509 = vrot.lane.b32.xlu0 %v5289_v18, %s4705_s23  ;;  %4511 = vmatprep.subr.mxu0 %v3606_v32 }
 0x155   :  { %v975_v30 = vpop.permute.xlu1 %974  ;;  %4512 = vmatpush3.msra.mxu0 %v3606_v32  ;;  %4639 = vmatprep.subr.mxu1 %v5615_v63 }
 0x156   :  { %1164 = vst.msk [vmem:[#allocation3 + $0x18] sm:$0xff] %vm1160_vm3, %v975_v30  ;;  %v977_v3 = vpop.permute.xlu0 %976  ;;  %4513 = vmatprep.subr.mxu0 %v3605_v5  ;;  %4655 = vmatpush3.msra.mxu1 %v5615_v63 }
 0x157   :  { %1357 = vrot.lane.b32.xlu1 %v5289_v18, %s4702_s7  ;;  %1165 = vst.msk [vmem:[#allocation3 + $0x20] sm:$0xff] %vm1160_vm3, %v977_v3  ;;  %4514 = vmatpush3.msra.mxu0 %v3605_v5  ;;  %v3604_v18 = vld [vmem:[%s6739_s1 + $0x20] sm:$0xff]  ;;  %v2389_v3 = vld [vmem:[#allocation2 + $0x90] sm:$0xff] }
 0x158   :  { %2511 = vrot.lane.b32.xlu0 %v5291_v19, %s4705_s23  ;;  %4515 = vmatprep.subr.mxu0 %v3604_v18 }
 0x159   :  { %v979_v6 = vpop.permute.xlu1 %978  ;;  %4516 = vmatpush3.msra.mxu0 %v3604_v18  ;;  %4640 = vmatprep.subr.mxu1 %v5624_v1 }
 0x15a   :  { %1166 = vst.msk [vmem:[#allocation3 + $0x28] sm:$0xff] %vm1160_vm3, %v979_v6  ;;  %v981_v7 = vpop.permute.xlu0 %980  ;;  %4517 = vmatprep.subr.mxu0 %v3603_v8  ;;  %4656 = vmatpush3.msra.mxu1 %v5624_v1 }
 0x15b   :  { %2894 = vrot.lane.b32.xlu1 %v2766_v4, %s4706_s30  ;;  %1167 = vst.msk [vmem:[#allocation3 + $0x30] sm:$0xff] %vm1160_vm3, %v981_v7  ;;  %4518 = vmatpush3.msra.mxu0 %v3603_v8 }
 0x15c   :  { %1359 = vrot.lane.b32.xlu0 %v5291_v19, %s4702_s7  ;;  %4519 = vmatprep.subr.mxu0 %v3602_v11  ;;  %v3600_v19 = vld [vmem:[%s6739_s1] sm:$0xff] }
 0x15d   :  { %v983_v9 = vpop.permute.xlu1 %982  ;;  %4520 = vmatpush3.msra.mxu0 %v3602_v11  ;;  %4641 = vmatprep.subr.mxu1 %v3606_v32 }
 0x15e   :  { %1168 = vst.msk [vmem:[#allocation3 + $0x38] sm:$0xff] %vm1160_vm3, %v983_v9  ;;  %v985_v13 = vpop.permute.xlu0 %984  ;;  %4521 = vmatprep.subr.mxu0 %v3601_v14  ;;  %4657 = vmatpush3.msra.mxu1 %v3606_v32  ;;  %v2775_v9 = vld [vmem:[#allocation2 + $0x99] sm:$0xff] }
 0x15f   :  { %1742 = vrot.lane.b32.xlu1 %v2766_v4, %s4703_s12  ;;  %1169 = vst.msk [vmem:[#allocation3 + $0x40] sm:$0xff] %vm1160_vm3, %v985_v13  ;;  %4522 = vmatpush3.msra.mxu0 %v3601_v14 }
 0x160   :  { %2896 = vrot.lane.b32.xlu0 %v2767_v12, %s4706_s30  ;;  %4523 = vmatprep.subr.mxu0 %v3600_v19 }
 0x161   :  { %v987_v16 = vpop.permute.xlu1 %986  ;;  %4524 = vmatpush3.msra.mxu0 %v3600_v19  ;;  %4642 = vmatprep.subr.mxu1 %v3605_v5 }
 0x162   :  { %1170 = vst.msk [vmem:[#allocation3 + $0x48] sm:$0xff] %vm1160_vm3, %v987_v16  ;;  %v989_v17 = vpop.permute.xlu0 %988  ;;  %4658 = vmatpush3.msra.mxu1 %v3605_v5 }
 0x163   :  { %3279 = vrot.lane.b32.xlu1 %v5450_v34, %s4707_s18  ;;  %1171 = vst.msk [vmem:[#allocation3 + $0x50] sm:$0xff] %vm1160_vm3, %v989_v17  ;;  %4643 = vmatprep.subr.mxu1 %v3604_v18 }
 0x164   :  { %1744 = vrot.lane.b32.xlu0 %v2767_v12, %s4703_s12  ;;  %4659 = vmatpush3.msra.mxu1 %v3604_v18  ;;  %v2774_v18 = vld [vmem:[#allocation2 + $0x91] sm:$0xff] }
 0x165   :  { %v991_v20 = vpop.permute.xlu1 %990  ;;  %4644 = vmatprep.subr.mxu1 %v3603_v8 }
 0x166   :  { %1172 = vst.msk [vmem:[#allocation3 + $0x58] sm:$0xff] %vm1160_vm3, %v991_v20  ;;  %v993_v21 = vpop.permute.xlu0 %992  ;;  %4660 = vmatpush3.msra.mxu1 %v3603_v8 }
 0x167   :  { %2127 = vrot.lane.b32.xlu1 %v5450_v34, %s4704_s17  ;;  %1173 = vst.msk [vmem:[#allocation3 + $0x60] sm:$0xff] %vm1160_vm3, %v993_v21  ;;  %4645 = vmatprep.subr.mxu1 %v3602_v11 }
 0x168   :  { %3281 = vrot.lane.b32.xlu0 %v5452_v36, %s4707_s18  ;;  %4661 = vmatpush3.msra.mxu1 %v3602_v11 }
 0x169   :  { %v995_v24 = vpop.permute.xlu1 %994  ;;  %4646 = vmatprep.subr.mxu1 %v3601_v14 }
 0x16a   :  { %1174 = vst.msk [vmem:[#allocation3 + $0x68] sm:$0xff] %vm1160_vm3, %v995_v24  ;;  %v997_v25 = vpop.permute.xlu0 %996  ;;  %4662 = vmatpush3.msra.mxu1 %v3601_v14  ;;  %v2005_v14 = vld [vmem:[#allocation2 + $0x92] sm:$0xff] }
 0x16b   :  { %2129 = vrot.lane.b32.xlu1 %v5452_v36, %s4704_s17  ;;  %1175 = vst.msk [vmem:[#allocation3 + $0x70] sm:$0xff] %vm1160_vm3, %v997_v25  ;;  %4647 = vmatprep.subr.mxu1 %v3600_v19  ;;  %v2392_v25 = vld [vmem:[#allocation2 + $0xb0] sm:$0xff] }
 0x16c   :  { %2513 = vrot.lane.b32.xlu0 %v5304_v22, %s4705_s23  ;;  %4663 = vmatpush3.msra.mxu1 %v3600_v19  ;;  %v3160_v19 = vld [vmem:[#allocation2 + $0x9a] sm:$0xff] }
 0x16d   :  { %v999_v34 = vpop.permute.xlu1 %998 }
 0x16e   :  { %1176 = vst.msk [vmem:[#allocation3 + $0x78] sm:$0xff] %vm1160_vm3, %v999_v34  ;;  %v1001_v31 = vpop.permute.xlu0 %1000 }
 0x16f   :  { %1361 = vrot.lane.b32.xlu1 %v5304_v22, %s4702_s7  ;;  %1177 = vst.msk [vmem:[#allocation3 + $0x80] sm:$0xff] %vm1160_vm3, %v1001_v31  ;;  %v2776_v31 = vld [vmem:[#allocation2 + $0xa9] sm:$0xff] }
 0x170   :  { %2515 = vrot.lane.b32.xlu0 %v5310_v23, %s4705_s23 }
 0x171   :  { %v1003_v36 = vpop.permute.xlu1 %1002 }
 0x172   :  { %1178 = vst.msk [vmem:[#allocation3 + $0x88] sm:$0xff] %vm1160_vm3, %v1003_v36  ;;  %v1005_v35 = vpop.permute.xlu0 %1004 }
 0x173   :  { %2898 = vrot.lane.b32.xlu1 %v2768_v33, %s4706_s30  ;;  %1179 = vst.msk [vmem:[#allocation3 + $0x90] sm:$0xff] %vm1160_vm3, %v1005_v35 }
 0x174   :  { %1363 = vrot.lane.b32.xlu0 %v5310_v23, %s4702_s7 }
 0x175   :  { %v1007_v22 = vpop.permute.xlu1 %1006 }
 0x176   :  { %1180 = vst.msk [vmem:[#allocation3 + $0x98] sm:$0xff] %vm1160_vm3, %v1007_v22  ;;  %v1009_v39 = vpop.permute.xlu0 %1008  ;;  %v2777_v22 = vld [vmem:[#allocation2 + $0xb1] sm:$0xff] }
 0x177   :  { %1746 = vrot.lane.b32.xlu1 %v2768_v33, %s4703_s12  ;;  %1181 = vst.msk [vmem:[#allocation3 + $0xa0] sm:$0xff] %vm1160_vm3, %v1009_v39  ;;  %v3161_v39 = vld [vmem:[#allocation2 + $0xaa] sm:$0xff] }
 0x178   :  { %2900 = vrot.lane.b32.xlu0 %v2769_v37, %s4706_s30 }
 0x179   :  { %v1011_v41 = vpop.permute.xlu1 %1010 }
 0x17a   :  { %1182 = vst.msk [vmem:[#allocation3 + $0xa8] sm:$0xff] %vm1160_vm3, %v1011_v41  ;;  %v1013_v43 = vpop.permute.xlu0 %1012 }
 0x17b   :  { %3283 = vrot.lane.b32.xlu1 %v5460_v38, %s4707_s18  ;;  %1183 = vst.msk [vmem:[#allocation3 + $0xb0] sm:$0xff] %vm1160_vm3, %v1013_v43 }
 0x17c   :  { %1748 = vrot.lane.b32.xlu0 %v2769_v37, %s4703_s12 }
 0x17d   :  { %v1015_v45 = vpop.permute.xlu1 %1014 }
 0x17e   :  { %1184 = vst.msk [vmem:[#allocation3 + $0xb8] sm:$0xff] %vm1160_vm3, %v1015_v45  ;;  %v1017_v23 = vpop.permute.xlu0 %1016 }
 0x17f   :  { %2131 = vrot.lane.b32.xlu1 %v5460_v38, %s4704_s17  ;;  %1185 = vst.msk [vmem:[#allocation3 + $0xc0] sm:$0xff] %vm1160_vm3, %v1017_v23 }
 0x180   :  { %3285 = vrot.lane.b32.xlu0 %v5462_v40, %s4707_s18 }
 0x181   :  { %v1019_v47 = vpop.permute.xlu1 %1018 }
 0x182   :  { %1186 = vst.msk [vmem:[#allocation3 + $0xc8] sm:$0xff] %vm1160_vm3, %v1019_v47  ;;  %v1021_v49 = vpop.permute.xlu0 %1020  ;;  %v3162_v47 = vld [vmem:[#allocation2 + $0xb2] sm:$0xff] }
 0x183   :  { %2133 = vrot.lane.b32.xlu1 %v5462_v40, %s4704_s17  ;;  %1187 = vst.msk [vmem:[#allocation3 + $0xd0] sm:$0xff] %vm1160_vm3, %v1021_v49 }
 0x184   :  { %2517 = vrot.lane.b32.xlu0 %v5316_v26, %s4705_s23 }
 0x185   :  { %v1023_v51 = vpop.permute.xlu1 %1022 }
 0x186   :  { %1188 = vst.msk [vmem:[#allocation3 + $0xd8] sm:$0xff] %vm1160_vm3, %v1023_v51  ;;  %v1025_v38 = vpop.permute.xlu0 %1024 }
 0x187   :  { %1365 = vrot.lane.b32.xlu1 %v5316_v26, %s4702_s7  ;;  %1189 = vst.msk [vmem:[#allocation3 + $0xe0] sm:$0xff] %vm1160_vm3, %v1025_v38  ;;  %v2771_v26 = vld [vmem:[#allocation2 + $0x69] sm:$0xff]  ;;  %v2393_v38 = vld [vmem:[#allocation2 + $0xc0] sm:$0xff] }
 0x188   :  { %2519 = vrot.lane.b32.xlu0 %v5318_v27, %s4705_s23 }
 0x189   :  { %v1027_v53 = vpop.permute.xlu1 %1026 }
 0x18a   :  { %1190 = vst.msk [vmem:[#allocation3 + $0xe8] sm:$0xff] %vm1160_vm3, %v1027_v53  ;;  %v1029_v40 = vpop.permute.xlu0 %1028 }
 0x18b   :  { %2902 = vrot.lane.b32.xlu1 %v2770_v52, %s4706_s30  ;;  %1191 = vst.msk [vmem:[#allocation3 + $0xf0] sm:$0xff] %vm1160_vm3, %v1029_v40 }
 0x18c   :  { %1367 = vrot.lane.b32.xlu0 %v5318_v27, %s4702_s7 }
 0x18d   :  { %v1031_v54 = vpop.permute.xlu1 %1030 }
 0x18e   :  { %1192 = vst.msk [vmem:[#allocation3 + $0xf8] sm:$0xff] %vm1160_vm3, %v1031_v54  ;;  %v1033_v55 = vpop.permute.xlu0 %1032  ;;  %v2394_v54 = vld [vmem:[#allocation2 + $0xc8] sm:$0xff] }
 0x18f   :  { %1750 = vrot.lane.b32.xlu1 %v2770_v52, %s4703_s12  ;;  %1193 = vst.msk [vmem:[#allocation3 + $0x100] sm:$0xff] %vm1160_vm3, %v1033_v55  ;;  %v2778_v55 = vld [vmem:[#allocation2 + $0xc1] sm:$0xff] }
 0x190   :  { %2904 = vrot.lane.b32.xlu0 %v2771_v26, %s4706_s30 }
 0x191   :  { %v1035_v56 = vpop.permute.xlu1 %1034 }
 0x192   :  { %1194 = vst.msk [vmem:[#allocation3 + $0x108] sm:$0xff] %vm1160_vm3, %v1035_v56  ;;  %v1037_v57 = vpop.permute.xlu0 %1036 }
 0x193   :  { %3287 = vrot.lane.b32.xlu1 %v5470_v42, %s4707_s18  ;;  %1195 = vst.msk [vmem:[#allocation3 + $0x110] sm:$0xff] %vm1160_vm3, %v1037_v57 }
 0x194   :  { %1752 = vrot.lane.b32.xlu0 %v2771_v26, %s4703_s12 }
 0x195   :  { %v1039_v58 = vpop.permute.xlu1 %1038 }
 0x196   :  { %1196 = vst.msk [vmem:[#allocation3 + $0x118] sm:$0xff] %vm1160_vm3, %v1039_v58  ;;  %v1041_v27 = vpop.permute.xlu0 %1040 }
 0x197   :  { %2135 = vrot.lane.b32.xlu1 %v5470_v42, %s4704_s17  ;;  %1197 = vst.msk [vmem:[#allocation3 + $0x120] sm:$0xff] %vm1160_vm3, %v1041_v27  ;;  %v2779_v27 = vld [vmem:[#allocation2 + $0xc9] sm:$0xff] }
 0x198   :  { %3289 = vrot.lane.b32.xlu0 %v5472_v44, %s4707_s18 }
 0x199   :  { %v1043_v59 = vpop.permute.xlu1 %1042 }
 0x19a   :  { %1198 = vst.msk [vmem:[#allocation3 + $0x128] sm:$0xff] %vm1160_vm3, %v1043_v59  ;;  %v1045_v10 = vpop.permute.xlu0 %1044 }
 0x19b   :  { %2137 = vrot.lane.b32.xlu1 %v5472_v44, %s4704_s17  ;;  %1199 = vst.msk [vmem:[#allocation3 + $0x130] sm:$0xff] %vm1160_vm3, %v1045_v10  ;;  %v3163_v10 = vld [vmem:[#allocation2 + $0xc2] sm:$0xff] }
 0x19c   :  { %2521 = vrot.lane.b32.xlu0 %v5325_v28, %s4705_s23 }
 0x19d   :  { %v1047_v15 = vpop.permute.xlu1 %1046 }
 0x19e   :  { %1200 = vst.msk [vmem:[#allocation3 + $0x138] sm:$0xff] %vm1160_vm3, %v1047_v15  ;;  %v1049_v42 = vpop.permute.xlu0 %1048 }
 0x19f   :  { %1369 = vrot.lane.b32.xlu1 %v5325_v28, %s4702_s7  ;;  %1201 = vst.msk [vmem:[#allocation3 + $0x140] sm:$0xff] %vm1160_vm3, %v1049_v42  ;;  %v2773_v28 = vld [vmem:[#allocation2 + $0x81] sm:$0xff] }
 0x1a0   :  { %2523 = vrot.lane.b32.xlu0 %v5327_v29, %s4705_s23 }
 0x1a1   :  { %v1051_v61 = vpop.permute.xlu1 %1050 }
 0x1a2   :  { %1202 = vst.msk [vmem:[#allocation3 + $0x148] sm:$0xff] %vm1160_vm3, %v1051_v61  ;;  %v1053_v44 = vpop.permute.xlu0 %1052 }
 0x1a3   :  { %2906 = vrot.lane.b32.xlu1 %v2772_v60, %s4706_s30  ;;  %1203 = vst.msk [vmem:[#allocation3 + $0x150] sm:$0xff] %vm1160_vm3, %v1053_v44  ;;  %v3164_v44 = vld [vmem:[#allocation2 + $0xca] sm:$0xff] }
 0x1a4   :  { %1371 = vrot.lane.b32.xlu0 %v5327_v29, %s4702_s7 }
 0x1a5   :  { %v1055_v62 = vpop.permute.xlu1 %1054 }
 0x1a6   :  { %1204 = vst.msk [vmem:[#allocation3 + $0x158] sm:$0xff] %vm1160_vm3, %v1055_v62  ;;  %v1057_v63 = vpop.permute.xlu0 %1056 }
 0x1a7   :  { %1754 = vrot.lane.b32.xlu1 %v2772_v60, %s4703_s12  ;;  %1205 = vst.msk [vmem:[#allocation3 + $0x160] sm:$0xff] %vm1160_vm3, %v1057_v63  ;;  %v2395_v63 = vld [vmem:[#allocation2 + $0xd8] sm:$0xff] }
 0x1a8   :  { %2908 = vrot.lane.b32.xlu0 %v2773_v28, %s4706_s30 }
 0x1a9   :  { %v1059_v0 = vpop.permute.xlu1 %1058 }
 0x1aa   :  { %1206 = vst.msk [vmem:[#allocation3 + $0x168] sm:$0xff] %vm1160_vm3, %v1059_v0  ;;  %v1061_v1 = vpop.permute.xlu0 %1060 }
 0x1ab   :  { %3291 = vrot.lane.b32.xlu1 %v5480_v46, %s4707_s18  ;;  %1207 = vst.msk [vmem:[#allocation3 + $0x170] sm:$0xff] %vm1160_vm3, %v1061_v1 }
 0x1ac   :  { %1756 = vrot.lane.b32.xlu0 %v2773_v28, %s4703_s12 }
 0x1ad   :  { %v1063_v30 = vpop.permute.xlu1 %1062 }
 0x1ae   :  { %1208 = vst.msk [vmem:[#allocation3 + $0x178] sm:$0xff] %vm1160_vm3, %v1063_v30  ;;  %v1065_v29 = vpop.permute.xlu0 %1064 }
 0x1af   :  { %2139 = vrot.lane.b32.xlu1 %v5480_v46, %s4704_s17  ;;  %1209 = vst.msk [vmem:[#allocation3 + $0x180] sm:$0xff] %vm1160_vm3, %v1065_v29  ;;  %v2390_v46 = vld [vmem:[#allocation2 + $0x98] sm:$0xff]  ;;  %v2396_v29 = vld [vmem:[#allocation2 + $0xe0] sm:$0xff] }
 0x1b0   :  { %3293 = vrot.lane.b32.xlu0 %v5482_v48, %s4707_s18 }
 0x1b1   :  { %v1067_v32 = vpop.permute.xlu1 %1066 }
 0x1b2   :  { %1210 = vst.msk [vmem:[#allocation3 + $0x188] sm:$0xff] %vm1160_vm3, %v1067_v32  ;;  %v1069_v4 = vpop.permute.xlu0 %1068 }
 0x1b3   :  { %2141 = vrot.lane.b32.xlu1 %v5482_v48, %s4704_s17  ;;  %1211 = vst.msk [vmem:[#allocation3 + $0x190] sm:$0xff] %vm1160_vm3, %v1069_v4 }
 0x1b4   :  { %2525 = vrot.lane.b32.xlu0 %v2389_v3, %s4705_s23 }
 0x1b5   :  { %v1071_v5 = vpop.permute.xlu1 %1070 }
 0x1b6   :  { %1212 = vst.msk [vmem:[#allocation3 + $0x198] sm:$0xff] %vm1160_vm3, %v1071_v5  ;;  %v1073_v6 = vpop.permute.xlu0 %1072 }
 0x1b7   :  { %1373 = vrot.lane.b32.xlu1 %v2389_v3, %s4702_s7  ;;  %1213 = vst.msk [vmem:[#allocation3 + $0x1a0] sm:$0xff] %vm1160_vm3, %v1073_v6  ;;  %v2780_v3 = vld [vmem:[#allocation2 + $0xd9] sm:$0xff]  ;;  %v2781_v6 = vld [vmem:[#allocation2 + $0xe1] sm:$0xff] }
 0x1b8   :  { %2527 = vrot.lane.b32.xlu0 %v2390_v46, %s4705_s23 }
 0x1b9   :  { %v1075_v7 = vpop.permute.xlu1 %1074 }
 0x1ba   :  { %1214 = vst.msk [vmem:[#allocation3 + $0x1a8] sm:$0xff] %vm1160_vm3, %v1075_v7  ;;  %v1354_v48 = vpop.permute.xlu0 %1353  ;;  %v3165_v7 = vld [vmem:[#allocation2 + $0xda] sm:$0xff] }
 0x1bb   :  { %2910 = vrot.lane.b32.xlu1 %v2774_v18, %s4706_s30  ;;  %1546 = vst.msk [vmem:[#allocation3] sm:$0xff] %vm1545_vm4, %v1354_v48 }
 0x1bc   :  { %1375 = vrot.lane.b32.xlu0 %v2390_v46, %s4702_s7 }
 0x1bd   :  { %v1356_v8 = vpop.permute.xlu1 %1355 }
 0x1be   :  { %1547 = vst.msk [vmem:[#allocation3 + $0x8] sm:$0xff] %vm1545_vm4, %v1356_v8  ;;  %v1739_v11 = vpop.permute.xlu0 %1738 }
 0x1bf   :  { %1758 = vrot.lane.b32.xlu1 %v2774_v18, %s4703_s12  ;;  %1931 = vst.msk [vmem:[#allocation3] sm:$0xff] %vm1930_vm5, %v1739_v11 }
 0x1c0   :  { %2912 = vrot.lane.b32.xlu0 %v2775_v9, %s4706_s30 }
 0x1c1   :  { %v1741_v12 = vpop.permute.xlu1 %1740 }
 0x1c2   :  { %1932 = vst.msk [vmem:[#allocation3 + $0x8] sm:$0xff] %vm1930_vm5, %v1741_v12  ;;  %v2124_v13 = vpop.permute.xlu0 %2123  ;;  %v3166_v12 = vld [vmem:[#allocation2 + $0xe2] sm:$0xff] }
 0x1c3   :  { %3295 = vrot.lane.b32.xlu1 %v5490_v50, %s4707_s18  ;;  %2316 = vst.msk [vmem:[#allocation3] sm:$0xff] %vm2315_vm6, %v2124_v13  ;;  %v2391_v50 = vld [vmem:[#allocation2 + $0xa8] sm:$0xff] }
 0x1c4   :  { %1760 = vrot.lane.b32.xlu0 %v2775_v9, %s4703_s12 }
 0x1c5   :  { %v2126_v16 = vpop.permute.xlu1 %2125 }
 0x1c6   :  { %2317 = vst.msk [vmem:[#allocation3 + $0x8] sm:$0xff] %vm2315_vm6, %v2126_v16  ;;  %v2510_v17 = vpop.permute.xlu0 %2509  ;;  %v2397_v16 = vld [vmem:[#allocation2 + $0xf0] sm:$0xff] }
 0x1c7   :  { %2143 = vrot.lane.b32.xlu1 %v2005_v14, %s4704_s17  ;;  %2702 = vst.msk [vmem:[#allocation3] sm:$0xff] %vm2701_vm7, %v2510_v17 }
 0x1c8   :  { %3297 = vrot.lane.b32.xlu0 %v3160_v19, %s4707_s18 }
 0x1c9   :  { %v1358_v20 = vpop.permute.xlu1 %1357 }
 0x1ca   :  { %1548 = vst.msk [vmem:[#allocation3 + $0x10] sm:$0xff] %vm1545_vm4, %v1358_v20  ;;  %v2512_v21 = vpop.permute.xlu0 %2511 }
 0x1cb   :  { %2145 = vrot.lane.b32.xlu1 %v3160_v19, %s4704_s17  ;;  %2703 = vst.msk [vmem:[#allocation3 + $0x8] sm:$0xff] %vm2701_vm7, %v2512_v21 }
 0x1cc   :  { %2529 = vrot.lane.b32.xlu0 %v2391_v50, %s4705_s23 }
 0x1cd   :  { %v2895_v24 = vpop.permute.xlu1 %2894 }
 0x1ce   :  { %3087 = vst.msk [vmem:[#allocation3] sm:$0xff] %vm3086_vm8, %v2895_v24  ;;  %v1360_v34 = vpop.permute.xlu0 %1359  ;;  %v2782_v24 = vld [vmem:[#allocation2 + $0xf1] sm:$0xff] }
 0x1cf   :  { %1377 = vrot.lane.b32.xlu1 %v2391_v50, %s4702_s7  ;;  %1549 = vst.msk [vmem:[#allocation3 + $0x18] sm:$0xff] %vm1545_vm4, %v1360_v34  ;;  %v2398_v50 = vld [vmem:[#allocation2 + $0xf8] sm:$0xff] }
 0x1d0   :  { %2531 = vrot.lane.b32.xlu0 %v2392_v25, %s4705_s23 }
 0x1d1   :  { %v1743_v33 = vpop.permute.xlu1 %1742 }
 0x1d2   :  { %1933 = vst.msk [vmem:[#allocation3 + $0x10] sm:$0xff] %vm1930_vm5, %v1743_v33  ;;  %v2897_v36 = vpop.permute.xlu0 %2896  ;;  %v2783_v33 = vld [vmem:[#allocation2 + $0xf9] sm:$0xff] }
 0x1d3   :  { %2914 = vrot.lane.b32.xlu1 %v2776_v31, %s4706_s30  ;;  %3088 = vst.msk [vmem:[#allocation3 + $0x8] sm:$0xff] %vm3086_vm8, %v2897_v36 }
 0x1d4   :  { %1379 = vrot.lane.b32.xlu0 %v2392_v25, %s4702_s7 }
 0x1d5   :  { %v3280_v35 = vpop.permute.xlu1 %3279 }
 0x1d6   :  { %3472 = vst.msk [vmem:[#allocation3] sm:$0xff] %vm3471_vm9, %v3280_v35  ;;  %v1745_v37 = vpop.permute.xlu0 %1744  ;;  %v3167_v35 = vld [vmem:[#allocation2 + $0xf2] sm:$0xff] }
 0x1d7   :  { %1762 = vrot.lane.b32.xlu1 %v2776_v31, %s4703_s12  ;;  %1934 = vst.msk [vmem:[#allocation3 + $0x18] sm:$0xff] %vm1930_vm5, %v1745_v37 }
 0x1d8   :  { %2916 = vrot.lane.b32.xlu0 %v2777_v22, %s4706_s30 }
 0x1d9   :  { %v2128_v41 = vpop.permute.xlu1 %2127 }
 0x1da   :  { %2318 = vst.msk [vmem:[#allocation3 + $0x10] sm:$0xff] %vm2315_vm6, %v2128_v41  ;;  %v3282_v43 = vpop.permute.xlu0 %3281 }
 0x1db   :  { %3299 = vrot.lane.b32.xlu1 %v3161_v39, %s4707_s18  ;;  %3473 = vst.msk [vmem:[#allocation3 + $0x8] sm:$0xff] %vm3471_vm9, %v3282_v43  ;;  %v3168_v43 = vld [vmem:[#allocation2 + $0xfa] sm:$0xff] }
 0x1dc   :  { %1764 = vrot.lane.b32.xlu0 %v2777_v22, %s4703_s12 }
 0x1dd   :  { %v2130_v45 = vpop.permute.xlu1 %2129  ;;  %v3536_v23 = vld [vmem:[#allocation3] sm:$0xff] }
 0x1de   :  { %2319 = vst.msk [vmem:[#allocation3 + $0x18] sm:$0xff] %vm2315_vm6, %v2130_v45  ;;  %4525 = vmatprep.mubr.f32.mxu0 %v3536_v23  ;;  %v2514_v49 = vpop.permute.xlu0 %2513 }
 0x1df   :  { %2147 = vrot.lane.b32.xlu1 %v3161_v39, %s4704_s17  ;;  %2704 = vst.msk [vmem:[#allocation3 + $0x10] sm:$0xff] %vm2701_vm7, %v2514_v49  ;;  %v2399_v49 = vld [vmem:[#allocation2 + $0x108] sm:$0xff] }
 0x1e0   :  { %3301 = vrot.lane.b32.xlu0 %v3162_v47, %s4707_s18 }
 0x1e1   :  { %v1362_v51 = vpop.permute.xlu1 %1361 }
 0x1e2   :  { %1550 = vst.msk [vmem:[#allocation3 + $0x20] sm:$0xff] %vm1545_vm4, %v1362_v51  ;;  %v2516_v52 = vpop.permute.xlu0 %2515  ;;  %v3537_v53 = vld [vmem:[#allocation3 + $0x8] sm:$0xff] }
 0x1e3   :  { %2149 = vrot.lane.b32.xlu1 %v3162_v47, %s4704_s17  ;;  %2705 = vst.msk [vmem:[#allocation3 + $0x18] sm:$0xff] %vm2701_vm7, %v2516_v52  ;;  %4526 = vmatmul.mubr.f32.vlgmr.msra.gmra.mxu0 %v3537_v53  ;;  %v164_v47 = vld [vmem:[%s6738_s0 + $0xf0] sm:$0xff] }
 0x1e4   :  { %2533 = vrot.lane.b32.xlu0 %v2393_v38, %s4705_s23  ;;  %229 = vst.msk [vmem:[#allocation2 + $0x181] sm:$0xff] %vm24_vm0, %v164_v47  ;;  %v2400_v53 = vld [vmem:[#allocation2 + $0x110] sm:$0xff] }
 0x1e5   :  { %v2899_v40 = vpop.permute.xlu1 %2898 }
 0x1e6   :  { %3089 = vst.msk [vmem:[#allocation3 + $0x10] sm:$0xff] %vm3086_vm8, %v2899_v40  ;;  %v1364_v26 = vpop.permute.xlu0 %1363 }
 0x1e7   :  { %1381 = vrot.lane.b32.xlu1 %v2393_v38, %s4702_s7  ;;  %1551 = vst.msk [vmem:[#allocation3 + $0x28] sm:$0xff] %vm1545_vm4, %v1364_v26 }
 0x1e8   :  { %2535 = vrot.lane.b32.xlu0 %v2394_v54, %s4705_s23 }
 0x1e9   :  { %v1747_v56 = vpop.permute.xlu1 %1746 }
 0x1ea   :  { %1935 = vst.msk [vmem:[#allocation3 + $0x20] sm:$0xff] %vm1930_vm5, %v1747_v56  ;;  %v2901_v57 = vpop.permute.xlu0 %2900 }
 0x1eb   :  { %2918 = vrot.lane.b32.xlu1 %v2778_v55, %s4706_s30  ;;  %3090 = vst.msk [vmem:[#allocation3 + $0x18] sm:$0xff] %vm3086_vm8, %v2901_v57 }
 0x1ec   :  { %1383 = vrot.lane.b32.xlu0 %v2394_v54, %s4702_s7  ;;  %v2784_v54 = vld [vmem:[#allocation2 + $0x109] sm:$0xff] }
 0x1ed   :  { %v3284_v58 = vpop.permute.xlu1 %3283 }
 0x1ee   :  { %3474 = vst.msk [vmem:[#allocation3 + $0x10] sm:$0xff] %vm3471_vm9, %v3284_v58  ;;  %v1749_v59 = vpop.permute.xlu0 %1748  ;;  %v2785_v58 = vld [vmem:[#allocation2 + $0x111] sm:$0xff] }
 0x1ef   :  { %1766 = vrot.lane.b32.xlu1 %v2778_v55, %s4703_s12  ;;  %1936 = vst.msk [vmem:[#allocation3 + $0x28] sm:$0xff] %vm1930_vm5, %v1749_v59  ;;  %v165_v55 = vld [vmem:[%s6738_s0 + $0xf8] sm:$0xff]  ;;  %v3169_v59 = vld [vmem:[#allocation2 + $0x10a] sm:$0xff] }
 0x1f0   :  { %2920 = vrot.lane.b32.xlu0 %v2779_v27, %s4706_s30  ;;  %230 = vst.msk [vmem:[#allocation2 + $0x189] sm:$0xff] %vm24_vm0, %v165_v55  ;;  %v2791_v55 = vld [vmem:[#allocation2 + $0x159] sm:$0xff] }
 0x1f1   :  { %v2132_v15 = vpop.permute.xlu1 %2131 }
 0x1f2   :  { %2320 = vst.msk [vmem:[#allocation3 + $0x20] sm:$0xff] %vm2315_vm6, %v2132_v15  ;;  %v3286_v42 = vpop.permute.xlu0 %3285 }
 0x1f3   :  { %3303 = vrot.lane.b32.xlu1 %v3163_v10, %s4707_s18  ;;  %3475 = vst.msk [vmem:[#allocation3 + $0x18] sm:$0xff] %vm3471_vm9, %v3286_v42 }
 0x1f4   :  { %1768 = vrot.lane.b32.xlu0 %v2779_v27, %s4703_s12 }
 0x1f5   :  { %v2134_v60 = vpop.permute.xlu1 %2133  ;;  %v3538_v61 = vld [vmem:[#allocation3 + $0x10] sm:$0xff] }
 0x1f6   :  { %2321 = vst.msk [vmem:[#allocation3 + $0x28] sm:$0xff] %vm2315_vm6, %v2134_v60  ;;  %4528 = vmatprep.mubr.f32.mxu0 %v3538_v61  ;;  %v2518_v62 = vpop.permute.xlu0 %2517  ;;  %v3170_v61 = vld [vmem:[#allocation2 + $0x112] sm:$0xff] }
 0x1f7   :  { %2151 = vrot.lane.b32.xlu1 %v3163_v10, %s4704_s17  ;;  %2706 = vst.msk [vmem:[#allocation3 + $0x20] sm:$0xff] %vm2701_vm7, %v2518_v62 }
 0x1f8   :  { %3305 = vrot.lane.b32.xlu0 %v3164_v44, %s4707_s18 }
 0x1f9   :  { %v1366_v28 = vpop.permute.xlu1 %1365 }
 0x1fa   :  { %1552 = vst.msk [vmem:[#allocation3 + $0x30] sm:$0xff] %vm1545_vm4, %v1366_v28  ;;  %v2520_v0 = vpop.permute.xlu0 %2519  ;;  %v3539_v1 = vld [vmem:[#allocation3 + $0x18] sm:$0xff]  ;;  %v2401_v28 = vld [vmem:[#allocation2 + $0x120] sm:$0xff] }
 0x1fb   :  { %2153 = vrot.lane.b32.xlu1 %v3164_v44, %s4704_s17  ;;  %2707 = vst.msk [vmem:[#allocation3 + $0x28] sm:$0xff] %vm2701_vm7, %v2520_v0  ;;  %4529 = vmatmul.mubr.f32.gmra.mxu0 %v3539_v1 }
 0x1fc   :  { %2537 = vrot.lane.b32.xlu0 %v2395_v63, %s4705_s23 }
 0x1fd   :  { %v2903_v30 = vpop.permute.xlu1 %2902 }
 0x1fe   :  { %3091 = vst.msk [vmem:[#allocation3 + $0x20] sm:$0xff] %vm3086_vm8, %v2903_v30  ;;  %v1368_v32 = vpop.permute.xlu0 %1367  ;;  %v2402_v30 = vld [vmem:[#allocation2 + $0x128] sm:$0xff] }
 0x1ff   :  { %1385 = vrot.lane.b32.xlu1 %v2395_v63, %s4702_s7  ;;  %1553 = vst.msk [vmem:[#allocation3 + $0x38] sm:$0xff] %vm1545_vm4, %v1368_v32  ;;  %v2786_v32 = vld [vmem:[#allocation2 + $0x121] sm:$0xff] }
 0x200   :  { %2539 = vrot.lane.b32.xlu0 %v2396_v29, %s4705_s23 }
 0x201   :  { %v1751_v4 = vpop.permute.xlu1 %1750 }
 0x202   :  { %1937 = vst.msk [vmem:[#allocation3 + $0x30] sm:$0xff] %vm1930_vm5, %v1751_v4  ;;  %v2905_v5 = vpop.permute.xlu0 %2904 }
 0x203   :  { %2922 = vrot.lane.b32.xlu1 %v2780_v3, %s4706_s30  ;;  %3092 = vst.msk [vmem:[#allocation3 + $0x28] sm:$0xff] %vm3086_vm8, %v2905_v5 }
 0x204   :  { %1387 = vrot.lane.b32.xlu0 %v2396_v29, %s4702_s7 }
 0x205   :  { %v3288_v46 = vpop.permute.xlu1 %3287 }
 0x206   :  { %3476 = vst.msk [vmem:[#allocation3 + $0x20] sm:$0xff] %vm3471_vm9, %v3288_v46  ;;  %v1753_v18 = vpop.permute.xlu0 %1752  ;;  %v2787_v46 = vld [vmem:[#allocation2 + $0x129] sm:$0xff] }
 0x207   :  { %1770 = vrot.lane.b32.xlu1 %v2780_v3, %s4703_s12  ;;  %1938 = vst.msk [vmem:[#allocation3 + $0x38] sm:$0xff] %vm1930_vm5, %v1753_v18  ;;  %v3171_v18 = vld [vmem:[#allocation2 + $0x122] sm:$0xff] }
 0x208   :  { %2924 = vrot.lane.b32.xlu0 %v2781_v6, %s4706_s30 }
 0x209   :  { %v2136_v48 = vpop.permute.xlu1 %2135 }
 0x20a   :  { %2322 = vst.msk [vmem:[#allocation3 + $0x30] sm:$0xff] %vm2315_vm6, %v2136_v48  ;;  %v3290_v8 = vpop.permute.xlu0 %3289 }
 0x20b   :  { %3307 = vrot.lane.b32.xlu1 %v3165_v7, %s4707_s18  ;;  %3477 = vst.msk [vmem:[#allocation3 + $0x28] sm:$0xff] %vm3471_vm9, %v3290_v8 }
 0x20c   :  { %1772 = vrot.lane.b32.xlu0 %v2781_v6, %s4703_s12 }
 0x20d   :  { %v2138_v9 = vpop.permute.xlu1 %2137  ;;  %v3540_v11 = vld [vmem:[#allocation3 + $0x20] sm:$0xff] }
 0x20e   :  { %2323 = vst.msk [vmem:[#allocation3 + $0x38] sm:$0xff] %vm2315_vm6, %v2138_v9  ;;  %4531 = vmatprep.mubr.f32.mxu0 %v3540_v11  ;;  %v2522_v13 = vpop.permute.xlu0 %2521  ;;  %v3172_v11 = vld [vmem:[#allocation2 + $0x12a] sm:$0xff] }
 0x20f   :  { %2155 = vrot.lane.b32.xlu1 %v3165_v7, %s4704_s17  ;;  %2708 = vst.msk [vmem:[#allocation3 + $0x30] sm:$0xff] %vm2701_vm7, %v2522_v13 }
 0x210   :  { %3309 = vrot.lane.b32.xlu0 %v3166_v12, %s4707_s18 }
 0x211   :  { %v1370_v14 = vpop.permute.xlu1 %1369 }
 0x212   :  { %1554 = vst.msk [vmem:[#allocation3 + $0x40] sm:$0xff] %vm1545_vm4, %v1370_v14  ;;  %v2524_v19 = vpop.permute.xlu0 %2523  ;;  %v3541_v17 = vld [vmem:[#allocation3 + $0x28] sm:$0xff]  ;;  %v2403_v14 = vld [vmem:[#allocation2 + $0x138] sm:$0xff] }
 0x213   :  { %2157 = vrot.lane.b32.xlu1 %v3166_v12, %s4704_s17  ;;  %2709 = vst.msk [vmem:[#allocation3 + $0x38] sm:$0xff] %vm2701_vm7, %v2524_v19  ;;  %4532 = vmatmul.mubr.f32.gmra.mxu0 %v3541_v17 }
 0x214   :  { %2541 = vrot.lane.b32.xlu0 %v2397_v16, %s4705_s23 }
 0x215   :  { %v2907_v20 = vpop.permute.xlu1 %2906 }
 0x216   :  { %3093 = vst.msk [vmem:[#allocation3 + $0x30] sm:$0xff] %vm3086_vm8, %v2907_v20  ;;  %v1372_v21 = vpop.permute.xlu0 %1371  ;;  %v2404_v20 = vld [vmem:[#allocation2 + $0x140] sm:$0xff] }
 0x217   :  { %1389 = vrot.lane.b32.xlu1 %v2397_v16, %s4702_s7  ;;  %1555 = vst.msk [vmem:[#allocation3 + $0x48] sm:$0xff] %vm1545_vm4, %v1372_v21  ;;  %v2788_v21 = vld [vmem:[#allocation2 + $0x139] sm:$0xff] }
 0x218   :  { %2543 = vrot.lane.b32.xlu0 %v2398_v50, %s4705_s23 }
 0x219   :  { %v1755_v25 = vpop.permute.xlu1 %1754 }
 0x21a   :  { %1939 = vst.msk [vmem:[#allocation3 + $0x40] sm:$0xff] %vm1930_vm5, %v1755_v25  ;;  %v2909_v34 = vpop.permute.xlu0 %2908 }
 0x21b   :  { %2926 = vrot.lane.b32.xlu1 %v2782_v24, %s4706_s30  ;;  %3094 = vst.msk [vmem:[#allocation3 + $0x38] sm:$0xff] %vm3086_vm8, %v2909_v34 }
 0x21c   :  { %1391 = vrot.lane.b32.xlu0 %v2398_v50, %s4702_s7 }
 0x21d   :  { %v3292_v31 = vpop.permute.xlu1 %3291 }
 0x21e   :  { %3478 = vst.msk [vmem:[#allocation3 + $0x30] sm:$0xff] %vm3471_vm9, %v3292_v31  ;;  %v1757_v36 = vpop.permute.xlu0 %1756  ;;  %v2789_v31 = vld [vmem:[#allocation2 + $0x141] sm:$0xff] }
 0x21f   :  { %1774 = vrot.lane.b32.xlu1 %v2782_v24, %s4703_s12  ;;  %1940 = vst.msk [vmem:[#allocation3 + $0x48] sm:$0xff] %vm1930_vm5, %v1757_v36  ;;  %v3173_v36 = vld [vmem:[#allocation2 + $0x13a] sm:$0xff] }
 0x220   :  { %2928 = vrot.lane.b32.xlu0 %v2783_v33, %s4706_s30 }
 0x221   :  { %v2140_v22 = vpop.permute.xlu1 %2139 }
 0x222   :  { %2324 = vst.msk [vmem:[#allocation3 + $0x40] sm:$0xff] %vm2315_vm6, %v2140_v22  ;;  %v3294_v37 = vpop.permute.xlu0 %3293 }
 0x223   :  { %3311 = vrot.lane.b32.xlu1 %v3167_v35, %s4707_s18  ;;  %3479 = vst.msk [vmem:[#allocation3 + $0x38] sm:$0xff] %vm3471_vm9, %v3294_v37 }
 0x224   :  { %1776 = vrot.lane.b32.xlu0 %v2783_v33, %s4703_s12 }
 0x225   :  { %v2142_v39 = vpop.permute.xlu1 %2141  ;;  %v3542_v41 = vld [vmem:[#allocation3 + $0x30] sm:$0xff] }
 0x226   :  { %2325 = vst.msk [vmem:[#allocation3 + $0x48] sm:$0xff] %vm2315_vm6, %v2142_v39  ;;  %4534 = vmatprep.mubr.f32.mxu0 %v3542_v41  ;;  %v2526_v45 = vpop.permute.xlu0 %2525  ;;  %v3174_v41 = vld [vmem:[#allocation2 + $0x142] sm:$0xff] }
 0x227   :  { %2159 = vrot.lane.b32.xlu1 %v3167_v35, %s4704_s17  ;;  %2710 = vst.msk [vmem:[#allocation3 + $0x40] sm:$0xff] %vm2701_vm7, %v2526_v45 }
 0x228   :  { %3313 = vrot.lane.b32.xlu0 %v3168_v43, %s4707_s18 }
 0x229   :  { %v1374_v23 = vpop.permute.xlu1 %1373 }
 0x22a   :  { %1556 = vst.msk [vmem:[#allocation3 + $0x50] sm:$0xff] %vm1545_vm4, %v1374_v23  ;;  %v2528_v51 = vpop.permute.xlu0 %2527  ;;  %v3543_v38 = vld [vmem:[#allocation3 + $0x38] sm:$0xff]  ;;  %v2405_v23 = vld [vmem:[#allocation2 + $0x150] sm:$0xff] }
 0x22b   :  { %2161 = vrot.lane.b32.xlu1 %v3168_v43, %s4704_s17  ;;  %2711 = vst.msk [vmem:[#allocation3 + $0x48] sm:$0xff] %vm2701_vm7, %v2528_v51  ;;  %4535 = vmatmul.mubr.f32.gmra.mxu0 %v3543_v38  ;;  %v2406_v38 = vld [vmem:[#allocation2 + $0x158] sm:$0xff] }
 0x22c   :  { %2545 = vrot.lane.b32.xlu0 %v2399_v49, %s4705_s23 }
 0x22d   :  { %v2911_v52 = vpop.permute.xlu1 %2910 }
 0x22e   :  { %3095 = vst.msk [vmem:[#allocation3 + $0x40] sm:$0xff] %vm3086_vm8, %v2911_v52  ;;  %v1376_v40 = vpop.permute.xlu0 %1375 }
 0x22f   :  { %1393 = vrot.lane.b32.xlu1 %v2399_v49, %s4702_s7  ;;  %1557 = vst.msk [vmem:[#allocation3 + $0x58] sm:$0xff] %vm1545_vm4, %v1376_v40 }
 0x230   :  { %2547 = vrot.lane.b32.xlu0 %v2400_v53, %s4705_s23 }
 0x231   :  { %v1759_v26 = vpop.permute.xlu1 %1758 }
 0x232   :  { %1941 = vst.msk [vmem:[#allocation3 + $0x50] sm:$0xff] %vm1930_vm5, %v1759_v26  ;;  %v2913_v56 = vpop.permute.xlu0 %2912 }
 0x233   :  { %2930 = vrot.lane.b32.xlu1 %v2784_v54, %s4706_s30  ;;  %3096 = vst.msk [vmem:[#allocation3 + $0x48] sm:$0xff] %vm3086_vm8, %v2913_v56 }
 0x234   :  { %1395 = vrot.lane.b32.xlu0 %v2400_v53, %s4702_s7  ;;  %v2790_v53 = vld [vmem:[#allocation2 + $0x151] sm:$0xff] }
 0x235   :  { %v3296_v57 = vpop.permute.xlu1 %3295 }
 0x236   :  { %3480 = vst.msk [vmem:[#allocation3 + $0x40] sm:$0xff] %vm3471_vm9, %v3296_v57  ;;  %v1761_v27 = vpop.permute.xlu0 %1760  ;;  %v3175_v57 = vld [vmem:[#allocation2 + $0x152] sm:$0xff] }
 0x237   :  { %1778 = vrot.lane.b32.xlu1 %v2784_v54, %s4703_s12  ;;  %1942 = vst.msk [vmem:[#allocation3 + $0x58] sm:$0xff] %vm1930_vm5, %v1761_v27 }
 0x238   :  { %2932 = vrot.lane.b32.xlu0 %v2785_v58, %s4706_s30 }
 0x239   :  { %v2144_v10 = vpop.permute.xlu1 %2143 }
 0x23a   :  { %2326 = vst.msk [vmem:[#allocation3 + $0x50] sm:$0xff] %vm2315_vm6, %v2144_v10  ;;  %v3298_v15 = vpop.permute.xlu0 %3297 }
 0x23b   :  { %3315 = vrot.lane.b32.xlu1 %v3169_v59, %s4707_s18  ;;  %3481 = vst.msk [vmem:[#allocation3 + $0x48] sm:$0xff] %vm3471_vm9, %v3298_v15  ;;  %v3176_v15 = vld [vmem:[#allocation2 + $0x15a] sm:$0xff] }
 0x23c   :  { %1780 = vrot.lane.b32.xlu0 %v2785_v58, %s4703_s12 }
 0x23d   :  { %v2146_v42 = vpop.permute.xlu1 %2145  ;;  %v3544_v60 = vld [vmem:[#allocation3 + $0x40] sm:$0xff] }
 0x23e   :  { %2327 = vst.msk [vmem:[#allocation3 + $0x58] sm:$0xff] %vm2315_vm6, %v2146_v42  ;;  %4537 = vmatprep.mubr.f32.mxu0 %v3544_v60  ;;  %v2530_v44 = vpop.permute.xlu0 %2529 }
 0x23f   :  { %2163 = vrot.lane.b32.xlu1 %v3169_v59, %s4704_s17  ;;  %2712 = vst.msk [vmem:[#allocation3 + $0x50] sm:$0xff] %vm2701_vm7, %v2530_v44 }
 0x240   :  { %3317 = vrot.lane.b32.xlu0 %v3170_v61, %s4707_s18 }
 0x241   :  { %v1378_v62 = vpop.permute.xlu1 %1377 }
 0x242   :  { %1558 = vst.msk [vmem:[#allocation3 + $0x60] sm:$0xff] %vm1545_vm4, %v1378_v62  ;;  %v2532_v63 = vpop.permute.xlu0 %2531  ;;  %v3545_v0 = vld [vmem:[#allocation3 + $0x48] sm:$0xff] }
 0x243   :  { %2165 = vrot.lane.b32.xlu1 %v3170_v61, %s4704_s17  ;;  %2713 = vst.msk [vmem:[#allocation3 + $0x58] sm:$0xff] %vm2701_vm7, %v2532_v63  ;;  %4538 = vmatmul.mubr.f32.gmra.mxu0 %v3545_v0  ;;  %v2407_v61 = vld [vmem:[#allocation2 + $0x168] sm:$0xff]  ;;  %v1269_v63 = vld [vmem:[#allocation2 + $0x258] sm:$0xff] }
 0x244   :  { %2549 = vrot.lane.b32.xlu0 %v2401_v28, %s4705_s23 }
 0x245   :  { %v2915_v1 = vpop.permute.xlu1 %2914 }
 0x246   :  { %3097 = vst.msk [vmem:[#allocation3 + $0x50] sm:$0xff] %vm3086_vm8, %v2915_v1  ;;  %v1380_v29 = vpop.permute.xlu0 %1379  ;;  %v2408_v1 = vld [vmem:[#allocation2 + $0x170] sm:$0xff] }
 0x247   :  { %1397 = vrot.lane.b32.xlu1 %v2401_v28, %s4702_s7  ;;  %1559 = vst.msk [vmem:[#allocation3 + $0x68] sm:$0xff] %vm1545_vm4, %v1380_v29  ;;  %v2792_v29 = vld [vmem:[#allocation2 + $0x169] sm:$0xff] }
 0x248   :  { %2551 = vrot.lane.b32.xlu0 %v2402_v30, %s4705_s23 }
 0x249   :  { %v1763_v3 = vpop.permute.xlu1 %1762 }
 0x24a   :  { %1943 = vst.msk [vmem:[#allocation3 + $0x60] sm:$0xff] %vm1930_vm5, %v1763_v3  ;;  %v2917_v4 = vpop.permute.xlu0 %2916 }
 0x24b   :  { %2934 = vrot.lane.b32.xlu1 %v2786_v32, %s4706_s30  ;;  %3098 = vst.msk [vmem:[#allocation3 + $0x58] sm:$0xff] %vm3086_vm8, %v2917_v4  ;;  %v1270_v4 = vld [vmem:[#allocation2 + $0x260] sm:$0xff] }
 0x24c   :  { %1399 = vrot.lane.b32.xlu0 %v2402_v30, %s4702_s7 }
 0x24d   :  { %v3300_v5 = vpop.permute.xlu1 %3299 }
 0x24e   :  { %3482 = vst.msk [vmem:[#allocation3 + $0x50] sm:$0xff] %vm3471_vm9, %v3300_v5  ;;  %v1765_v6 = vpop.permute.xlu0 %1764 }
 0x24f   :  { %1782 = vrot.lane.b32.xlu1 %v2786_v32, %s4703_s12  ;;  %1944 = vst.msk [vmem:[#allocation3 + $0x68] sm:$0xff] %vm1930_vm5, %v1765_v6  ;;  %v1654_v6 = vld [vmem:[#allocation2 + $0x259] sm:$0xff] }
 0x250   :  { %2936 = vrot.lane.b32.xlu0 %v2787_v46, %s4706_s30 }
 0x251   :  { %v2148_v7 = vpop.permute.xlu1 %2147 }
 0x252   :  { %2328 = vst.msk [vmem:[#allocation3 + $0x60] sm:$0xff] %vm2315_vm6, %v2148_v7  ;;  %v3302_v48 = vpop.permute.xlu0 %3301  ;;  %v2793_v7 = vld [vmem:[#allocation2 + $0x171] sm:$0xff] }
 0x253   :  { %3319 = vrot.lane.b32.xlu1 %v3171_v18, %s4707_s18  ;;  %3483 = vst.msk [vmem:[#allocation3 + $0x58] sm:$0xff] %vm3471_vm9, %v3302_v48 }
 0x254   :  { %1784 = vrot.lane.b32.xlu0 %v2787_v46, %s4703_s12 }
 0x255   :  { %v2150_v8 = vpop.permute.xlu1 %2149  ;;  %v3546_v9 = vld [vmem:[#allocation3 + $0x50] sm:$0xff] }
 0x256   :  { %2329 = vst.msk [vmem:[#allocation3 + $0x68] sm:$0xff] %vm2315_vm6, %v2150_v8  ;;  %4540 = vmatprep.mubr.f32.mxu0 %v3546_v9  ;;  %v2534_v12 = vpop.permute.xlu0 %2533  ;;  %v3177_v9 = vld [vmem:[#allocation2 + $0x16a] sm:$0xff] }
 0x257   :  { %2167 = vrot.lane.b32.xlu1 %v3171_v18, %s4704_s17  ;;  %2714 = vst.msk [vmem:[#allocation3 + $0x60] sm:$0xff] %vm2701_vm7, %v2534_v12 }
 0x258   :  { %3321 = vrot.lane.b32.xlu0 %v3172_v11, %s4707_s18 }
 0x259   :  { %v1382_v13 = vpop.permute.xlu1 %1381 }
 0x25a   :  { %1560 = vst.msk [vmem:[#allocation3 + $0x70] sm:$0xff] %vm1545_vm4, %v1382_v13  ;;  %v2536_v16 = vpop.permute.xlu0 %2535  ;;  %v3547_v19 = vld [vmem:[#allocation3 + $0x58] sm:$0xff]  ;;  %v1655_v13 = vld [vmem:[#allocation2 + $0x261] sm:$0xff] }
 0x25b   :  { %2169 = vrot.lane.b32.xlu1 %v3172_v11, %s4704_s17  ;;  %2715 = vst.msk [vmem:[#allocation3 + $0x68] sm:$0xff] %vm2701_vm7, %v2536_v16  ;;  %4541 = vmatmul.mubr.f32.gmra.mxu0 %v3547_v19 }
 0x25c   :  { %2553 = vrot.lane.b32.xlu0 %v2403_v14, %s4705_s23 }
 0x25d   :  { %v2919_v17 = vpop.permute.xlu1 %2918 }
 0x25e   :  { %3099 = vst.msk [vmem:[#allocation3 + $0x60] sm:$0xff] %vm3086_vm8, %v2919_v17  ;;  %v1384_v50 = vpop.permute.xlu0 %1383  ;;  %v2039_v17 = vld [vmem:[#allocation2 + $0x25a] sm:$0xff] }
 0x25f   :  { %1401 = vrot.lane.b32.xlu1 %v2403_v14, %s4702_s7  ;;  %1561 = vst.msk [vmem:[#allocation3 + $0x78] sm:$0xff] %vm1545_vm4, %v1384_v50  ;;  %v3178_v50 = vld [vmem:[#allocation2 + $0x172] sm:$0xff] }
 0x260   :  { %2555 = vrot.lane.b32.xlu0 %v2404_v20, %s4705_s23 }
 0x261   :  { %v1767_v24 = vpop.permute.xlu1 %1766 }
 0x262   :  { %1945 = vst.msk [vmem:[#allocation3 + $0x70] sm:$0xff] %vm1930_vm5, %v1767_v24  ;;  %v2921_v25 = vpop.permute.xlu0 %2920 }
 0x263   :  { %2938 = vrot.lane.b32.xlu1 %v2788_v21, %s4706_s30  ;;  %3100 = vst.msk [vmem:[#allocation3 + $0x68] sm:$0xff] %vm3086_vm8, %v2921_v25  ;;  %v2040_v25 = vld [vmem:[#allocation2 + $0x262] sm:$0xff] }
 0x264   :  { %1403 = vrot.lane.b32.xlu0 %v2404_v20, %s4702_s7 }
 0x265   :  { %v3304_v34 = vpop.permute.xlu1 %3303 }
 0x266   :  { %3484 = vst.msk [vmem:[#allocation3 + $0x60] sm:$0xff] %vm3471_vm9, %v3304_v34  ;;  %v1769_v33 = vpop.permute.xlu0 %1768 }
 0x267   :  { %1786 = vrot.lane.b32.xlu1 %v2788_v21, %s4703_s12  ;;  %1946 = vst.msk [vmem:[#allocation3 + $0x78] sm:$0xff] %vm1930_vm5, %v1769_v33 }
 0x268   :  { %2940 = vrot.lane.b32.xlu0 %v2789_v31, %s4706_s30 }
 0x269   :  { %v2152_v35 = vpop.permute.xlu1 %2151 }
 0x26a   :  { %2330 = vst.msk [vmem:[#allocation3 + $0x70] sm:$0xff] %vm2315_vm6, %v2152_v35  ;;  %v3306_v22 = vpop.permute.xlu0 %3305 }
 0x26b   :  { %3323 = vrot.lane.b32.xlu1 %v3173_v36, %s4707_s18  ;;  %3485 = vst.msk [vmem:[#allocation3 + $0x68] sm:$0xff] %vm3471_vm9, %v3306_v22 }
 0x26c   :  { %1788 = vrot.lane.b32.xlu0 %v2789_v31, %s4703_s12  ;;  %v2409_v31 = vld [vmem:[#allocation2 + $0x180] sm:$0xff] }
 0x26d   :  { %v2154_v37 = vpop.permute.xlu1 %2153  ;;  %v3548_v39 = vld [vmem:[#allocation3 + $0x60] sm:$0xff] }
 0x26e   :  { %2331 = vst.msk [vmem:[#allocation3 + $0x78] sm:$0xff] %vm2315_vm6, %v2154_v37  ;;  %4543 = vmatprep.mubr.f32.mxu0 %v3548_v39  ;;  %v2538_v43 = vpop.permute.xlu0 %2537 }
 0x26f   :  { %2171 = vrot.lane.b32.xlu1 %v3173_v36, %s4704_s17  ;;  %2716 = vst.msk [vmem:[#allocation3 + $0x70] sm:$0xff] %vm2701_vm7, %v2538_v43  ;;  %v2425_v36 = vld [vmem:[#allocation2 + $0x270] sm:$0xff] }
 0x270   :  { %3325 = vrot.lane.b32.xlu0 %v3174_v41, %s4707_s18 }
 0x271   :  { %v1386_v45 = vpop.permute.xlu1 %1385 }
 0x272   :  { %1562 = vst.msk [vmem:[#allocation3 + $0x80] sm:$0xff] %vm1545_vm4, %v1386_v45  ;;  %v2540_v47 = vpop.permute.xlu0 %2539  ;;  %v3549_v49 = vld [vmem:[#allocation3 + $0x68] sm:$0xff]  ;;  %v2426_v45 = vld [vmem:[#allocation2 + $0x278] sm:$0xff] }
 0x273   :  { %2173 = vrot.lane.b32.xlu1 %v3174_v41, %s4704_s17  ;;  %2717 = vst.msk [vmem:[#allocation3 + $0x78] sm:$0xff] %vm2701_vm7, %v2540_v47  ;;  %4544 = vmatmul.mubr.f32.gmra.mxu0 %v3549_v49  ;;  %v2410_v41 = vld [vmem:[#allocation2 + $0x188] sm:$0xff] }
 0x274   :  { %2557 = vrot.lane.b32.xlu0 %v2405_v23, %s4705_s23  ;;  %v2794_v47 = vld [vmem:[#allocation2 + $0x181] sm:$0xff] }
 0x275   :  { %v2923_v51 = vpop.permute.xlu1 %2922 }
 0x276   :  { %3101 = vst.msk [vmem:[#allocation3 + $0x70] sm:$0xff] %vm3086_vm8, %v2923_v51  ;;  %v1388_v52 = vpop.permute.xlu0 %1387 }
 0x277   :  { %1405 = vrot.lane.b32.xlu1 %v2405_v23, %s4702_s7  ;;  %1563 = vst.msk [vmem:[#allocation3 + $0x88] sm:$0xff] %vm1545_vm4, %v1388_v52 }
 0x278   :  { %2559 = vrot.lane.b32.xlu0 %v2406_v38, %s4705_s23 }
 0x279   :  { %v1771_v40 = vpop.permute.xlu1 %1770 }
 0x27a   :  { %1947 = vst.msk [vmem:[#allocation3 + $0x80] sm:$0xff] %vm1930_vm5, %v1771_v40  ;;  %v2925_v54 = vpop.permute.xlu0 %2924 }
 0x27b   :  { %2942 = vrot.lane.b32.xlu1 %v2790_v53, %s4706_s30  ;;  %3102 = vst.msk [vmem:[#allocation3 + $0x78] sm:$0xff] %vm3086_vm8, %v2925_v54 }
 0x27c   :  { %1407 = vrot.lane.b32.xlu0 %v2406_v38, %s4702_s7  ;;  %v2810_v38 = vld [vmem:[#allocation2 + $0x271] sm:$0xff] }
 0x27d   :  { %v3308_v26 = vpop.permute.xlu1 %3307 }
 0x27e   :  { %3486 = vst.msk [vmem:[#allocation3 + $0x70] sm:$0xff] %vm3471_vm9, %v3308_v26  ;;  %v1773_v56 = vpop.permute.xlu0 %1772 }
 0x27f   :  { %1790 = vrot.lane.b32.xlu1 %v2790_v53, %s4703_s12  ;;  %1948 = vst.msk [vmem:[#allocation3 + $0x88] sm:$0xff] %vm1930_vm5, %v1773_v56 }
 0x280   :  { %2944 = vrot.lane.b32.xlu0 %v2791_v55, %s4706_s30 }
 0x281   :  { %v2156_v58 = vpop.permute.xlu1 %2155 }
 0x282   :  { %2332 = vst.msk [vmem:[#allocation3 + $0x80] sm:$0xff] %vm2315_vm6, %v2156_v58  ;;  %v3310_v27 = vpop.permute.xlu0 %3309 }
 0x283   :  { %3327 = vrot.lane.b32.xlu1 %v3175_v57, %s4707_s18  ;;  %3487 = vst.msk [vmem:[#allocation3 + $0x78] sm:$0xff] %vm3471_vm9, %v3310_v27  ;;  %v3179_v27 = vld [vmem:[#allocation2 + $0x182] sm:$0xff] }
 0x284   :  { %1792 = vrot.lane.b32.xlu0 %v2791_v55, %s4703_s12  ;;  %v2795_v55 = vld [vmem:[#allocation2 + $0x189] sm:$0xff] }
 0x285   :  { %v2158_v59 = vpop.permute.xlu1 %2157  ;;  %v3550_v10 = vld [vmem:[#allocation3 + $0x70] sm:$0xff] }
 0x286   :  { %2333 = vst.msk [vmem:[#allocation3 + $0x88] sm:$0xff] %vm2315_vm6, %v2158_v59  ;;  %4546 = vmatprep.mubr.f32.mxu0 %v3550_v10  ;;  %v2542_v42 = vpop.permute.xlu0 %2541  ;;  %v3195_v10 = vld [vmem:[#allocation2 + $0x272] sm:$0xff] }
 0x287   :  { %2175 = vrot.lane.b32.xlu1 %v3175_v57, %s4704_s17  ;;  %2718 = vst.msk [vmem:[#allocation3 + $0x80] sm:$0xff] %vm2701_vm7, %v2542_v42  ;;  %v2811_v57 = vld [vmem:[#allocation2 + $0x279] sm:$0xff] }
 0x288   :  { %3329 = vrot.lane.b32.xlu0 %v3176_v15, %s4707_s18 }
 0x289   :  { %v1390_v60 = vpop.permute.xlu1 %1389 }
 0x28a   :  { %1564 = vst.msk [vmem:[#allocation3 + $0x90] sm:$0xff] %vm1545_vm4, %v1390_v60  ;;  %v2544_v44 = vpop.permute.xlu0 %2543  ;;  %v3551_v62 = vld [vmem:[#allocation3 + $0x78] sm:$0xff] }
 0x28b   :  { %2177 = vrot.lane.b32.xlu1 %v3176_v15, %s4704_s17  ;;  %2719 = vst.msk [vmem:[#allocation3 + $0x88] sm:$0xff] %vm2701_vm7, %v2544_v44  ;;  %4547 = vmatmul.mubr.f32.gmra.mxu0 %v3551_v62 }
 0x28c   :  { %2561 = vrot.lane.b32.xlu0 %v2407_v61, %s4705_s23 }
 0x28d   :  { %v2927_v28 = vpop.permute.xlu1 %2926 }
 0x28e   :  { %3103 = vst.msk [vmem:[#allocation3 + $0x80] sm:$0xff] %vm3086_vm8, %v2927_v28  ;;  %v1392_v0 = vpop.permute.xlu0 %1391 }
 0x28f   :  { %1409 = vrot.lane.b32.xlu1 %v2407_v61, %s4702_s7  ;;  %1565 = vst.msk [vmem:[#allocation3 + $0x98] sm:$0xff] %vm1545_vm4, %v1392_v0 }
 0x290   :  { %1441 = vrot.lane.b32.xlu0 %v1269_v63, %s4702_s7  ;;  %v3180_v63 = vld [vmem:[#allocation2 + $0x18a] sm:$0xff] }
 0x291   :  { %v1775_v30 = vpop.permute.xlu1 %1774 }
 0x292   :  { %1949 = vst.msk [vmem:[#allocation3 + $0x90] sm:$0xff] %vm1930_vm5, %v1775_v30  ;;  %v2929_v32 = vpop.permute.xlu0 %2928 }
 0x293   :  { %2563 = vrot.lane.b32.xlu1 %v2408_v1, %s4705_s23  ;;  %3104 = vst.msk [vmem:[#allocation3 + $0x88] sm:$0xff] %vm3086_vm8, %v2929_v32 }
 0x294   :  { %2946 = vrot.lane.b32.xlu0 %v2792_v29, %s4706_s30 }
 0x295   :  { %v3312_v3 = vpop.permute.xlu1 %3311 }
 0x296   :  { %3488 = vst.msk [vmem:[#allocation3 + $0x80] sm:$0xff] %vm3471_vm9, %v3312_v3  ;;  %v1777_v5 = vpop.permute.xlu0 %1776  ;;  %v2411_v3 = vld [vmem:[#allocation2 + $0x198] sm:$0xff] }
 0x297   :  { %1411 = vrot.lane.b32.xlu1 %v2408_v1, %s4702_s7  ;;  %1950 = vst.msk [vmem:[#allocation3 + $0x98] sm:$0xff] %vm1930_vm5, %v1777_v5  ;;  %v3196_v1 = vld [vmem:[#allocation2 + $0x27a] sm:$0xff]  ;;  %v2427_v5 = vld [vmem:[#allocation2 + $0x288] sm:$0xff] }
 0x298   :  { %1443 = vrot.lane.b32.xlu0 %v1270_v4, %s4702_s7 }
 0x299   :  { %v2160_v46 = vpop.permute.xlu1 %2159 }
 0x29a   :  { %2334 = vst.msk [vmem:[#allocation3 + $0x90] sm:$0xff] %vm2315_vm6, %v2160_v46  ;;  %v3314_v18 = vpop.permute.xlu0 %3313 }
 0x29b   :  { %1794 = vrot.lane.b32.xlu1 %v2792_v29, %s4703_s12  ;;  %3489 = vst.msk [vmem:[#allocation3 + $0x88] sm:$0xff] %vm3471_vm9, %v3314_v18  ;;  %v2412_v18 = vld [vmem:[#allocation2 + $0x1a0] sm:$0xff] }
 0x29c   :  { %1826 = vrot.lane.b32.xlu0 %v1654_v6, %s4703_s12 }
 0x29d   :  { %v2162_v48 = vpop.permute.xlu1 %2161  ;;  %v3552_v8 = vld [vmem:[#allocation3 + $0x80] sm:$0xff] }
 0x29e   :  { %2335 = vst.msk [vmem:[#allocation3 + $0x98] sm:$0xff] %vm2315_vm6, %v2162_v48  ;;  %4549 = vmatprep.mubr.f32.mxu0 %v3552_v8  ;;  %v2546_v11 = vpop.permute.xlu0 %2545  ;;  %v2428_v8 = vld [vmem:[#allocation2 + $0x290] sm:$0xff] }
 0x29f   :  { %2948 = vrot.lane.b32.xlu1 %v2793_v7, %s4706_s30  ;;  %2720 = vst.msk [vmem:[#allocation3 + $0x90] sm:$0xff] %vm2701_vm7, %v2546_v11  ;;  %v2796_v11 = vld [vmem:[#allocation2 + $0x199] sm:$0xff] }
 0x2a0   :  { %3331 = vrot.lane.b32.xlu0 %v3177_v9, %s4707_s18 }
 0x2a1   :  { %v1394_v12 = vpop.permute.xlu1 %1393 }
 0x2a2   :  { %1566 = vst.msk [vmem:[#allocation3 + $0xa0] sm:$0xff] %vm1545_vm4, %v1394_v12  ;;  %v2548_v14 = vpop.permute.xlu0 %2547  ;;  %v3553_v16 = vld [vmem:[#allocation3 + $0x88] sm:$0xff] }
 0x2a3   :  { %1796 = vrot.lane.b32.xlu1 %v2793_v7, %s4703_s12  ;;  %2721 = vst.msk [vmem:[#allocation3 + $0x98] sm:$0xff] %vm2701_vm7, %v2548_v14  ;;  %4550 = vmatmul.mubr.f32.gmra.mxu0 %v3553_v16 }
 0x2a4   :  { %1828 = vrot.lane.b32.xlu0 %v1655_v13, %s4703_s12  ;;  %v2812_v13 = vld [vmem:[#allocation2 + $0x289] sm:$0xff] }
 0x2a5   :  { %v2931_v19 = vpop.permute.xlu1 %2930 }
 0x2a6   :  { %3105 = vst.msk [vmem:[#allocation3 + $0x90] sm:$0xff] %vm3086_vm8, %v2931_v19  ;;  %v1396_v20 = vpop.permute.xlu0 %1395 }
 0x2a7   :  { %2179 = vrot.lane.b32.xlu1 %v3177_v9, %s4704_s17  ;;  %1567 = vst.msk [vmem:[#allocation3 + $0xa8] sm:$0xff] %vm1545_vm4, %v1396_v20  ;;  %v2797_v20 = vld [vmem:[#allocation2 + $0x1a1] sm:$0xff] }
 0x2a8   :  { %2211 = vrot.lane.b32.xlu0 %v2039_v17, %s4704_s17 }
 0x2a9   :  { %v1779_v21 = vpop.permute.xlu1 %1778 }
 0x2aa   :  { %1951 = vst.msk [vmem:[#allocation3 + $0xa0] sm:$0xff] %vm1930_vm5, %v1779_v21  ;;  %v2933_v24 = vpop.permute.xlu0 %2932  ;;  %v2813_v21 = vld [vmem:[#allocation2 + $0x291] sm:$0xff] }
 0x2ab   :  { %3333 = vrot.lane.b32.xlu1 %v3178_v50, %s4707_s18  ;;  %3106 = vst.msk [vmem:[#allocation3 + $0x98] sm:$0xff] %vm3086_vm8, %v2933_v24 }
 0x2ac   :  { %2181 = vrot.lane.b32.xlu0 %v3178_v50, %s4704_s17 }
 0x2ad   :  { %v3316_v34 = vpop.permute.xlu1 %3315 }
 0x2ae   :  { %3490 = vst.msk [vmem:[#allocation3 + $0x90] sm:$0xff] %vm3471_vm9, %v3316_v34  ;;  %v1781_v33 = vpop.permute.xlu0 %1780 }
 0x2af   :  { %2213 = vrot.lane.b32.xlu1 %v2040_v25, %s4704_s17  ;;  %1952 = vst.msk [vmem:[#allocation3 + $0xa8] sm:$0xff] %vm1930_vm5, %v1781_v33  ;;  %v3181_v25 = vld [vmem:[#allocation2 + $0x19a] sm:$0xff] }
 0x2b0   :  { %2565 = vrot.lane.b32.xlu0 %v2409_v31, %s4705_s23 }
 0x2b1   :  { %v2164_v35 = vpop.permute.xlu1 %2163 }
 0x2b2   :  { %2336 = vst.msk [vmem:[#allocation3 + $0xa0] sm:$0xff] %vm2315_vm6, %v2164_v35  ;;  %v3318_v22 = vpop.permute.xlu0 %3317 }
 0x2b3   :  { %2597 = vrot.lane.b32.xlu1 %v2425_v36, %s4705_s23  ;;  %3491 = vst.msk [vmem:[#allocation3 + $0x98] sm:$0xff] %vm3471_vm9, %v3318_v22  ;;  %v3182_v22 = vld [vmem:[#allocation2 + $0x1a2] sm:$0xff] }
 0x2b4   :  { %1413 = vrot.lane.b32.xlu0 %v2409_v31, %s4702_s7  ;;  %v3197_v31 = vld [vmem:[#allocation2 + $0x28a] sm:$0xff] }
 0x2b5   :  { %v2166_v37 = vpop.permute.xlu1 %2165  ;;  %v3554_v39 = vld [vmem:[#allocation3 + $0x90] sm:$0xff] }
 0x2b6   :  { %2337 = vst.msk [vmem:[#allocation3 + $0xa8] sm:$0xff] %vm2315_vm6, %v2166_v37  ;;  %4552 = vmatprep.mubr.f32.mxu0 %v3554_v39  ;;  %v2550_v43 = vpop.permute.xlu0 %2549 }
 0x2b7   :  { %1445 = vrot.lane.b32.xlu1 %v2425_v36, %s4702_s7  ;;  %2722 = vst.msk [vmem:[#allocation3 + $0xa0] sm:$0xff] %vm2701_vm7, %v2550_v43 }
 0x2b8   :  { %2567 = vrot.lane.b32.xlu0 %v2410_v41, %s4705_s23 }
 0x2b9   :  { %v1398_v23 = vpop.permute.xlu1 %1397 }
 0x2ba   :  { %1568 = vst.msk [vmem:[#allocation3 + $0xb0] sm:$0xff] %vm1545_vm4, %v1398_v23  ;;  %v2552_v49 = vpop.permute.xlu0 %2551  ;;  %v3555_v51 = vld [vmem:[#allocation3 + $0x98] sm:$0xff]  ;;  %v2429_v23 = vld [vmem:[#allocation2 + $0x2a0] sm:$0xff] }
 0x2bb   :  { %2599 = vrot.lane.b32.xlu1 %v2426_v45, %s4705_s23  ;;  %2723 = vst.msk [vmem:[#allocation3 + $0xa8] sm:$0xff] %vm2701_vm7, %v2552_v49  ;;  %4553 = vmatmul.mubr.f32.gmra.mxu0 %v3555_v51 }
 0x2bc   :  { %2950 = vrot.lane.b32.xlu0 %v2794_v47, %s4706_s30 }
 0x2bd   :  { %v2935_v52 = vpop.permute.xlu1 %2934 }
 0x2be   :  { %3107 = vst.msk [vmem:[#allocation3 + $0xa0] sm:$0xff] %vm3086_vm8, %v2935_v52  ;;  %v1400_v53 = vpop.permute.xlu0 %1399 }
 0x2bf   :  { %2982 = vrot.lane.b32.xlu1 %v2810_v38, %s4706_s30  ;;  %1569 = vst.msk [vmem:[#allocation3 + $0xb8] sm:$0xff] %vm1545_vm4, %v1400_v53  ;;  %v2814_v53 = vld [vmem:[#allocation2 + $0x2a1] sm:$0xff] }
 0x2c0   :  { %1415 = vrot.lane.b32.xlu0 %v2410_v41, %s4702_s7  ;;  %v3198_v41 = vld [vmem:[#allocation2 + $0x292] sm:$0xff] }
 0x2c1   :  { %v1783_v40 = vpop.permute.xlu1 %1782 }
 0x2c2   :  { %1953 = vst.msk [vmem:[#allocation3 + $0xb0] sm:$0xff] %vm1930_vm5, %v1783_v40  ;;  %v2937_v54 = vpop.permute.xlu0 %2936 }
 0x2c3   :  { %1447 = vrot.lane.b32.xlu1 %v2426_v45, %s4702_s7  ;;  %3108 = vst.msk [vmem:[#allocation3 + $0xa8] sm:$0xff] %vm3086_vm8, %v2937_v54 }
 0x2c4   :  { %1798 = vrot.lane.b32.xlu0 %v2794_v47, %s4703_s12 }
 0x2c5   :  { %v3320_v26 = vpop.permute.xlu1 %3319 }
 0x2c6   :  { %3492 = vst.msk [vmem:[#allocation3 + $0xa0] sm:$0xff] %vm3471_vm9, %v3320_v26  ;;  %v1785_v56 = vpop.permute.xlu0 %1784 }
 0x2c7   :  { %1830 = vrot.lane.b32.xlu1 %v2810_v38, %s4703_s12  ;;  %1954 = vst.msk [vmem:[#allocation3 + $0xb8] sm:$0xff] %vm1930_vm5, %v1785_v56  ;;  %v2430_v38 = vld [vmem:[#allocation2 + $0x2a8] sm:$0xff] }
 0x2c8   :  { %2952 = vrot.lane.b32.xlu0 %v2795_v55, %s4706_s30 }
 0x2c9   :  { %v2168_v58 = vpop.permute.xlu1 %2167 }
 0x2ca   :  { %2338 = vst.msk [vmem:[#allocation3 + $0xb0] sm:$0xff] %vm2315_vm6, %v2168_v58  ;;  %v3322_v59 = vpop.permute.xlu0 %3321 }
 0x2cb   :  { %2984 = vrot.lane.b32.xlu1 %v2811_v57, %s4706_s30  ;;  %3493 = vst.msk [vmem:[#allocation3 + $0xa8] sm:$0xff] %vm3471_vm9, %v3322_v59 }
 0x2cc   :  { %3335 = vrot.lane.b32.xlu0 %v3179_v27, %s4707_s18 }
 0x2cd   :  { %v2170_v15 = vpop.permute.xlu1 %2169  ;;  %v3556_v42 = vld [vmem:[#allocation3 + $0xa0] sm:$0xff] }
 0x2ce   :  { %2339 = vst.msk [vmem:[#allocation3 + $0xb8] sm:$0xff] %vm2315_vm6, %v2170_v15  ;;  %4555 = vmatprep.mubr.f32.mxu0 %v3556_v42  ;;  %v2554_v60 = vpop.permute.xlu0 %2553 }
 0x2cf   :  { %3367 = vrot.lane.b32.xlu1 %v3195_v10, %s4707_s18  ;;  %2724 = vst.msk [vmem:[#allocation3 + $0xb0] sm:$0xff] %vm2701_vm7, %v2554_v60  ;;  %v2431_v60 = vld [vmem:[#allocation2 + $0x2b8] sm:$0xff] }
 0x2d0   :  { %1800 = vrot.lane.b32.xlu0 %v2795_v55, %s4703_s12  ;;  %v2815_v55 = vld [vmem:[#allocation2 + $0x2a9] sm:$0xff] }
 0x2d1   :  { %v1402_v61 = vpop.permute.xlu1 %1401 }
 0x2d2   :  { %1570 = vst.msk [vmem:[#allocation3 + $0xc0] sm:$0xff] %vm1545_vm4, %v1402_v61  ;;  %v2556_v44 = vpop.permute.xlu0 %2555  ;;  %v3557_v62 = vld [vmem:[#allocation3 + $0xa8] sm:$0xff] }
 0x2d3   :  { %1832 = vrot.lane.b32.xlu1 %v2811_v57, %s4703_s12  ;;  %2725 = vst.msk [vmem:[#allocation3 + $0xb8] sm:$0xff] %vm2701_vm7, %v2556_v44  ;;  %4556 = vmatmul.mubr.f32.gmra.mxu0 %v3557_v62  ;;  %v3199_v57 = vld [vmem:[#allocation2 + $0x2a2] sm:$0xff] }
 0x2d4   :  { %2183 = vrot.lane.b32.xlu0 %v3179_v27, %s4704_s17 }
 0x2d5   :  { %v2939_v28 = vpop.permute.xlu1 %2938 }
 0x2d6   :  { %3109 = vst.msk [vmem:[#allocation3 + $0xb0] sm:$0xff] %vm3086_vm8, %v2939_v28  ;;  %v1404_v0 = vpop.permute.xlu0 %1403  ;;  %v2432_v28 = vld [vmem:[#allocation2 + $0x2c0] sm:$0xff] }
 0x2d7   :  { %2215 = vrot.lane.b32.xlu1 %v3195_v10, %s4704_s17  ;;  %1571 = vst.msk [vmem:[#allocation3 + $0xc8] sm:$0xff] %vm1545_vm4, %v1404_v0  ;;  %v3200_v10 = vld [vmem:[#allocation2 + $0x2aa] sm:$0xff]  ;;  %v2816_v0 = vld [vmem:[#allocation2 + $0x2b9] sm:$0xff] }
 0x2d8   :  { %3337 = vrot.lane.b32.xlu0 %v3180_v63, %s4707_s18 }
 0x2d9   :  { %v1787_v30 = vpop.permute.xlu1 %1786 }
 0x2da   :  { %1955 = vst.msk [vmem:[#allocation3 + $0xc0] sm:$0xff] %vm1930_vm5, %v1787_v30  ;;  %v2941_v29 = vpop.permute.xlu0 %2940 }
 0x2db   :  { %3369 = vrot.lane.b32.xlu1 %v3196_v1, %s4707_s18  ;;  %3110 = vst.msk [vmem:[#allocation3 + $0xb8] sm:$0xff] %vm3086_vm8, %v2941_v29 }
 0x2dc   :  { %2185 = vrot.lane.b32.xlu0 %v3180_v63, %s4704_s17 }
 0x2dd   :  { %v3324_v32 = vpop.permute.xlu1 %3323 }
 0x2de   :  { %3494 = vst.msk [vmem:[#allocation3 + $0xb0] sm:$0xff] %vm3471_vm9, %v3324_v32  ;;  %v1789_v4 = vpop.permute.xlu0 %1788 }
 0x2df   :  { %2217 = vrot.lane.b32.xlu1 %v3196_v1, %s4704_s17  ;;  %1956 = vst.msk [vmem:[#allocation3 + $0xc8] sm:$0xff] %vm1930_vm5, %v1789_v4 }
 0x2e0   :  { %2569 = vrot.lane.b32.xlu0 %v2411_v3, %s4705_s23  ;;  %v2817_v3 = vld [vmem:[#allocation2 + $0x2c1] sm:$0xff] }
 0x2e1   :  { %v2172_v46 = vpop.permute.xlu1 %2171 }
 0x2e2   :  { %2340 = vst.msk [vmem:[#allocation3 + $0xc0] sm:$0xff] %vm2315_vm6, %v2172_v46  ;;  %v3326_v6 = vpop.permute.xlu0 %3325 }
 0x2e3   :  { %2601 = vrot.lane.b32.xlu1 %v2427_v5, %s4705_s23  ;;  %3495 = vst.msk [vmem:[#allocation3 + $0xb8] sm:$0xff] %vm3471_vm9, %v3326_v6 }
 0x2e4   :  { %1449 = vrot.lane.b32.xlu0 %v2427_v5, %s4702_s7  ;;  %v3201_v5 = vld [vmem:[#allocation2 + $0x2ba] sm:$0xff] }
 0x2e5   :  { %v2174_v7 = vpop.permute.xlu1 %2173  ;;  %v3558_v48 = vld [vmem:[#allocation3 + $0xb0] sm:$0xff] }
 0x2e6   :  { %2341 = vst.msk [vmem:[#allocation3 + $0xc8] sm:$0xff] %vm2315_vm6, %v2174_v7  ;;  %4558 = vmatprep.mubr.f32.mxu0 %v3558_v48  ;;  %v2558_v9 = vpop.permute.xlu0 %2557  ;;  %v3202_v7 = vld [vmem:[#allocation2 + $0x2c2] sm:$0xff] }
 0x2e7   :  { %2571 = vrot.lane.b32.xlu1 %v2412_v18, %s4705_s23  ;;  %2726 = vst.msk [vmem:[#allocation3 + $0xc0] sm:$0xff] %vm2701_vm7, %v2558_v9 }
 0x2e8   :  { %2603 = vrot.lane.b32.xlu0 %v2428_v8, %s4705_s23 }
 0x2e9   :  { %v1406_v12 = vpop.permute.xlu1 %1405 }
 0x2ea   :  { %1572 = vst.msk [vmem:[#allocation3 + $0xd0] sm:$0xff] %vm1545_vm4, %v1406_v12  ;;  %v2560_v14 = vpop.permute.xlu0 %2559  ;;  %v3559_v16 = vld [vmem:[#allocation3 + $0xb8] sm:$0xff] }
 0x2eb   :  { %2954 = vrot.lane.b32.xlu1 %v2796_v11, %s4706_s30  ;;  %2727 = vst.msk [vmem:[#allocation3 + $0xc8] sm:$0xff] %vm2701_vm7, %v2560_v14  ;;  %4559 = vmatmul.mubr.f32.gmra.mxu0 %v3559_v16  ;;  %v2433_v11 = vld [vmem:[#allocation2 + $0x2d0] sm:$0xff]  ;;  %v2434_v16 = vld [vmem:[#allocation2 + $0x2d8] sm:$0xff] }
 0x2ec   :  { %2986 = vrot.lane.b32.xlu0 %v2812_v13, %s4706_s30 }
 0x2ed   :  { %v2943_v19 = vpop.permute.xlu1 %2942 }
 0x2ee   :  { %3111 = vst.msk [vmem:[#allocation3 + $0xc0] sm:$0xff] %vm3086_vm8, %v2943_v19  ;;  %v1408_v17 = vpop.permute.xlu0 %1407 }
 0x2ef   :  { %1451 = vrot.lane.b32.xlu1 %v2428_v8, %s4702_s7  ;;  %1573 = vst.msk [vmem:[#allocation3 + $0xd8] sm:$0xff] %vm1545_vm4, %v1408_v17  ;;  %v2818_v17 = vld [vmem:[#allocation2 + $0x2d1] sm:$0xff] }
 0x2f0   :  { %1834 = vrot.lane.b32.xlu0 %v2812_v13, %s4703_s12 }
 0x2f1   :  { %v1791_v50 = vpop.permute.xlu1 %1790 }
 0x2f2   :  { %1957 = vst.msk [vmem:[#allocation3 + $0xd0] sm:$0xff] %vm1930_vm5, %v1791_v50  ;;  %v2945_v24 = vpop.permute.xlu0 %2944 }
 0x2f3   :  { %2956 = vrot.lane.b32.xlu1 %v2797_v20, %s4706_s30  ;;  %3112 = vst.msk [vmem:[#allocation3 + $0xc8] sm:$0xff] %vm3086_vm8, %v2945_v24  ;;  %v2819_v24 = vld [vmem:[#allocation2 + $0x2d9] sm:$0xff] }
 0x2f4   :  { %2988 = vrot.lane.b32.xlu0 %v2813_v21, %s4706_s30 }
 0x2f5   :  { %v3328_v34 = vpop.permute.xlu1 %3327 }
 0x2f6   :  { %3496 = vst.msk [vmem:[#allocation3 + $0xc0] sm:$0xff] %vm3471_vm9, %v3328_v34  ;;  %v1793_v33 = vpop.permute.xlu0 %1792  ;;  %v3203_v34 = vld [vmem:[#allocation2 + $0x2d2] sm:$0xff] }
 0x2f7   :  { %3339 = vrot.lane.b32.xlu1 %v3181_v25, %s4707_s18  ;;  %1958 = vst.msk [vmem:[#allocation3 + $0xd8] sm:$0xff] %vm1930_vm5, %v1793_v33 }
 0x2f8   :  { %3371 = vrot.lane.b32.xlu0 %v3197_v31, %s4707_s18 }
 0x2f9   :  { %v2176_v36 = vpop.permute.xlu1 %2175 }
 0x2fa   :  { %2342 = vst.msk [vmem:[#allocation3 + $0xd0] sm:$0xff] %vm2315_vm6, %v2176_v36  ;;  %v3330_v35 = vpop.permute.xlu0 %3329 }
 0x2fb   :  { %1836 = vrot.lane.b32.xlu1 %v2813_v21, %s4703_s12  ;;  %3497 = vst.msk [vmem:[#allocation3 + $0xc8] sm:$0xff] %vm3471_vm9, %v3330_v35 }
 0x2fc   :  { %2219 = vrot.lane.b32.xlu0 %v3197_v31, %s4704_s17 }
 0x2fd   :  { %v2178_v37 = vpop.permute.xlu1 %2177  ;;  %v3560_v39 = vld [vmem:[#allocation3 + $0xc0] sm:$0xff] }
 0x2fe   :  { %2343 = vst.msk [vmem:[#allocation3 + $0xd8] sm:$0xff] %vm2315_vm6, %v2178_v37  ;;  %4561 = vmatprep.mubr.f32.mxu0 %v3560_v39  ;;  %v2562_v43 = vpop.permute.xlu0 %2561  ;;  %v3204_v37 = vld [vmem:[#allocation2 + $0x2da] sm:$0xff] }
 0x2ff   :  { %3341 = vrot.lane.b32.xlu1 %v3182_v22, %s4707_s18  ;;  %2728 = vst.msk [vmem:[#allocation3 + $0xd0] sm:$0xff] %vm2701_vm7, %v2562_v43 }
 0x300   :  { %3373 = vrot.lane.b32.xlu0 %v3198_v41, %s4707_s18 }
 0x301   :  { %v1410_v45 = vpop.permute.xlu1 %1409 }
 0x302   :  { %1574 = vst.msk [vmem:[#allocation3 + $0xe0] sm:$0xff] %vm1545_vm4, %v1410_v45  ;;  %v1442_v47 = vpop.permute.xlu0 %1441  ;;  %v3561_v49 = vld [vmem:[#allocation3 + $0xc8] sm:$0xff] }
 0x303   :  { %2221 = vrot.lane.b32.xlu1 %v3198_v41, %s4704_s17  ;;  %1590 = vst.msk [vmem:[#allocation3 + $0x160] sm:$0xff] %vm1545_vm4, %v1442_v47  ;;  %4562 = vmatmul.mubr.f32.gmra.mxu0 %v3561_v49  ;;  %v2435_v45 = vld [vmem:[#allocation2 + $0x2e8] sm:$0xff] }
 0x304   :  { %2605 = vrot.lane.b32.xlu0 %v2429_v23, %s4705_s23 }
 0x305   :  { %v2564_v51 = vpop.permute.xlu1 %2563 }
 0x306   :  { %2729 = vst.msk [vmem:[#allocation3 + $0xd8] sm:$0xff] %vm2701_vm7, %v2564_v51  ;;  %v2947_v52 = vpop.permute.xlu0 %2946 }
 0x307   :  { %1453 = vrot.lane.b32.xlu1 %v2429_v23, %s4702_s7  ;;  %3113 = vst.msk [vmem:[#allocation3 + $0xd0] sm:$0xff] %vm3086_vm8, %v2947_v52  ;;  %v196_v52 = vld [vmem:[%s6738_s0 + $0x1f0] sm:$0xff] }
 0x308   :  { %2607 = vrot.lane.b32.xlu0 %v2430_v38, %s4705_s23  ;;  %261 = vst.msk [vmem:[#allocation2 + $0x331] sm:$0xff] %vm24_vm0, %v196_v52  ;;  %v3183_v52 = vld [vmem:[#allocation2 + $0x1e2] sm:$0xff] }
 0x309   :  { %v1412_v40 = vpop.permute.xlu1 %1411 }
 0x30a   :  { %1575 = vst.msk [vmem:[#allocation3 + $0xe8] sm:$0xff] %vm1545_vm4, %v1412_v40  ;;  %v1444_v54 = vpop.permute.xlu0 %1443 }
 0x30b   :  { %2990 = vrot.lane.b32.xlu1 %v2814_v53, %s4706_s30  ;;  %1591 = vst.msk [vmem:[#allocation3 + $0x168] sm:$0xff] %vm1545_vm4, %v1444_v54  ;;  %v2820_v54 = vld [vmem:[#allocation2 + $0x2e9] sm:$0xff] }
 0x30c   :  { %1455 = vrot.lane.b32.xlu0 %v2430_v38, %s4702_s7 }
 0x30d   :  { %v1795_v26 = vpop.permute.xlu1 %1794 }
 0x30e   :  { %1959 = vst.msk [vmem:[#allocation3 + $0xe0] sm:$0xff] %vm1930_vm5, %v1795_v26  ;;  %v1827_v56 = vpop.permute.xlu0 %1826 }
 0x30f   :  { %1838 = vrot.lane.b32.xlu1 %v2814_v53, %s4703_s12  ;;  %1975 = vst.msk [vmem:[#allocation3 + $0x160] sm:$0xff] %vm1930_vm5, %v1827_v56  ;;  %v2436_v53 = vld [vmem:[#allocation2 + $0x2f0] sm:$0xff] }
 0x310   :  { %2992 = vrot.lane.b32.xlu0 %v2815_v55, %s4706_s30 }
 0x311   :  { %v2949_v58 = vpop.permute.xlu1 %2948 }
 0x312   :  { %3114 = vst.msk [vmem:[#allocation3 + $0xd8] sm:$0xff] %vm3086_vm8, %v2949_v58  ;;  %v3332_v27 = vpop.permute.xlu0 %3331 }
 0x313   :  { %3375 = vrot.lane.b32.xlu1 %v3199_v57, %s4707_s18  ;;  %3498 = vst.msk [vmem:[#allocation3 + $0xd0] sm:$0xff] %vm3471_vm9, %v3332_v27  ;;  %v2821_v27 = vld [vmem:[#allocation2 + $0x2f1] sm:$0xff] }
 0x314   :  { %1840 = vrot.lane.b32.xlu0 %v2815_v55, %s4703_s12  ;;  %v1257_v55 = vld [vmem:[#allocation2 + $0x1c8] sm:$0xff] }
 0x315   :  { %v1797_v59 = vpop.permute.xlu1 %1796 }
 0x316   :  { %1960 = vst.msk [vmem:[#allocation3 + $0xe8] sm:$0xff] %vm1930_vm5, %v1797_v59  ;;  %v1829_v15 = vpop.permute.xlu0 %1828 }
 0x317   :  { %2223 = vrot.lane.b32.xlu1 %v3199_v57, %s4704_s17  ;;  %1976 = vst.msk [vmem:[#allocation3 + $0x168] sm:$0xff] %vm1930_vm5, %v1829_v15  ;;  %v3205_v15 = vld [vmem:[#allocation2 + $0x2ea] sm:$0xff] }
 0x318   :  { %3377 = vrot.lane.b32.xlu0 %v3200_v10, %s4707_s18 }
 0x319   :  { %v2180_v42 = vpop.permute.xlu1 %2179 }
 0x31a   :  { %2344 = vst.msk [vmem:[#allocation3 + $0xe0] sm:$0xff] %vm2315_vm6, %v2180_v42  ;;  %v2212_v61 = vpop.permute.xlu0 %2211  ;;  %v3562_v44 = vld [vmem:[#allocation3 + $0xd0] sm:$0xff] }
 0x31b   :  { %2225 = vrot.lane.b32.xlu1 %v3200_v10, %s4704_s17  ;;  %2360 = vst.msk [vmem:[#allocation3 + $0x160] sm:$0xff] %vm2315_vm6, %v2212_v61  ;;  %4564 = vmatprep.mubr.f32.mxu0 %v3562_v44  ;;  %v197_v10 = vld [vmem:[%s6738_s0 + $0x1f8] sm:$0xff]  ;;  %v1642_v44 = vld [vmem:[#allocation2 + $0x1c9] sm:$0xff] }
 0x31c   :  { %2609 = vrot.lane.b32.xlu0 %v2431_v60, %s4705_s23  ;;  %262 = vst.msk [vmem:[#allocation2 + $0x339] sm:$0xff] %vm24_vm0, %v197_v10  ;;  %v3184_v10 = vld [vmem:[#allocation2 + $0x1ea] sm:$0xff] }
 0x31d   :  { %v3334_v62 = vpop.permute.xlu1 %3333 }
 0x31e   :  { %3499 = vst.msk [vmem:[#allocation3 + $0xd8] sm:$0xff] %vm3471_vm9, %v3334_v62  ;;  %v2182_v63 = vpop.permute.xlu0 %2181 }
 0x31f   :  { %1457 = vrot.lane.b32.xlu1 %v2431_v60, %s4702_s7  ;;  %2345 = vst.msk [vmem:[#allocation3 + $0xe8] sm:$0xff] %vm2315_vm6, %v2182_v63  ;;  %v1258_v60 = vld [vmem:[#allocation2 + $0x1d0] sm:$0xff] }
 0x320   :  { %2611 = vrot.lane.b32.xlu0 %v2432_v28, %s4705_s23 }
 0x321   :  { %v2214_v1 = vpop.permute.xlu1 %2213 }
 0x322   :  { %2361 = vst.msk [vmem:[#allocation3 + $0x168] sm:$0xff] %vm2315_vm6, %v2214_v1  ;;  %v2566_v30 = vpop.permute.xlu0 %2565 }
 0x323   :  { %2994 = vrot.lane.b32.xlu1 %v2816_v0, %s4706_s30  ;;  %2730 = vst.msk [vmem:[#allocation3 + $0xe0] sm:$0xff] %vm2701_vm7, %v2566_v30 }
 0x324   :  { %1459 = vrot.lane.b32.xlu0 %v2432_v28, %s4702_s7 }
 0x325   :  { %v2598_v29 = vpop.permute.xlu1 %2597  ;;  %v3563_v32 = vld [vmem:[#allocation3 + $0xd8] sm:$0xff] }
 0x326   :  { %2746 = vst.msk [vmem:[#allocation3 + $0x160] sm:$0xff] %vm2701_vm7, %v2598_v29  ;;  %4565 = vmatmul.mubr.f32.gmra.mxu0 %v3563_v32  ;;  %v1414_v4 = vpop.permute.xlu0 %1413  ;;  %v1643_v29 = vld [vmem:[#allocation2 + $0x1d1] sm:$0xff] }
 0x327   :  { %1842 = vrot.lane.b32.xlu1 %v2816_v0, %s4703_s12  ;;  %1576 = vst.msk [vmem:[#allocation3 + $0xf0] sm:$0xff] %vm1545_vm4, %v1414_v4  ;;  %v3206_v0 = vld [vmem:[#allocation2 + $0x2f2] sm:$0xff]  ;;  %v2027_v4 = vld [vmem:[#allocation2 + $0x1ca] sm:$0xff] }
 0x328   :  { %2996 = vrot.lane.b32.xlu0 %v2817_v3, %s4706_s30 }
 0x329   :  { %v1446_v46 = vpop.permute.xlu1 %1445 }
 0x32a   :  { %1592 = vst.msk [vmem:[#allocation3 + $0x170] sm:$0xff] %vm1545_vm4, %v1446_v46  ;;  %v2568_v6 = vpop.permute.xlu0 %2567 }
 0x32b   :  { %3379 = vrot.lane.b32.xlu1 %v3201_v5, %s4707_s18  ;;  %2731 = vst.msk [vmem:[#allocation3 + $0xe8] sm:$0xff] %vm2701_vm7, %v2568_v6 }
 0x32c   :  { %1844 = vrot.lane.b32.xlu0 %v2817_v3, %s4703_s12 }
 0x32d   :  { %v2600_v18 = vpop.permute.xlu1 %2599 }
 0x32e   :  { %2747 = vst.msk [vmem:[#allocation3 + $0x168] sm:$0xff] %vm2701_vm7, %v2600_v18  ;;  %v2951_v48 = vpop.permute.xlu0 %2950  ;;  %v2437_v18 = vld [vmem:[#allocation2 + $0x300] sm:$0xff] }
 0x32f   :  { %2227 = vrot.lane.b32.xlu1 %v3201_v5, %s4704_s17  ;;  %3115 = vst.msk [vmem:[#allocation3 + $0xe0] sm:$0xff] %vm3086_vm8, %v2951_v48 }
 0x330   :  { %3381 = vrot.lane.b32.xlu0 %v3202_v7, %s4707_s18 }
 0x331   :  { %v2983_v8 = vpop.permute.xlu1 %2982 }
 0x332   :  { %3131 = vst.msk [vmem:[#allocation3 + $0x160] sm:$0xff] %vm3086_vm8, %v2983_v8  ;;  %v1416_v9 = vpop.permute.xlu0 %1415 }
 0x333   :  { %1076 = vrot.lane.b32.xlu1 %v3201_v5, %s4701_s25  ;;  %1577 = vst.msk [vmem:[#allocation3 + $0xf8] sm:$0xff] %vm1545_vm4, %v1416_v9 }
 0x334   :  { %2229 = vrot.lane.b32.xlu0 %v3202_v7, %s4704_s17 }
 0x335   :  { %v1448_v12 = vpop.permute.xlu1 %1447 }
 0x336   :  { %1593 = vst.msk [vmem:[#allocation3 + $0x178] sm:$0xff] %vm1545_vm4, %v1448_v12  ;;  %v1799_v13 = vpop.permute.xlu0 %1798  ;;  %v2028_v12 = vld [vmem:[#allocation2 + $0x1d2] sm:$0xff] }
 0x337   :  { %2613 = vrot.lane.b32.xlu1 %v2433_v11, %s4705_s23  ;;  %1961 = vst.msk [vmem:[#allocation3 + $0xf0] sm:$0xff] %vm1930_vm5, %v1799_v13 }
 0x338   :  { %1078 = vrot.lane.b32.xlu0 %v3202_v7, %s4701_s25 }
 0x339   :  { %v1831_v14 = vpop.permute.xlu1 %1830 }
 0x33a   :  { %1977 = vst.msk [vmem:[#allocation3 + $0x170] sm:$0xff] %vm1930_vm5, %v1831_v14  ;;  %v2953_v19 = vpop.permute.xlu0 %2952  ;;  %v2413_v14 = vld [vmem:[#allocation2 + $0x1e0] sm:$0xff] }
 0x33b   :  { %1461 = vrot.lane.b32.xlu1 %v2433_v11, %s4702_s7  ;;  %3116 = vst.msk [vmem:[#allocation3 + $0xe8] sm:$0xff] %vm3086_vm8, %v2953_v19  ;;  %v2438_v19 = vld [vmem:[#allocation2 + $0x308] sm:$0xff] }
 0x33c   :  { %2615 = vrot.lane.b32.xlu0 %v2434_v16, %s4705_s23 }
 0x33d   :  { %v2985_v20 = vpop.permute.xlu1 %2984 }
 0x33e   :  { %3132 = vst.msk [vmem:[#allocation3 + $0x168] sm:$0xff] %vm3086_vm8, %v2985_v20  ;;  %v3336_v50 = vpop.permute.xlu0 %3335  ;;  %v2822_v20 = vld [vmem:[#allocation2 + $0x301] sm:$0xff] }
 0x33f   :  { %2998 = vrot.lane.b32.xlu1 %v2818_v17, %s4706_s30  ;;  %3500 = vst.msk [vmem:[#allocation3 + $0xe0] sm:$0xff] %vm3471_vm9, %v3336_v50 }
 0x340   :  { %1463 = vrot.lane.b32.xlu0 %v2434_v16, %s4702_s7 }
 0x341   :  { %v3368_v21 = vpop.permute.xlu1 %3367 }
 0x342   :  { %3516 = vst.msk [vmem:[#allocation3 + $0x160] sm:$0xff] %vm3471_vm9, %v3368_v21  ;;  %v1801_v25 = vpop.permute.xlu0 %1800 }
 0x343   :  { %1846 = vrot.lane.b32.xlu1 %v2818_v17, %s4703_s12  ;;  %1962 = vst.msk [vmem:[#allocation3 + $0xf8] sm:$0xff] %vm1930_vm5, %v1801_v25 }
 0x344   :  { %3000 = vrot.lane.b32.xlu0 %v2819_v24, %s4706_s30 }
 0x345   :  { %v1833_v31 = vpop.permute.xlu1 %1832 }
 0x346   :  { %1978 = vst.msk [vmem:[#allocation3 + $0x178] sm:$0xff] %vm1930_vm5, %v1833_v31  ;;  %v2184_v33 = vpop.permute.xlu0 %2183  ;;  %v3564_v36 = vld [vmem:[#allocation3 + $0xe0] sm:$0xff] }
 0x347   :  { %3383 = vrot.lane.b32.xlu1 %v3203_v34, %s4707_s18  ;;  %2346 = vst.msk [vmem:[#allocation3 + $0xf0] sm:$0xff] %vm2315_vm6, %v2184_v33  ;;  %4567 = vmatprep.mubr.f32.mxu0 %v3564_v36  ;;  %v2798_v33 = vld [vmem:[#allocation2 + $0x1e1] sm:$0xff] }
 0x348   :  { %1848 = vrot.lane.b32.xlu0 %v2819_v24, %s4703_s12 }
 0x349   :  { %v2216_v35 = vpop.permute.xlu1 %2215  ;;  %v3580_v22 = vld [vmem:[#allocation3 + $0x160] sm:$0xff] }
 0x34a   :  { %2362 = vst.msk [vmem:[#allocation3 + $0x170] sm:$0xff] %vm2315_vm6, %v2216_v35  ;;  %4591 = vmatprep.mubr.f32.mxu1 %v3580_v22  ;;  %v3338_v39 = vpop.permute.xlu0 %3337  ;;  %v2823_v22 = vld [vmem:[#allocation2 + $0x309] sm:$0xff] }
 0x34b   :  { %2231 = vrot.lane.b32.xlu1 %v3203_v34, %s4704_s17  ;;  %3501 = vst.msk [vmem:[#allocation3 + $0xe8] sm:$0xff] %vm3471_vm9, %v3338_v39  ;;  %v3207_v39 = vld [vmem:[#allocation2 + $0x302] sm:$0xff] }
 0x34c   :  { %3385 = vrot.lane.b32.xlu0 %v3204_v37, %s4707_s18 }
 0x34d   :  { %v3370_v41 = vpop.permute.xlu1 %3369 }
 0x34e   :  { %3517 = vst.msk [vmem:[#allocation3 + $0x168] sm:$0xff] %vm3471_vm9, %v3370_v41  ;;  %v2186_v43 = vpop.permute.xlu0 %2185 }
 0x34f   :  { %1080 = vrot.lane.b32.xlu1 %v3203_v34, %s4701_s25  ;;  %2347 = vst.msk [vmem:[#allocation3 + $0xf8] sm:$0xff] %vm2315_vm6, %v2186_v43  ;;  %v2414_v34 = vld [vmem:[#allocation2 + $0x1e8] sm:$0xff] }
 0x350   :  { %2233 = vrot.lane.b32.xlu0 %v3204_v37, %s4704_s17 }
 0x351   :  { %v2218_v23 = vpop.permute.xlu1 %2217 }
 0x352   :  { %2363 = vst.msk [vmem:[#allocation3 + $0x178] sm:$0xff] %vm2315_vm6, %v2218_v23  ;;  %v2570_v47 = vpop.permute.xlu0 %2569  ;;  %v3565_v49 = vld [vmem:[#allocation3 + $0xe8] sm:$0xff] }
 0x353   :  { %2617 = vrot.lane.b32.xlu1 %v2435_v45, %s4705_s23  ;;  %2732 = vst.msk [vmem:[#allocation3 + $0xf0] sm:$0xff] %vm2701_vm7, %v2570_v47  ;;  %4568 = vmatmul.mubr.f32.gmra.mxu0 %v3565_v49 }
 0x354   :  { %1082 = vrot.lane.b32.xlu0 %v3204_v37, %s4701_s25 }
 0x355   :  { %v2602_v51 = vpop.permute.xlu1 %2601  ;;  %v3581_v38 = vld [vmem:[#allocation3 + $0x168] sm:$0xff] }
 0x356   :  { %2748 = vst.msk [vmem:[#allocation3 + $0x170] sm:$0xff] %vm2701_vm7, %v2602_v51  ;;  %4592 = vmatmul.mubr.f32.vlgmr.msra.gmra.mxu1 %v3581_v38  ;;  %v1450_v40 = vpop.permute.xlu0 %1449  ;;  %v2799_v51 = vld [vmem:[#allocation2 + $0x1e9] sm:$0xff] }
 0x357   :  { %1465 = vrot.lane.b32.xlu1 %v2435_v45, %s4702_s7  ;;  %1594 = vst.msk [vmem:[#allocation3 + $0x180] sm:$0xff] %vm1545_vm4, %v1450_v40  ;;  %v3208_v40 = vld [vmem:[#allocation2 + $0x30a] sm:$0xff] }
 0x358   :  { %2619 = vrot.lane.b32.xlu0 %v2436_v53, %s4705_s23 }
 0x359   :  { %v2572_v26 = vpop.permute.xlu1 %2571 }
 0x35a   :  { %2733 = vst.msk [vmem:[#allocation3 + $0xf8] sm:$0xff] %vm2701_vm7, %v2572_v26  ;;  %v2604_v56 = vpop.permute.xlu0 %2603 }
 0x35b   :  { %3002 = vrot.lane.b32.xlu1 %v2820_v54, %s4706_s30  ;;  %2749 = vst.msk [vmem:[#allocation3 + $0x178] sm:$0xff] %vm2701_vm7, %v2604_v56 }
 0x35c   :  { %1417 = vrot.lane.b32.xlu0 %v1257_v55, %s4702_s7 }
 0x35d   :  { %v2955_v57 = vpop.permute.xlu1 %2954 }
 0x35e   :  { %3117 = vst.msk [vmem:[#allocation3 + $0xf0] sm:$0xff] %vm3086_vm8, %v2955_v57  ;;  %v2987_v58 = vpop.permute.xlu0 %2986 }
 0x35f   :  { %1467 = vrot.lane.b32.xlu1 %v2436_v53, %s4702_s7  ;;  %3133 = vst.msk [vmem:[#allocation3 + $0x170] sm:$0xff] %vm3086_vm8, %v2987_v58 }
 0x360   :  { %1850 = vrot.lane.b32.xlu0 %v2820_v54, %s4703_s12 }
 0x361   :  { %v1452_v59 = vpop.permute.xlu1 %1451 }
 0x362   :  { %1595 = vst.msk [vmem:[#allocation3 + $0x188] sm:$0xff] %vm1545_vm4, %v1452_v59  ;;  %v1835_v42 = vpop.permute.xlu0 %1834 }
 0x363   :  { %3004 = vrot.lane.b32.xlu1 %v2821_v27, %s4706_s30  ;;  %1979 = vst.msk [vmem:[#allocation3 + $0x180] sm:$0xff] %vm1930_vm5, %v1835_v42 }
 0x364   :  { %3387 = vrot.lane.b32.xlu0 %v3205_v15, %s4707_s18 }
 0x365   :  { %v2957_v61 = vpop.permute.xlu1 %2956 }
 0x366   :  { %3118 = vst.msk [vmem:[#allocation3 + $0xf8] sm:$0xff] %vm3086_vm8, %v2957_v61  ;;  %v2989_v62 = vpop.permute.xlu0 %2988 }
 0x367   :  { %1419 = vrot.lane.b32.xlu1 %v1258_v60, %s4702_s7  ;;  %3134 = vst.msk [vmem:[#allocation3 + $0x178] sm:$0xff] %vm3086_vm8, %v2989_v62  ;;  %v2415_v62 = vld [vmem:[#allocation2 + $0x1f8] sm:$0xff] }
 0x368   :  { %1802 = vrot.lane.b32.xlu0 %v1642_v44, %s4703_s12 }
 0x369   :  { %v3340_v28 = vpop.permute.xlu1 %3339 }
 0x36a   :  { %3502 = vst.msk [vmem:[#allocation3 + $0xf0] sm:$0xff] %vm3471_vm9, %v3340_v28  ;;  %v3372_v63 = vpop.permute.xlu0 %3371 }
 0x36b   :  { %1852 = vrot.lane.b32.xlu1 %v2821_v27, %s4703_s12  ;;  %3518 = vst.msk [vmem:[#allocation3 + $0x170] sm:$0xff] %vm3471_vm9, %v3372_v63  ;;  %v2439_v27 = vld [vmem:[#allocation2 + $0x318] sm:$0xff]  ;;  %v2440_v63 = vld [vmem:[#allocation2 + $0x320] sm:$0xff] }
 0x36c   :  { %2235 = vrot.lane.b32.xlu0 %v3205_v15, %s4704_s17 }
 0x36d   :  { %v1837_v1 = vpop.permute.xlu1 %1836 }
 0x36e   :  { %1980 = vst.msk [vmem:[#allocation3 + $0x188] sm:$0xff] %vm1930_vm5, %v1837_v1  ;;  %v2220_v30 = vpop.permute.xlu0 %2219  ;;  %v2824_v1 = vld [vmem:[#allocation2 + $0x319] sm:$0xff] }
 0x36f   :  { %3389 = vrot.lane.b32.xlu1 %v3206_v0, %s4707_s18  ;;  %2364 = vst.msk [vmem:[#allocation3 + $0x180] sm:$0xff] %vm2315_vm6, %v2220_v30 }
 0x370   :  { %1084 = vrot.lane.b32.xlu0 %v3205_v15, %s4701_s25 }
 0x371   :  { %v3342_v32 = vpop.permute.xlu1 %3341  ;;  %v3566_v3 = vld [vmem:[#allocation3 + $0xf0] sm:$0xff] }
 0x372   :  { %3503 = vst.msk [vmem:[#allocation3 + $0xf8] sm:$0xff] %vm3471_vm9, %v3342_v32  ;;  %4570 = vmatprep.mubr.f32.mxu0 %v3566_v3  ;;  %v3374_v5 = vpop.permute.xlu0 %3373  ;;  %v3582_v46 = vld [vmem:[#allocation3 + $0x170] sm:$0xff] }
 0x373   :  { %1804 = vrot.lane.b32.xlu1 %v1643_v29, %s4703_s12  ;;  %3519 = vst.msk [vmem:[#allocation3 + $0x178] sm:$0xff] %vm3471_vm9, %v3374_v5  ;;  %4594 = vmatprep.mubr.f32.mxu1 %v3582_v46  ;;  %v2800_v46 = vld [vmem:[#allocation2 + $0x1f9] sm:$0xff] }
 0x374   :  { %2187 = vrot.lane.b32.xlu0 %v2027_v4, %s4704_s17  ;;  %v2416_v4 = vld [vmem:[#allocation2 + $0x200] sm:$0xff] }
 0x375   :  { %v2222_v6 = vpop.permute.xlu1 %2221 }
 0x376   :  { %2365 = vst.msk [vmem:[#allocation3 + $0x188] sm:$0xff] %vm2315_vm6, %v2222_v6  ;;  %v2606_v7 = vpop.permute.xlu0 %2605 }
 0x377   :  { %2237 = vrot.lane.b32.xlu1 %v3206_v0, %s4704_s17  ;;  %2750 = vst.msk [vmem:[#allocation3 + $0x180] sm:$0xff] %vm2701_vm7, %v2606_v7  ;;  %v2825_v7 = vld [vmem:[#allocation2 + $0x321] sm:$0xff] }
 0x378   :  { %2621 = vrot.lane.b32.xlu0 %v2437_v18, %s4705_s23 }
 0x379   :  { %v1454_v48 = vpop.permute.xlu1 %1453  ;;  %v3567_v8 = vld [vmem:[#allocation3 + $0xf8] sm:$0xff] }
 0x37a   :  { %1596 = vst.msk [vmem:[#allocation3 + $0x190] sm:$0xff] %vm1545_vm4, %v1454_v48  ;;  %4571 = vmatmul.mubr.f32.gmra.mxu0 %v3567_v8  ;;  %v2608_v9 = vpop.permute.xlu0 %2607  ;;  %v3583_v11 = vld [vmem:[#allocation3 + $0x178] sm:$0xff] }
 0x37b   :  { %1086 = vrot.lane.b32.xlu1 %v3206_v0, %s4701_s25  ;;  %2751 = vst.msk [vmem:[#allocation3 + $0x188] sm:$0xff] %vm2701_vm7, %v2608_v9  ;;  %4595 = vmatmul.mubr.f32.gmra.mxu1 %v3583_v11  ;;  %v3209_v8 = vld [vmem:[#allocation2 + $0x31a] sm:$0xff] }
 0x37c   :  { %1469 = vrot.lane.b32.xlu0 %v2437_v18, %s4702_s7 }
 0x37d   :  { %v2991_v13 = vpop.permute.xlu1 %2990 }
 0x37e   :  { %3135 = vst.msk [vmem:[#allocation3 + $0x180] sm:$0xff] %vm3086_vm8, %v2991_v13  ;;  %v1456_v16 = vpop.permute.xlu0 %1455 }
 0x37f   :  { %2189 = vrot.lane.b32.xlu1 %v2028_v12, %s4704_s17  ;;  %1597 = vst.msk [vmem:[#allocation3 + $0x198] sm:$0xff] %vm1545_vm4, %v1456_v16 }
 0x380   :  { %2573 = vrot.lane.b32.xlu0 %v2413_v14, %s4705_s23 }
 0x381   :  { %v1839_v17 = vpop.permute.xlu1 %1838 }
 0x382   :  { %1981 = vst.msk [vmem:[#allocation3 + $0x190] sm:$0xff] %vm1930_vm5, %v1839_v17  ;;  %v2993_v50 = vpop.permute.xlu0 %2992 }
 0x383   :  { %2623 = vrot.lane.b32.xlu1 %v2438_v19, %s4705_s23  ;;  %3136 = vst.msk [vmem:[#allocation3 + $0x188] sm:$0xff] %vm3086_vm8, %v2993_v50 }
 0x384   :  { %3006 = vrot.lane.b32.xlu0 %v2822_v20, %s4706_s30 }
 0x385   :  { %v3376_v21 = vpop.permute.xlu1 %3375 }
 0x386   :  { %3520 = vst.msk [vmem:[#allocation3 + $0x180] sm:$0xff] %vm3471_vm9, %v3376_v21  ;;  %v1841_v24 = vpop.permute.xlu0 %1840  ;;  %v3210_v21 = vld [vmem:[#allocation2 + $0x322] sm:$0xff] }
 0x387   :  { %1421 = vrot.lane.b32.xlu1 %v2413_v14, %s4702_s7  ;;  %1982 = vst.msk [vmem:[#allocation3 + $0x198] sm:$0xff] %vm1930_vm5, %v1841_v24 }
 0x388   :  { %1471 = vrot.lane.b32.xlu0 %v2438_v19, %s4702_s7  ;;  %v2801_v19 = vld [vmem:[#allocation2 + $0x201] sm:$0xff] }
 0x389   :  { %v2224_v25 = vpop.permute.xlu1 %2223 }
 0x38a   :  { %2366 = vst.msk [vmem:[#allocation3 + $0x190] sm:$0xff] %vm2315_vm6, %v2224_v25  ;;  %v3378_v31 = vpop.permute.xlu0 %3377 }
 0x38b   :  { %1854 = vrot.lane.b32.xlu1 %v2822_v20, %s4703_s12  ;;  %3521 = vst.msk [vmem:[#allocation3 + $0x188] sm:$0xff] %vm3471_vm9, %v3378_v31  ;;  %v3185_v20 = vld [vmem:[#allocation2 + $0x1fa] sm:$0xff] }
 0x38c   :  { %2575 = vrot.lane.b32.xlu0 %v2414_v34, %s4705_s23 }
 0x38d   :  { %v2226_v36 = vpop.permute.xlu1 %2225  ;;  %v3584_v35 = vld [vmem:[#allocation3 + $0x180] sm:$0xff] }
 0x38e   :  { %2367 = vst.msk [vmem:[#allocation3 + $0x198] sm:$0xff] %vm2315_vm6, %v2226_v36  ;;  %4597 = vmatprep.mubr.f32.mxu1 %v3584_v35  ;;  %v2610_v37 = vpop.permute.xlu0 %2609  ;;  %v2441_v36 = vld [vmem:[#allocation2 + $0x330] sm:$0xff] }
 0x38f   :  { %2958 = vrot.lane.b32.xlu1 %v2798_v33, %s4706_s30  ;;  %2752 = vst.msk [vmem:[#allocation3 + $0x190] sm:$0xff] %vm2701_vm7, %v2610_v37  ;;  %v6354_v37 = vpop.f32.mrf.mxu0 }
 0x390   :  { %3008 = vrot.lane.b32.xlu0 %v2823_v22, %s4706_s30 }
 0x391   :  { %v1458_v41 = vpop.permute.xlu1 %1457 }
 0x392   :  { %1598 = vst.msk [vmem:[#allocation3 + $0x1a0] sm:$0xff] %vm1545_vm4, %v1458_v41  ;;  %v2612_v43 = vpop.permute.xlu0 %2611  ;;  %v3585_v45 = vld [vmem:[#allocation3 + $0x188] sm:$0xff] }
 0x393   :  { %3391 = vrot.lane.b32.xlu1 %v3207_v39, %s4707_s18  ;;  %2753 = vst.msk [vmem:[#allocation3 + $0x198] sm:$0xff] %vm2701_vm7, %v2612_v43  ;;  %4598 = vmatmul.mubr.f32.gmra.mxu1 %v3585_v45  ;;  %v6360_v45 = vpop.f32.mrf.mxu0 }
 0x394   :  { %1423 = vrot.lane.b32.xlu0 %v2414_v34, %s4702_s7 }
 0x395   :  { %v2995_v23 = vpop.permute.xlu1 %2994 }
 0x396   :  { %3137 = vst.msk [vmem:[#allocation3 + $0x190] sm:$0xff] %vm3086_vm8, %v2995_v23  ;;  %v1460_v47 = vpop.permute.xlu0 %1459 }
 0x397   :  { %1806 = vrot.lane.b32.xlu1 %v2798_v33, %s4703_s12  ;;  %1599 = vst.msk [vmem:[#allocation3 + $0x1a8] sm:$0xff] %vm1545_vm4, %v1460_v47 }
 0x398   :  { %1856 = vrot.lane.b32.xlu0 %v2823_v22, %s4703_s12  ;;  %v3186_v22 = vld [vmem:[#allocation2 + $0x202] sm:$0xff] }
 0x399   :  { %v1843_v49 = vpop.permute.xlu1 %1842 }
 0x39a   :  { %1983 = vst.msk [vmem:[#allocation3 + $0x1a0] sm:$0xff] %vm1930_vm5, %v1843_v49  ;;  %v2997_v38 = vpop.permute.xlu0 %2996  ;;  %v6363_v49 = vpop.f32.mrf.mxu0 }
 0x39b   :  { %2239 = vrot.lane.b32.xlu1 %v3207_v39, %s4704_s17  ;;  %3138 = vst.msk [vmem:[#allocation3 + $0x198] sm:$0xff] %vm3086_vm8, %v2997_v38 }
 0x39c   :  { %2960 = vrot.lane.b32.xlu0 %v2799_v51, %s4706_s30 }
 0x39d   :  { %v3380_v53 = vpop.permute.xlu1 %3379 }
 0x39e   :  { %3522 = vst.msk [vmem:[#allocation3 + $0x190] sm:$0xff] %vm3471_vm9, %v3380_v53  ;;  %v1845_v54 = vpop.permute.xlu0 %1844 }
 0x39f   :  { %3343 = vrot.lane.b32.xlu1 %v3183_v52, %s4707_s18  ;;  %1984 = vst.msk [vmem:[#allocation3 + $0x1a8] sm:$0xff] %vm1930_vm5, %v1845_v54  ;;  %v6369_v54 = vpop.f32.mrf.mxu0 }
 0x3a0   :  { %3393 = vrot.lane.b32.xlu0 %v3208_v40, %s4707_s18 }
 0x3a1   :  { %v2228_v26 = vpop.permute.xlu1 %2227 }
 0x3a2   :  { %2368 = vst.msk [vmem:[#allocation3 + $0x1a0] sm:$0xff] %vm2315_vm6, %v2228_v26  ;;  %v3382_v55 = vpop.permute.xlu0 %3381  ;;  %v2826_v26 = vld [vmem:[#allocation2 + $0x331] sm:$0xff] }
 0x3a3   :  { %1088 = vrot.lane.b32.xlu1 %v3207_v39, %s4701_s25  ;;  %3523 = vst.msk [vmem:[#allocation3 + $0x198] sm:$0xff] %vm3471_vm9, %v3382_v55  ;;  %v6374_v55 = vpop.f32.mrf.mxu0 }
 0x3a4   :  { %1808 = vrot.lane.b32.xlu0 %v2799_v51, %s4703_s12  ;;  %v2417_v51 = vld [vmem:[#allocation2 + $0x210] sm:$0xff] }
 0x3a5   :  { %v1077_v56 = vpop.permute.xlu1 %1076  ;;  %v3586_v57 = vld [vmem:[#allocation3 + $0x190] sm:$0xff] }
 0x3a6   :  { %1215 = vst.msk [vmem:[#allocation3 + $0x1b0] sm:$0xff] %vm1160_vm3, %v1077_v56  ;;  %4600 = vmatprep.mubr.f32.mxu1 %v3586_v57  ;;  %v2230_v58 = vpop.permute.xlu0 %2229 }
 0x3a7   :  { %2191 = vrot.lane.b32.xlu1 %v3183_v52, %s4704_s17  ;;  %2369 = vst.msk [vmem:[#allocation3 + $0x1a8] sm:$0xff] %vm2315_vm6, %v2230_v58  ;;  %v2442_v52 = vld [vmem:[#allocation2 + $0x338] sm:$0xff]  ;;  %v6380_v58 = vpop.f32.mrf.mxu0 }
 0x3a8   :  { %2241 = vrot.lane.b32.xlu0 %v3208_v40, %s4704_s17 }
 0x3a9   :  { %v2614_v59 = vpop.permute.xlu1 %2613 }
 0x3aa   :  { %2754 = vst.msk [vmem:[#allocation3 + $0x1a0] sm:$0xff] %vm2701_vm7, %v2614_v59  ;;  %v1079_v15 = vpop.permute.xlu0 %1078  ;;  %v3587_v42 = vld [vmem:[#allocation3 + $0x198] sm:$0xff] }
 0x3ab   :  { %2625 = vrot.lane.b32.xlu1 %v2439_v27, %s4705_s23  ;;  %1216 = vst.msk [vmem:[#allocation3 + $0x1b8] sm:$0xff] %vm1160_vm3, %v1079_v15  ;;  %4601 = vmatmul.mubr.f32.gmra.mxu1 %v3587_v42  ;;  %v2418_v15 = vld [vmem:[#allocation2 + $0x218] sm:$0xff] }
 0x3ac   :  { %3345 = vrot.lane.b32.xlu0 %v3184_v10, %s4707_s18 }
 0x3ad   :  { %v1462_v60 = vpop.permute.xlu1 %1461 }
 0x3ae   :  { %1600 = vst.msk [vmem:[#allocation3 + $0x1b0] sm:$0xff] %vm1545_vm4, %v1462_v60  ;;  %v2616_v61 = vpop.permute.xlu0 %2615  ;;  %v2802_v60 = vld [vmem:[#allocation2 + $0x211] sm:$0xff] }
 0x3af   :  { %1090 = vrot.lane.b32.xlu1 %v3208_v40, %s4701_s25  ;;  %2755 = vst.msk [vmem:[#allocation3 + $0x1a8] sm:$0xff] %vm2701_vm7, %v2616_v61 }
 0x3b0   :  { %1473 = vrot.lane.b32.xlu0 %v2439_v27, %s4702_s7 }
 0x3b1   :  { %v2999_v44 = vpop.permute.xlu1 %2998 }
 0x3b2   :  { %3139 = vst.msk [vmem:[#allocation3 + $0x1a0] sm:$0xff] %vm3086_vm8, %v2999_v44  ;;  %v1464_v28 = vpop.permute.xlu0 %1463 }
 0x3b3   :  { %2193 = vrot.lane.b32.xlu1 %v3184_v10, %s4704_s17  ;;  %1601 = vst.msk [vmem:[#allocation3 + $0x1b8] sm:$0xff] %vm1545_vm4, %v1464_v28  ;;  %v6383_v10 = vpop.f32.mrf.mxu0 }
 0x3b4   :  { %2577 = vrot.lane.b32.xlu0 %v2415_v62, %s4705_s23 }
 0x3b5   :  { %v1847_v0 = vpop.permute.xlu1 %1846  ;;  %v6389_v44 = vpop.f32.mrf.mxu0 }
 0x3b6   :  { %1985 = vst.msk [vmem:[#allocation3 + $0x1b0] sm:$0xff] %vm1930_vm5, %v1847_v0  ;;  %v3001_v30 = vpop.permute.xlu0 %3000  ;;  %v3211_v0 = vld [vmem:[#allocation2 + $0x332] sm:$0xff] }
 0x3b7   :  { %2627 = vrot.lane.b32.xlu1 %v2440_v63, %s4705_s23  ;;  %3140 = vst.msk [vmem:[#allocation3 + $0x1a8] sm:$0xff] %vm3086_vm8, %v3001_v30  ;;  %v6394_v28 = vpop.f32.mrf.mxu0 }
 0x3b8   :  { %3010 = vrot.lane.b32.xlu0 %v2824_v1, %s4706_s30 }
 0x3b9   :  { %v3384_v29 = vpop.permute.xlu1 %3383  ;;  %v6400_v30 = vpop.f32.mrf.mxu0 }
 0x3ba   :  { %3524 = vst.msk [vmem:[#allocation3 + $0x1a0] sm:$0xff] %vm3471_vm9, %v3384_v29  ;;  %v1849_v32 = vpop.permute.xlu0 %1848 }
 0x3bb   :  { %1425 = vrot.lane.b32.xlu1 %v2415_v62, %s4702_s7  ;;  %1986 = vst.msk [vmem:[#allocation3 + $0x1b8] sm:$0xff] %vm1930_vm5, %v1849_v32  ;;  %v2827_v62 = vld [vmem:[#allocation2 + $0x339] sm:$0xff] }
 0x3bc   :  { %1475 = vrot.lane.b32.xlu0 %v2440_v63, %s4702_s7 }
 0x3bd   :  { %v2232_v3 = vpop.permute.xlu1 %2231 }
 0x3be   :  { %2370 = vst.msk [vmem:[#allocation3 + $0x1b0] sm:$0xff] %vm2315_vm6, %v2232_v3  ;;  %v3386_v5 = vpop.permute.xlu0 %3385  ;;  %v6403_v3 = vpop.f32.mrf.mxu0 }
 0x3bf   :  { %1858 = vrot.lane.b32.xlu1 %v2824_v1, %s4703_s12  ;;  %3525 = vst.msk [vmem:[#allocation3 + $0x1a8] sm:$0xff] %vm3471_vm9, %v3386_v5 }
 0x3c0   :  { %2579 = vrot.lane.b32.xlu0 %v2416_v4, %s4705_s23 }
 0x3c1   :  { %v1081_v6 = vpop.permute.xlu1 %1080  ;;  %v3588_v18 = vld [vmem:[#allocation3 + $0x1a0] sm:$0xff] }
 0x3c2   :  { %1217 = vst.msk [vmem:[#allocation3 + $0x1c0] sm:$0xff] %vm1160_vm3, %v1081_v6  ;;  %4603 = vmatprep.mubr.f32.mxu1 %v3588_v18  ;;  %v2234_v48 = vpop.permute.xlu0 %2233  ;;  %v2803_v6 = vld [vmem:[#allocation2 + $0x219] sm:$0xff] }
 0x3c3   :  { %2962 = vrot.lane.b32.xlu1 %v2800_v46, %s4706_s30  ;;  %2371 = vst.msk [vmem:[#allocation3 + $0x1b8] sm:$0xff] %vm2315_vm6, %v2234_v48  ;;  %v3187_v48 = vld [vmem:[#allocation2 + $0x212] sm:$0xff] }
 0x3c4   :  { %3012 = vrot.lane.b32.xlu0 %v2825_v7, %s4706_s30 }
 0x3c5   :  { %v2618_v9 = vpop.permute.xlu1 %2617 }
 0x3c6   :  { %2756 = vst.msk [vmem:[#allocation3 + $0x1b0] sm:$0xff] %vm2701_vm7, %v2618_v9  ;;  %v1083_v11 = vpop.permute.xlu0 %1082  ;;  %v3589_v12 = vld [vmem:[#allocation3 + $0x1a8] sm:$0xff]  ;;  %v3212_v9 = vld [vmem:[#allocation2 + $0x33a] sm:$0xff] }
 0x3c7   :  { %3395 = vrot.lane.b32.xlu1 %v3209_v8, %s4707_s18  ;;  %1218 = vst.msk [vmem:[#allocation3 + $0x1c8] sm:$0xff] %vm1160_vm3, %v1083_v11  ;;  %4604 = vmatmul.mubr.f32.gmra.mxu1 %v3589_v12 }
 0x3c8   :  { %1427 = vrot.lane.b32.xlu0 %v2416_v4, %s4702_s7 }
 0x3c9   :  { %v1466_v13 = vpop.permute.xlu1 %1465 }
 0x3ca   :  { %1602 = vst.msk [vmem:[#allocation3 + $0x1c0] sm:$0xff] %vm1545_vm4, %v1466_v13  ;;  %v2620_v14 = vpop.permute.xlu0 %2619 }
 0x3cb   :  { %1810 = vrot.lane.b32.xlu1 %v2800_v46, %s4703_s12  ;;  %2757 = vst.msk [vmem:[#allocation3 + $0x1b8] sm:$0xff] %vm2701_vm7, %v2620_v14  ;;  %v6409_v46 = vpop.f32.mrf.mxu0 }
 0x3cc   :  { %1860 = vrot.lane.b32.xlu0 %v2825_v7, %s4703_s12 }
 0x3cd   :  { %v3003_v16 = vpop.permute.xlu1 %3002  ;;  %v6414_v18 = vpop.f32.mrf.mxu0 }
 0x3ce   :  { %3141 = vst.msk [vmem:[#allocation3 + $0x1b0] sm:$0xff] %vm3086_vm8, %v3003_v16  ;;  %v1418_v17 = vpop.permute.xlu0 %1417 }
 0x3cf   :  { %2243 = vrot.lane.b32.xlu1 %v3209_v8, %s4704_s17  ;;  %1578 = vst.msk [vmem:[#allocation3 + $0x100] sm:$0xff] %vm1545_vm4, %v1418_v17  ;;  %v6420_v11 = vpop.f32.mrf.mxu0 }
 0x3d0   :  { %2964 = vrot.lane.b32.xlu0 %v2801_v19, %s4706_s30 }
 0x3d1   :  { %v1468_v50 = vpop.permute.xlu1 %1467  ;;  %v6423_v14 = vpop.f32.mrf.mxu0 }
 0x3d2   :  { %1603 = vst.msk [vmem:[#allocation3 + $0x1c8] sm:$0xff] %vm1545_vm4, %v1468_v50  ;;  %v1851_v24 = vpop.permute.xlu0 %1850  ;;  %v2443_v50 = vld [vmem:[#allocation2 + $0x348] sm:$0xff] }
 0x3d3   :  { %3347 = vrot.lane.b32.xlu1 %v3185_v20, %s4707_s18  ;;  %1987 = vst.msk [vmem:[#allocation3 + $0x1c0] sm:$0xff] %vm1930_vm5, %v1851_v24 }
 0x3d4   :  { %3397 = vrot.lane.b32.xlu0 %v3210_v21, %s4707_s18 }
 0x3d5   :  { %v3005_v25 = vpop.permute.xlu1 %3004 }
 0x3d6   :  { %3142 = vst.msk [vmem:[#allocation3 + $0x1b8] sm:$0xff] %vm3086_vm8, %v3005_v25  ;;  %v3388_v34 = vpop.permute.xlu0 %3387  ;;  %v3188_v25 = vld [vmem:[#allocation2 + $0x21a] sm:$0xff] }
 0x3d7   :  { %1092 = vrot.lane.b32.xlu1 %v3209_v8, %s4701_s25  ;;  %3526 = vst.msk [vmem:[#allocation3 + $0x1b0] sm:$0xff] %vm3471_vm9, %v3388_v34 }
 0x3d8   :  { %1812 = vrot.lane.b32.xlu0 %v2801_v19, %s4703_s12 }
 0x3d9   :  { %v1420_v31 = vpop.permute.xlu1 %1419 }
 0x3da   :  { %1579 = vst.msk [vmem:[#allocation3 + $0x108] sm:$0xff] %vm1545_vm4, %v1420_v31  ;;  %v1803_v33 = vpop.permute.xlu0 %1802 }
 0x3db   :  { %2195 = vrot.lane.b32.xlu1 %v3185_v20, %s4704_s17  ;;  %1963 = vst.msk [vmem:[#allocation3 + $0x100] sm:$0xff] %vm1930_vm5, %v1803_v33  ;;  %v6429_v20 = vpop.f32.mrf.mxu0 }
 0x3dc   :  { %2245 = vrot.lane.b32.xlu0 %v3210_v21, %s4704_s17 }
 0x3dd   :  { %v1853_v35 = vpop.permute.xlu1 %1852 }
 0x3de   :  { %1988 = vst.msk [vmem:[#allocation3 + $0x1c8] sm:$0xff] %vm1930_vm5, %v1853_v35  ;;  %v2236_v39 = vpop.permute.xlu0 %2235  ;;  %v3590_v41 = vld [vmem:[#allocation3 + $0x1b0] sm:$0xff] }
 0x3df   :  { %2629 = vrot.lane.b32.xlu1 %v2441_v36, %s4705_s23  ;;  %2372 = vst.msk [vmem:[#allocation3 + $0x1c0] sm:$0xff] %vm2315_vm6, %v2236_v39  ;;  %4606 = vmatprep.mubr.f32.mxu1 %v3590_v41  ;;  %v2444_v39 = vld [vmem:[#allocation2 + $0x350] sm:$0xff] }
 0x3e0   :  { %3349 = vrot.lane.b32.xlu0 %v3186_v22, %s4707_s18 }
 0x3e1   :  { %v3390_v43 = vpop.permute.xlu1 %3389 }
 0x3e2   :  { %3527 = vst.msk [vmem:[#allocation3 + $0x1b8] sm:$0xff] %vm3471_vm9, %v3390_v43  ;;  %v1085_v23 = vpop.permute.xlu0 %1084  ;;  %v2828_v43 = vld [vmem:[#allocation2 + $0x349] sm:$0xff] }
 0x3e3   :  { %1094 = vrot.lane.b32.xlu1 %v3210_v21, %s4701_s25  ;;  %1219 = vst.msk [vmem:[#allocation3 + $0x1d0] sm:$0xff] %vm1160_vm3, %v1085_v23  ;;  %v6434_v21 = vpop.f32.mrf.mxu0 }
 0x3e4   :  { %1477 = vrot.lane.b32.xlu0 %v2441_v36, %s4702_s7  ;;  %v2419_v36 = vld [vmem:[#allocation2 + $0x228] sm:$0xff] }
 0x3e5   :  { %v1805_v47 = vpop.permute.xlu1 %1804  ;;  %v6440_v31 = vpop.f32.mrf.mxu0 }
 0x3e6   :  { %1964 = vst.msk [vmem:[#allocation3 + $0x108] sm:$0xff] %vm1930_vm5, %v1805_v47  ;;  %v2188_v38 = vpop.permute.xlu0 %2187 }
 0x3e7   :  { %2197 = vrot.lane.b32.xlu1 %v3186_v22, %s4704_s17  ;;  %2348 = vst.msk [vmem:[#allocation3 + $0x100] sm:$0xff] %vm2315_vm6, %v2188_v38  ;;  %v6443_v22 = vpop.f32.mrf.mxu0 }
 0x3e8   :  { %2581 = vrot.lane.b32.xlu0 %v2417_v51, %s4705_s23 }
 0x3e9   :  { %v2238_v53 = vpop.permute.xlu1 %2237  ;;  %v3591_v40 = vld [vmem:[#allocation3 + $0x1b8] sm:$0xff] }
 0x3ea   :  { %2373 = vst.msk [vmem:[#allocation3 + $0x1c8] sm:$0xff] %vm2315_vm6, %v2238_v53  ;;  %4607 = vmatmul.mubr.f32.gmra.mxu1 %v3591_v40  ;;  %v2622_v56 = vpop.permute.xlu0 %2621  ;;  %v2420_v40 = vld [vmem:[#allocation2 + $0x230] sm:$0xff] }
 0x3eb   :  { %2631 = vrot.lane.b32.xlu1 %v2442_v52, %s4705_s23  ;;  %2758 = vst.msk [vmem:[#allocation3 + $0x1c0] sm:$0xff] %vm2701_vm7, %v2622_v56  ;;  %v2804_v56 = vld [vmem:[#allocation2 + $0x229] sm:$0xff] }
 0x3ec   :  { %3014 = vrot.lane.b32.xlu0 %v2826_v26, %s4706_s30 }
 0x3ed   :  { %v1087_v57 = vpop.permute.xlu1 %1086 }
 0x3ee   :  { %1220 = vst.msk [vmem:[#allocation3 + $0x1d8] sm:$0xff] %vm1160_vm3, %v1087_v57  ;;  %v1470_v27 = vpop.permute.xlu0 %1469 }
 0x3ef   :  { %1429 = vrot.lane.b32.xlu1 %v2417_v51, %s4702_s7  ;;  %1604 = vst.msk [vmem:[#allocation3 + $0x1d0] sm:$0xff] %vm1545_vm4, %v1470_v27  ;;  %v6449_v51 = vpop.f32.mrf.mxu0 }
 0x3f0   :  { %1479 = vrot.lane.b32.xlu0 %v2442_v52, %s4702_s7 }
 0x3f1   :  { %v2190_v59 = vpop.permute.xlu1 %2189  ;;  %v6454_v38 = vpop.f32.mrf.mxu0 }
 0x3f2   :  { %2349 = vst.msk [vmem:[#allocation3 + $0x108] sm:$0xff] %vm2315_vm6, %v2190_v59  ;;  %v2574_v42 = vpop.permute.xlu0 %2573  ;;  %v2829_v59 = vld [vmem:[#allocation2 + $0x351] sm:$0xff] }
 0x3f3   :  { %1862 = vrot.lane.b32.xlu1 %v2826_v26, %s4703_s12  ;;  %2734 = vst.msk [vmem:[#allocation3 + $0x100] sm:$0xff] %vm2701_vm7, %v2574_v42  ;;  %v6460_v57 = vpop.f32.mrf.mxu0 }
 0x3f4   :  { %2583 = vrot.lane.b32.xlu0 %v2418_v15, %s4705_s23 }
 0x3f5   :  { %v2624_v61 = vpop.permute.xlu1 %2623  ;;  %v6463_v42 = vpop.f32.mrf.mxu0 }
 0x3f6   :  { %2759 = vst.msk [vmem:[#allocation3 + $0x1c8] sm:$0xff] %vm2701_vm7, %v2624_v61  ;;  %v3007_v63 = vpop.permute.xlu0 %3006 }
 0x3f7   :  { %2966 = vrot.lane.b32.xlu1 %v2802_v60, %s4706_s30  ;;  %3143 = vst.msk [vmem:[#allocation3 + $0x1c0] sm:$0xff] %vm3086_vm8, %v3007_v63  ;;  %v6469_v63 = vpop.f32.mrf.mxu0 }
 0x3f8   :  { %3016 = vrot.lane.b32.xlu0 %v2827_v62, %s4706_s30 }
 0x3f9   :  { %v1422_v1 = vpop.permute.xlu1 %1421 }
 0x3fa   :  { %1580 = vst.msk [vmem:[#allocation3 + $0x110] sm:$0xff] %vm1545_vm4, %v1422_v1  ;;  %v1472_v29 = vpop.permute.xlu0 %1471 }
 0x3fb   :  { %3399 = vrot.lane.b32.xlu1 %v3211_v0, %s4707_s18  ;;  %1605 = vst.msk [vmem:[#allocation3 + $0x1d8] sm:$0xff] %vm1545_vm4, %v1472_v29 }
 0x3fc   :  { %1431 = vrot.lane.b32.xlu0 %v2418_v15, %s4702_s7 }
 0x3fd   :  { %v1855_v32 = vpop.permute.xlu1 %1854 }
 0x3fe   :  { %1989 = vst.msk [vmem:[#allocation3 + $0x1d0] sm:$0xff] %vm1930_vm5, %v1855_v32  ;;  %v2576_v4 = vpop.permute.xlu0 %2575  ;;  %v2805_v32 = vld [vmem:[#allocation2 + $0x231] sm:$0xff] }
 0x3ff   :  { %1814 = vrot.lane.b32.xlu1 %v2802_v60, %s4703_s12  ;;  %2735 = vst.msk [vmem:[#allocation3 + $0x108] sm:$0xff] %vm2701_vm7, %v2576_v4  ;;  %v3213_v60 = vld [vmem:[#allocation2 + $0x34a] sm:$0xff] }
 0x400   :  { %1864 = vrot.lane.b32.xlu0 %v2827_v62, %s4703_s12 }
 0x401   :  { %v2959_v5 = vpop.permute.xlu1 %2958 }
 0x402   :  { %3119 = vst.msk [vmem:[#allocation3 + $0x100] sm:$0xff] %vm3086_vm8, %v2959_v5  ;;  %v3009_v7 = vpop.permute.xlu0 %3008  ;;  %v3189_v5 = vld [vmem:[#allocation2 + $0x22a] sm:$0xff] }
 0x403   :  { %2247 = vrot.lane.b32.xlu1 %v3211_v0, %s4704_s17  ;;  %3144 = vst.msk [vmem:[#allocation3 + $0x1c8] sm:$0xff] %vm3086_vm8, %v3009_v7  ;;  %v6474_v0 = vpop.f32.mrf.mxu0 }
 0x404   :  { %2968 = vrot.lane.b32.xlu0 %v2803_v6, %s4706_s30 }
 0x405   :  { %v3392_v8 = vpop.permute.xlu1 %3391 }
 0x406   :  { %3528 = vst.msk [vmem:[#allocation3 + $0x1c0] sm:$0xff] %vm3471_vm9, %v3392_v8  ;;  %v1424_v12 = vpop.permute.xlu0 %1423 }
 0x407   :  { %3351 = vrot.lane.b32.xlu1 %v3187_v48, %s4707_s18  ;;  %1581 = vst.msk [vmem:[#allocation3 + $0x118] sm:$0xff] %vm1545_vm4, %v1424_v12 }
 0x408   :  { %3401 = vrot.lane.b32.xlu0 %v3212_v9, %s4707_s18 }
 0x409   :  { %v1807_v13 = vpop.permute.xlu1 %1806 }
 0x40a   :  { %1965 = vst.msk [vmem:[#allocation3 + $0x110] sm:$0xff] %vm1930_vm5, %v1807_v13  ;;  %v1857_v16 = vpop.permute.xlu0 %1856 }
 0x40b   :  { %1816 = vrot.lane.b32.xlu1 %v2803_v6, %s4703_s12  ;;  %1990 = vst.msk [vmem:[#allocation3 + $0x1d8] sm:$0xff] %vm1930_vm5, %v1857_v16  ;;  %v6480_v6 = vpop.f32.mrf.mxu0 }
 0x40c   :  { %2199 = vrot.lane.b32.xlu0 %v3187_v48, %s4704_s17  ;;  %v3214_v48 = vld [vmem:[#allocation2 + $0x352] sm:$0xff] }
 0x40d   :  { %v2240_v19 = vpop.permute.xlu1 %2239  ;;  %v3592_v17 = vld [vmem:[#allocation3 + $0x1c0] sm:$0xff] }
 0x40e   :  { %2374 = vst.msk [vmem:[#allocation3 + $0x1d0] sm:$0xff] %vm2315_vm6, %v2240_v19  ;;  %4609 = vmatprep.mubr.f32.mxu1 %v3592_v17  ;;  %v2961_v24 = vpop.permute.xlu0 %2960  ;;  %v3190_v19 = vld [vmem:[#allocation2 + $0x232] sm:$0xff] }
 0x40f   :  { %2249 = vrot.lane.b32.xlu1 %v3212_v9, %s4704_s17  ;;  %3120 = vst.msk [vmem:[#allocation3 + $0x108] sm:$0xff] %vm3086_vm8, %v2961_v24  ;;  %v4566_v9 = vpop.f32.mrf.mxu0 }
 0x410   :  { %2633 = vrot.lane.b32.xlu0 %v2443_v50, %s4705_s23 }
 0x411   :  { %v3344_v34 = vpop.permute.xlu1 %3343  ;;  %v3819_v16 = vpop.f32.mrf.mxu0 }
 0x412   :  { %3504 = vst.msk [vmem:[#allocation3 + $0x100] sm:$0xff] %vm3471_vm9, %v3344_v34  ;;  %v3394_v33 = vpop.permute.xlu0 %3393 }
 0x413   :  { %3353 = vrot.lane.b32.xlu1 %v3188_v25, %s4707_s18  ;;  %3529 = vst.msk [vmem:[#allocation3 + $0x1c8] sm:$0xff] %vm3471_vm9, %v3394_v33  ;;  %v4569_v17 = vpop.f32.mrf.mxu0 }
 0x414   :  { %2201 = vrot.lane.b32.xlu0 %v3188_v25, %s4704_s17  ;;  %v2421_v25 = vld [vmem:[#allocation2 + $0x240] sm:$0xff] }
 0x415   :  { %v1089_v35 = vpop.permute.xlu1 %1088  ;;  %v3829_v34 = vpop.f32.mrf.mxu0 }
 0x416   :  { %1221 = vst.msk [vmem:[#allocation3 + $0x1e0] sm:$0xff] %vm1160_vm3, %v1089_v35  ;;  %v1809_v41 = vpop.permute.xlu0 %1808 }
 0x417   :  { %2585 = vrot.lane.b32.xlu1 %v2419_v36, %s4705_s23  ;;  %1966 = vst.msk [vmem:[#allocation3 + $0x118] sm:$0xff] %vm1930_vm5, %v1809_v41 }
 0x418   :  { %2635 = vrot.lane.b32.xlu0 %v2444_v39, %s4705_s23 }
 0x419   :  { %v2192_v23 = vpop.permute.xlu1 %2191  ;;  %v3568_v47 = vld [vmem:[#allocation3 + $0x100] sm:$0xff] }
 0x41a   :  { %2350 = vst.msk [vmem:[#allocation3 + $0x110] sm:$0xff] %vm2315_vm6, %v2192_v23  ;;  %4573 = vmatprep.mubr.f32.mxu0 %v3568_v47  ;;  %v2242_v52 = vpop.permute.xlu0 %2241  ;;  %v3593_v53 = vld [vmem:[#allocation3 + $0x1c8] sm:$0xff] }
 0x41b   :  { %3018 = vrot.lane.b32.xlu1 %v2828_v43, %s4706_s30  ;;  %2375 = vst.msk [vmem:[#allocation3 + $0x1d8] sm:$0xff] %vm2315_vm6, %v2242_v52  ;;  %4610 = vmatmul.mubr.f32.gmra.mxu1 %v3593_v53  ;;  %v2422_v23 = vld [vmem:[#allocation2 + $0x248] sm:$0xff] }
 0x41c   :  { %1433 = vrot.lane.b32.xlu0 %v2419_v36, %s4702_s7  ;;  %v6497_v36 = vld [vmem:[%s6740_s2] ss:$0 sm:$0xff]  ;;  %v2806_v53 = vld [vmem:[#allocation2 + $0x241] sm:$0xff] }
 0x41d   :  { %v2626_v26 = vpop.permute.xlu1 %2625  ;;  %v3765_v39 = vadd.f32 %v6423_v14, %v6497_v36 }
 0x41e   :  { %2760 = vst.msk [vmem:[#allocation3 + $0x1d0] sm:$0xff] %vm2701_vm7, %v2626_v26  ;;  %v3346_v27 = vpop.permute.xlu0 %3345 }
 0x41f   :  { %2587 = vrot.lane.b32.xlu1 %v2420_v40, %s4705_s23  ;;  %3505 = vst.msk [vmem:[#allocation3 + $0x108] sm:$0xff] %vm3471_vm9, %v3346_v27  ;;  %v4023_v27 = vmax.f32 %v3765_v39, 0.0 }
 0x420   :  { %2970 = vrot.lane.b32.xlu0 %v2804_v56, %s4706_s30 }
 0x421   :  { %v1091_v15 = vpop.permute.xlu1 %1090 }
 0x422   :  { %1222 = vst.msk [vmem:[#allocation3 + $0x1e8] sm:$0xff] %vm1160_vm3, %v1091_v15  ;;  %v1474_v61 = vpop.permute.xlu0 %1473  ;;  %v3755_v15 = vadd.f32 %v6414_v18, %v6497_v36 }
 0x423   :  { %3020 = vrot.lane.b32.xlu1 %v2829_v59, %s4706_s30  ;;  %1606 = vst.msk [vmem:[#allocation3 + $0x1e0] sm:$0xff] %vm1545_vm4, %v1474_v61  ;;  %v3835_v59 = vadd.f32 %v4569_v17, %v6497_v36 }
 0x424   :  { %3403 = vrot.lane.b32.xlu0 %v3213_v60, %s4707_s18 }
 0x425   :  { %v2194_v62 = vpop.permute.xlu1 %2193  ;;  %v4037_v18 = vmax.f32 %v3835_v59, 0.0  ;;  %v2423_v59 = vld [vmem:[#allocation2 + $0x258] sm:$0xff] }
 0x426   :  { %2351 = vst.msk [vmem:[#allocation3 + $0x118] sm:$0xff] %vm2315_vm6, %v2194_v62  ;;  %v2578_v1 = vpop.permute.xlu0 %2577  ;;  %v3569_v29 = vld [vmem:[#allocation3 + $0x108] sm:$0xff]  ;;  %v3750_v62 = vadd.f32 %v6497_v36, %v6420_v11 }
 0x427   :  { %1435 = vrot.lane.b32.xlu1 %v2420_v40, %s4702_s7  ;;  %2736 = vst.msk [vmem:[#allocation3 + $0x110] sm:$0xff] %vm2701_vm7, %v2578_v1  ;;  %4574 = vmatmul.mubr.f32.gmra.mxu0 %v3569_v29  ;;  %v3760_v40 = vadd.f32 %v6497_v36, %v6429_v20  ;;  %v3830_v20 = vadd.f32 %v6497_v36, %v3829_v34  ;;  %v2807_v11 = vld [vmem:[#allocation2 + $0x249] sm:$0xff] }
 0x428   :  { %1818 = vrot.lane.b32.xlu0 %v2804_v56, %s4703_s12 }
 0x429   :  { %v2628_v4 = vpop.permute.xlu1 %2627  ;;  %v4022_v1 = vmax.f32 %v3760_v40, 0.0  ;;  %v3795_v40 = vadd.f32 %v6454_v38, %v6497_v36 }
 0x42a   :  { %2761 = vst.msk [vmem:[#allocation3 + $0x1d8] sm:$0xff] %vm2701_vm7, %v2628_v4  ;;  %v3011_v7 = vpop.permute.xlu0 %3010  ;;  %v3825_v4 = vadd.f32 %v4566_v9, %v6497_v36  ;;  %v3191_v9 = vld [vmem:[#allocation2 + $0x242] sm:$0xff] }
 0x42b   :  { %2972 = vrot.lane.b32.xlu1 %v2805_v32, %s4706_s30  ;;  %3145 = vst.msk [vmem:[#allocation3 + $0x1d0] sm:$0xff] %vm3086_vm8, %v3011_v7  ;;  %v4021_v7 = vmax.f32 %v3755_v15, 0.0  ;;  %v3710_v15 = vadd.f32 %v6497_v36, %v6380_v58  ;;  %v3780_v58 = vadd.f32 %v6497_v36, %v6449_v51  ;;  %v3695_v51 = vadd.f32 %v6354_v37, %v6497_v36 }
 0x42c   :  { %3355 = vrot.lane.b32.xlu0 %v3189_v5, %s4707_s18 }
 0x42d   :  { %v1426_v8 = vpop.permute.xlu1 %1425 }
 0x42e   :  { %1582 = vst.msk [vmem:[#allocation3 + $0x120] sm:$0xff] %vm1545_vm4, %v1426_v8  ;;  %v1476_v12 = vpop.permute.xlu0 %1475  ;;  %v4036_v8 = vmax.f32 %v3830_v20, 0.0  ;;  %v2424_v20 = vld [vmem:[#allocation2 + $0x260] sm:$0xff] }
 0x42f   :  { %3405 = vrot.lane.b32.xlu1 %v3214_v48, %s4707_s18  ;;  %1607 = vst.msk [vmem:[#allocation3 + $0x1e8] sm:$0xff] %vm1545_vm4, %v1476_v12  ;;  %v3820_v48 = vadd.f32 %v6497_v36, %v3819_v16  ;;  %v3735_v16 = vadd.f32 %v6394_v28, %v6497_v36  ;;  %v3805_v28 = vadd.f32 %v6463_v42, %v6497_v36 }
 0x430   :  { %1820 = vrot.lane.b32.xlu0 %v2805_v32, %s4703_s12 }
 0x431   :  { %v1859_v13 = vpop.permute.xlu1 %1858 }
 0x432   :  { %1991 = vst.msk [vmem:[#allocation3 + $0x1e0] sm:$0xff] %vm1930_vm5, %v1859_v13  ;;  %v2580_v50 = vpop.permute.xlu0 %2579  ;;  %v3740_v13 = vadd.f32 %v6497_v36, %v6409_v46  ;;  %v3810_v46 = vadd.f32 %v6497_v36, %v6480_v6  ;;  %v3725_v6 = vadd.f32 %v6383_v10, %v6497_v36 }
 0x433   :  { %2203 = vrot.lane.b32.xlu1 %v3189_v5, %s4704_s17  ;;  %2737 = vst.msk [vmem:[#allocation3 + $0x118] sm:$0xff] %vm2701_vm7, %v2580_v50  ;;  %v3745_v5 = vadd.f32 %v6403_v3, %v6497_v36  ;;  %v3815_v3 = vadd.f32 %v6474_v0, %v6497_v36  ;;  %v4035_v50 = vmax.f32 %v3825_v4, 0.0  ;;  %v3730_v0 = vadd.f32 %v6497_v36, %v6400_v30  ;;  %v3192_v30 = vld [vmem:[#allocation2 + $0x24a] sm:$0xff] }
 0x434   :  { %3357 = vrot.lane.b32.xlu0 %v3190_v19, %s4707_s18  ;;  %v3700_v4 = vadd.f32 %v6497_v36, %v6369_v54  ;;  %v3770_v54 = vadd.f32 %v6497_v36, %v6440_v31  ;;  %v4009_v31 = vmax.f32 %v3695_v51, 0.0 }
 0x435   :  { %v2963_v24 = vpop.permute.xlu1 %2962  ;;  %v4033_v39 = vmax.f32 %v3815_v3, 0.0 }
 0x436   :  { %3121 = vst.msk [vmem:[#allocation3 + $0x110] sm:$0xff] %vm3086_vm8, %v2963_v24  ;;  %v3013_v33 = vpop.permute.xlu0 %3012  ;;  %v4019_v24 = vmax.f32 %v3745_v5, 0.0  ;;  %v2809_v5 = vld [vmem:[#allocation2 + $0x261] sm:$0xff]  ;;  %v4024_v3 = vmax.f32 %v3770_v54, 0.0 }
 0x437   :  { %2205 = vrot.lane.b32.xlu1 %v3190_v19, %s4704_s17  ;;  %3146 = vst.msk [vmem:[#allocation3 + $0x1d8] sm:$0xff] %vm3086_vm8, %v3013_v33  ;;  %v4020_v19 = vmax.f32 %v3750_v62, 0.0  ;;  %v4018_v33 = vmax.f32 %v3740_v13, 0.0  ;;  %v3705_v62 = vadd.f32 %v6363_v49, %v6497_v36  ;;  %v4010_v13 = vmax.f32 %v3700_v4, 0.0 }
 0x438   :  { %2589 = vrot.lane.b32.xlu0 %v2421_v25, %s4705_s23 }
 0x439   :  { %v3396_v35 = vpop.permute.xlu1 %3395 }
 0x43a   :  { %3530 = vst.msk [vmem:[#allocation3 + $0x1d0] sm:$0xff] %vm3471_vm9, %v3396_v35  ;;  %v4572_v41 = vpop.f32.mrf.mxu0  ;;  %v1428_v47 = vpop.permute.xlu0 %1427 }
 0x43b   :  { %v3845_v43 = vadd.f32 %v4572_v41, %v6497_v36  ;;  %1437 = vrot.lane.b32.xlu1 %v2421_v25, %s4702_s7  ;;  %1583 = vst.msk [vmem:[#allocation3 + $0x128] sm:$0xff] %vm1545_vm4, %v1428_v47  ;;  %v4034_v25 = vmax.f32 %v3820_v48, 0.0  ;;  %v4017_v41 = vmax.f32 %v3735_v16, 0.0  ;;  %v3720_v47 = vadd.f32 %v6497_v36, %v6389_v44 }
 0x43c   :  { %v3839_v52 = vpop.f32.mrf.mxu0  ;;  %2591 = vrot.lane.b32.xlu0 %v2422_v23, %s4705_s23  ;;  %v3790_v44 = vadd.f32 %v6497_v36, %v6460_v57  ;;  %v4029_v57 = vmax.f32 %v3795_v40, 0.0  ;;  %v4011_v48 = vmax.f32 %v3705_v62, 0.0 }
 0x43d   :  { %v4039_v26 = vmax.f32 %v3845_v43, 0.0  ;;  %v3840_v14 = vadd.f32 %v6497_v36, %v3839_v52  ;;  %v1811_v56 = vpop.permute.xlu1 %1810  ;;  %v3800_v43 = vadd.f32 %v6497_v36, %v6469_v63  ;;  %v4016_v52 = vmax.f32 %v3730_v0, 0.0 }
 0x43e   :  { %1967 = vst.msk [vmem:[#allocation3 + $0x120] sm:$0xff] %vm1930_vm5, %v1811_v56  ;;  %v1861_v61 = vpop.permute.xlu0 %1860  ;;  %v3715_v63 = vadd.f32 %v6374_v55, %v6497_v36 }
 0x43f   :  { %v4038_v60 = vmax.f32 %v3840_v14, 0.0  ;;  %2974 = vrot.lane.b32.xlu1 %v2806_v53, %s4706_s30  ;;  %4418 = vmatprep.subr.mxu1 %v4039_v26  ;;  %1992 = vst.msk [vmem:[#allocation3 + $0x1e8] sm:$0xff] %vm1930_vm5, %v1861_v61  ;;  %v4031_v26 = vmax.f32 %v3805_v28, 0.0  ;;  %v4015_v14 = vmax.f32 %v3725_v6, 0.0  ;;  %v4030_v56 = vmax.f32 %v3800_v43, 0.0 }
 0x440   :  { %4419 = vmatpush3.msra.mxu1 %v4023_v27  ;;  %1439 = vrot.lane.b32.xlu0 %v2422_v23, %s4702_s7  ;;  %v4032_v23 = vmax.f32 %v3810_v46, 0.0  ;;  %v3785_v61 = vadd.f32 %v6443_v22, %v6497_v36 }
 0x441   :  { %v2244_v29 = vpop.permute.xlu1 %2243  ;;  %4420 = vmatprep.subr.mxu1 %v4038_v60  ;;  %v3594_v32 = vld [vmem:[#allocation3 + $0x1d0] sm:$0xff]  ;;  %v4014_v60 = vmax.f32 %v3720_v47, 0.0 }
 0x442   :  { %2376 = vst.msk [vmem:[#allocation3 + $0x1e0] sm:$0xff] %vm2315_vm6, %v2244_v29  ;;  %4612 = vmatprep.mubr.f32.mxu1 %v3594_v32  ;;  %4421 = vmatpush3.msra.mxu1 %v4022_v1  ;;  %v2965_v12 = vpop.permute.xlu0 %2964  ;;  %v4013_v1 = vmax.f32 %v3715_v63, 0.0  ;;  %v4028_v29 = vmax.f32 %v3790_v44, 0.0  ;;  %v2808_v32 = vld [vmem:[#allocation2 + $0x259] sm:$0xff] }
 0x443   :  { %1822 = vrot.lane.b32.xlu1 %v2806_v53, %s4703_s12  ;;  %4422 = vmatprep.subr.mxu1 %v4037_v18  ;;  %3122 = vst.msk [vmem:[#allocation3 + $0x118] sm:$0xff] %vm3086_vm8, %v2965_v12  ;;  %v4012_v18 = vmax.f32 %v3710_v15, 0.0 }
 0x444   :  { %4423 = vmatpush3.msra.mxu1 %v4021_v7  ;;  %2976 = vrot.lane.b32.xlu0 %v2807_v11, %s4706_s30  ;;  %v3775_v7 = vadd.f32 %v6434_v21, %v6497_v36  ;;  %v3193_v21 = vld [vmem:[#allocation2 + $0x25a] sm:$0xff] }
 0x445   :  { %v3348_v17 = vpop.permute.xlu1 %3347  ;;  %4424 = vmatprep.subr.mxu1 %v4036_v8  ;;  %v4026_v8 = vmax.f32 %v3780_v58, 0.0 }
 0x446   :  { %3506 = vst.msk [vmem:[#allocation3 + $0x110] sm:$0xff] %vm3471_vm9, %v3348_v17  ;;  %4425 = vmatpush3.msra.mxu1 %v4020_v19  ;;  %v3398_v34 = vpop.permute.xlu0 %3397  ;;  %v3194_v19 = vld [vmem:[#allocation2 + $0x262] sm:$0xff]  ;;  %v4025_v17 = vmax.f32 %v3775_v7, 0.0 }
 0x447   :  { %3359 = vrot.lane.b32.xlu1 %v3191_v9, %s4707_s18  ;;  %4426 = vmatprep.subr.mxu1 %v4035_v50  ;;  %3531 = vst.msk [vmem:[#allocation3 + $0x1d8] sm:$0xff] %vm3471_vm9, %v3398_v34 }
 0x448   :  { %4427 = vmatpush3.msra.mxu1 %v4019_v24  ;;  %1824 = vrot.lane.b32.xlu0 %v2807_v11, %s4703_s12  ;;  %v4027_v11 = vmax.f32 %v3785_v61, 0.0 }
 0x449   :  { %v1093_v35 = vpop.permute.xlu1 %1092  ;;  %4428 = vmatprep.subr.mxu1 %v4034_v25 }
 0x44a   :  { %1223 = vst.msk [vmem:[#allocation3 + $0x1f0] sm:$0xff] %vm1160_vm3, %v1093_v35  ;;  %4429 = vmatpush3.msra.mxu1 %v4018_v33  ;;  %v1813_v42 = vpop.permute.xlu0 %1812 }
 0x44b   :  { %2207 = vrot.lane.b32.xlu1 %v3191_v9, %s4704_s17  ;;  %4430 = vmatprep.subr.mxu1 %v4033_v39  ;;  %1968 = vst.msk [vmem:[#allocation3 + $0x128] sm:$0xff] %vm1930_vm5, %v1813_v42  ;;  %v3690_v9 = vadd.f32 %v6497_v36, %v6360_v45 }
 0x44c   :  { %4431 = vmatpush3.msra.mxu1 %v4017_v41  ;;  %3361 = vrot.lane.b32.xlu0 %v3192_v30, %s4707_s18 }
 0x44d   :  { %v2196_v53 = vpop.permute.xlu1 %2195  ;;  %v3570_v10 = vld [vmem:[#allocation3 + $0x110] sm:$0xff]  ;;  %4432 = vmatprep.subr.mxu1 %v4032_v23  ;;  %v4008_v16 = vmax.f32 %v3690_v9, 0.0 }
 0x44e   :  { %2352 = vst.msk [vmem:[#allocation3 + $0x120] sm:$0xff] %vm2315_vm6, %v2196_v53  ;;  %4576 = vmatprep.mubr.f32.mxu0 %v3570_v10  ;;  %4433 = vmatpush3.msra.mxu1 %v4016_v52  ;;  %v2246_v38 = vpop.permute.xlu0 %2245  ;;  %v3595_v27 = vld [vmem:[#allocation3 + $0x1d8] sm:$0xff] }
 0x44f   :  { %2209 = vrot.lane.b32.xlu1 %v3192_v30, %s4704_s17  ;;  %4434 = vmatprep.subr.mxu1 %v4031_v26  ;;  %2377 = vst.msk [vmem:[#allocation3 + $0x1e8] sm:$0xff] %vm2315_vm6, %v2246_v38 }
 0x450   :  { %4435 = vmatpush3.msra.mxu1 %v4015_v14  ;;  %2593 = vrot.lane.b32.xlu0 %v2423_v59, %s4705_s23 }
 0x451   :  { %v2630_v55 = vpop.permute.xlu1 %2629  ;;  %4613 = vmatmul.mubr.f32.gmra.mxu1 %v3595_v27  ;;  %4436 = vmatprep.subr.mxu1 %v4030_v56 }
 0x452   :  { %2762 = vst.msk [vmem:[#allocation3 + $0x1e0] sm:$0xff] %vm2701_vm7, %v2630_v55  ;;  %4437 = vmatpush3.msra.mxu1 %v4014_v60  ;;  %v3350_v22 = vpop.permute.xlu0 %3349 }
 0x453   :  { %2595 = vrot.lane.b32.xlu1 %v2424_v20, %s4705_s23  ;;  %4438 = vmatprep.subr.mxu1 %v4029_v57  ;;  %3507 = vst.msk [vmem:[#allocation3 + $0x118] sm:$0xff] %vm3471_vm9, %v3350_v22 }
 0x454   :  { %4439 = vmatpush3.msra.mxu1 %v4013_v1  ;;  %2978 = vrot.lane.b32.xlu0 %v2808_v32, %s4706_s30 }
 0x455   :  { %v1095_v49 = vpop.permute.xlu1 %1094  ;;  %4440 = vmatprep.subr.mxu1 %v4028_v29 }
 0x456   :  { %1224 = vst.msk [vmem:[#allocation3 + $0x1f8] sm:$0xff] %vm1160_vm3, %v1095_v49  ;;  %4441 = vmatpush3.msra.mxu1 %v4012_v18  ;;  %v1478_v12 = vpop.permute.xlu0 %1477 }
 0x457   :  { %2980 = vrot.lane.b32.xlu1 %v2809_v5, %s4706_s30  ;;  %4442 = vmatprep.subr.mxu1 %v4027_v11  ;;  %1608 = vst.msk [vmem:[#allocation3 + $0x1f0] sm:$0xff] %vm1545_vm4, %v1478_v12 }
 0x458   :  { %4443 = vmatpush3.msra.mxu1 %v4011_v48  ;;  %3363 = vrot.lane.b32.xlu0 %v3193_v21, %s4707_s18 }
 0x459   :  { %v2198_v37 = vpop.permute.xlu1 %2197  ;;  %4444 = vmatprep.subr.mxu1 %v4026_v8 }
 0x45a   :  { %2353 = vst.msk [vmem:[#allocation3 + $0x128] sm:$0xff] %vm2315_vm6, %v2198_v37  ;;  %4445 = vmatpush3.msra.mxu1 %v4010_v13  ;;  %v2582_v50 = vpop.permute.xlu0 %2581  ;;  %v3571_v45 = vld [vmem:[#allocation3 + $0x118] sm:$0xff] }
 0x45b   :  { %3365 = vrot.lane.b32.xlu1 %v3194_v19, %s4707_s18  ;;  %4446 = vmatprep.subr.mxu1 %v4025_v17  ;;  %2738 = vst.msk [vmem:[#allocation3 + $0x120] sm:$0xff] %vm2701_vm7, %v2582_v50 }
 0x45c   :  { %4447 = vmatpush3.msra.mxu1 %v4009_v31  ;;  %4577 = vmatmul.mubr.f32.gmra.mxu0 %v3571_v45 }
 0x45d   :  { %v2632_v24 = vpop.permute.xlu1 %2631  ;;  %4448 = vmatprep.subr.mxu1 %v4024_v3 }
 0x45e   :  { %2763 = vst.msk [vmem:[#allocation3 + $0x1e8] sm:$0xff] %vm2701_vm7, %v2632_v24  ;;  %4449 = vmatpush3.msra.mxu1 %v4008_v16  ;;  %v3015_v46 = vpop.permute.xlu0 %3014 }
 0x45f   :  { %3147 = vst.msk [vmem:[#allocation3 + $0x1e0] sm:$0xff] %vm3086_vm8, %v3015_v46 }
 0x461   :  { %v1430_v25 = vpop.permute.xlu1 %1429 }
 0x462   :  { %1584 = vst.msk [vmem:[#allocation3 + $0x130] sm:$0xff] %vm1545_vm4, %v1430_v25  ;;  %v1480_v34 = vpop.permute.xlu0 %1479 }
 0x463   :  { %1609 = vst.msk [vmem:[#allocation3 + $0x1f8] sm:$0xff] %vm1545_vm4, %v1480_v34 }
 0x465   :  { %v1863_v0 = vpop.permute.xlu1 %1862 }
 0x466   :  { %1993 = vst.msk [vmem:[#allocation3 + $0x1f0] sm:$0xff] %vm1930_vm5, %v1863_v0  ;;  %v2584_v33 = vpop.permute.xlu0 %2583 }
 0x467   :  { %2739 = vst.msk [vmem:[#allocation3 + $0x128] sm:$0xff] %vm2701_vm7, %v2584_v33 }
 0x469   :  { %v2967_v35 = vpop.permute.xlu1 %2966 }
 0x46a   :  { %3123 = vst.msk [vmem:[#allocation3 + $0x120] sm:$0xff] %vm3086_vm8, %v2967_v35  ;;  %v3017_v28 = vpop.permute.xlu0 %3016 }
 0x46b   :  { %3148 = vst.msk [vmem:[#allocation3 + $0x1e8] sm:$0xff] %vm3086_vm8, %v3017_v28  ;;  %v4708_v28 = vmov 1983009808  }
 0x46d   :  { %v3400_v39 = vpop.permute.xlu1 %3399 }
 0x46e   :  { %3532 = vst.msk [vmem:[#allocation3 + $0x1e0] sm:$0xff] %vm3471_vm9, %v3400_v39  ;;  %v1432_v6 = vpop.permute.xlu0 %1431  ;;  %v4076_v39 = vunpack.c.l.s4 %v4708_v28 }
 0x46f   :  { %1585 = vst.msk [vmem:[#allocation3 + $0x138] sm:$0xff] %vm1545_vm4, %v1432_v6  ;;  %v4078_v6 = vlaneseq }
 0x471   :  { %v1815_v41 = vpop.permute.xlu1 %1814 }
 0x472   :  { %1969 = vst.msk [vmem:[#allocation3 + $0x130] sm:$0xff] %vm1930_vm5, %v1815_v41  ;;  %v1865_v30 = vpop.permute.xlu0 %1864  ;;  %v4077_v41 = vunpack.c.0.s8 %v4076_v39 }
 0x473   :  { %1994 = vst.msk [vmem:[#allocation3 + $0x1f8] sm:$0xff] %vm1930_vm5, %v1865_v30  ;;  %v4079_v30 = vshrl.u32 %v4078_v6, 7 }
 0x475   :  { %v2248_v43 = vpop.permute.xlu1 %2247  ;;  %v3596_v23 = vld [vmem:[#allocation3 + $0x1e0] sm:$0xff] }
 0x476   :  { %2378 = vst.msk [vmem:[#allocation3 + $0x1f0] sm:$0xff] %vm2315_vm6, %v2248_v43  ;;  %4615 = vmatprep.mubr.f32.mxu1 %v3596_v23  ;;  %v2969_v42 = vpop.permute.xlu0 %2968  ;;  %v4080_v43 = vsub.s32 %v4077_v41, %v4079_v30  ;;  %v4072_v23 = vld [vmem:[%s6741_s3] sm:$0xff] }
 0x477   :  { %3124 = vst.msk [vmem:[#allocation3 + $0x128] sm:$0xff] %vm3086_vm8, %v2969_v42 }
 0x478   :  { %v4081_v42 = vrot.slane %v4072_v23, %v4080_v43 }
 0x479   :  { %v3352_v47 = vpop.permute.xlu1 %3351 }
 0x47a   :  { %3508 = vst.msk [vmem:[#allocation3 + $0x120] sm:$0xff] %vm3471_vm9, %v3352_v47  ;;  %v3402_v52 = vpop.permute.xlu0 %3401  ;;  %v4089_v47 = vcombine.high %v4081_v42, %v4081_v42 }
 0x47b   :  { %3533 = vst.msk [vmem:[#allocation3 + $0x1e8] sm:$0xff] %vm3471_vm9, %v3402_v52  ;;  %v4074_v52 = vcombine.high %v4072_v23, %v4072_v23 }
 0x47d   :  { %v1817_v53 = vpop.permute.xlu1 %1816 }
 0x47e   :  { %1970 = vst.msk [vmem:[#allocation3 + $0x138] sm:$0xff] %vm1930_vm5, %v1817_v53  ;;  %v2200_v10 = vpop.permute.xlu0 %2199  ;;  %v6654_v53 = vrot.slane %v4074_v52, %v4080_v43 }
 0x47f   :  { %2354 = vst.msk [vmem:[#allocation3 + $0x130] sm:$0xff] %vm2315_vm6, %v2200_v10 }
 0x480   :  { %v4090_v10 = vcombine.high %v6654_v53, %v6654_v53 }
 0x481   :  { %v2250_v40 = vpop.permute.xlu1 %2249  ;;  %v3572_v26 = vld [vmem:[#allocation3 + $0x120] sm:$0xff] }
 0x482   :  { %2379 = vst.msk [vmem:[#allocation3 + $0x1f8] sm:$0xff] %vm2315_vm6, %v2250_v40  ;;  %4579 = vmatprep.mubr.f32.mxu0 %v3572_v26  ;;  %v2634_v63 = vpop.permute.xlu0 %2633  ;;  %v3597_v14 = vld [vmem:[#allocation3 + $0x1e8] sm:$0xff]  ;;  %v4593_v40 = vpop.f32.mrf.mxu1 }
 0x483   :  { %2764 = vst.msk [vmem:[#allocation3 + $0x1f0] sm:$0xff] %vm2701_vm7, %v2634_v63  ;;  %4616 = vmatmul.mubr.f32.gmra.mxu1 %v3597_v14 }
 0x484   :  { %v3909_v26 = vpop.f32.mrf.mxu1 }
 0x485   :  { %v3354_v44 = vpop.permute.xlu1 %3353 }
 0x486   :  { %3509 = vst.msk [vmem:[#allocation3 + $0x128] sm:$0xff] %vm3471_vm9, %v3354_v44  ;;  %v2202_v56 = vpop.permute.xlu0 %2201  ;;  %v4596_v63 = vpop.f32.mrf.mxu1 }
 0x487   :  { %2355 = vst.msk [vmem:[#allocation3 + $0x138] sm:$0xff] %vm2315_vm6, %v2202_v56 }
 0x488   :  { %v3919_v14 = vpop.f32.mrf.mxu1 }
 0x489   :  { %v2586_v38 = vpop.permute.xlu1 %2585 }
 0x48a   :  { %2740 = vst.msk [vmem:[#allocation3 + $0x130] sm:$0xff] %vm2701_vm7, %v2586_v38  ;;  %v2636_v27 = vpop.permute.xlu0 %2635  ;;  %v6658_v44 = vpop.f32.mrf.mxu1 }
 0x48b   :  { %2765 = vst.msk [vmem:[#allocation3 + $0x1f8] sm:$0xff] %vm2701_vm7, %v2636_v27 }
 0x48c   :  { %v6660_v56 = vpop.f32.mrf.mxu1 }
 0x48d   :  { %v3019_v59 = vpop.permute.xlu1 %3018  ;;  %v3573_v15 = vld [vmem:[#allocation3 + $0x128] sm:$0xff] }
 0x48e   :  { %3149 = vst.msk [vmem:[#allocation3 + $0x1f0] sm:$0xff] %vm3086_vm8, %v3019_v59  ;;  %4580 = vmatmul.mubr.f32.gmra.mxu0 %v3573_v15  ;;  %v1434_v60 = vpop.permute.xlu0 %1433  ;;  %v6662_v38 = vpop.f32.mrf.mxu1 }
 0x48f   :  { %1586 = vst.msk [vmem:[#allocation3 + $0x140] sm:$0xff] %vm1545_vm4, %v1434_v60 }
 0x490   :  { %v6664_v27 = vpop.f32.mrf.mxu1 }
 0x491   :  { %v2588_v55 = vpop.permute.xlu1 %2587 }
 0x492   :  { %2741 = vst.msk [vmem:[#allocation3 + $0x138] sm:$0xff] %vm2701_vm7, %v2588_v55  ;;  %v2971_v20 = vpop.permute.xlu0 %2970  ;;  %v6666_v59 = vpop.f32.mrf.mxu1 }
 0x493   :  { %3125 = vst.msk [vmem:[#allocation3 + $0x130] sm:$0xff] %vm3086_vm8, %v2971_v20 }
 0x494   :  { %v6668_v15 = vpop.f32.mrf.mxu1 }
 0x495   :  { %v3021_v61 = vpop.permute.xlu1 %3020 }
 0x496   :  { %3150 = vst.msk [vmem:[#allocation3 + $0x1f8] sm:$0xff] %vm3086_vm8, %v3021_v61  ;;  %v3404_v57 = vpop.permute.xlu0 %3403 }
 0x497   :  { %3534 = vst.msk [vmem:[#allocation3 + $0x1f0] sm:$0xff] %vm3471_vm9, %v3404_v57 }
 0x499   :  { %v1436_v62 = vpop.permute.xlu1 %1435 }
 0x49a   :  { %1587 = vst.msk [vmem:[#allocation3 + $0x148] sm:$0xff] %vm1545_vm4, %v1436_v62  ;;  %v1819_v1 = vpop.permute.xlu0 %1818 }
 0x49b   :  { %1971 = vst.msk [vmem:[#allocation3 + $0x140] sm:$0xff] %vm1930_vm5, %v1819_v1 }
 0x49d   :  { %v2973_v58 = vpop.permute.xlu1 %2972 }
 0x49e   :  { %3126 = vst.msk [vmem:[#allocation3 + $0x138] sm:$0xff] %vm3086_vm8, %v2973_v58  ;;  %v3356_v29 = vpop.permute.xlu0 %3355  ;;  %v3598_v22 = vld [vmem:[#allocation3 + $0x1f0] sm:$0xff] }
 0x49f   :  { %3510 = vst.msk [vmem:[#allocation3 + $0x130] sm:$0xff] %vm3471_vm9, %v3356_v29  ;;  %4618 = vmatprep.mubr.f32.mxu1 %v3598_v22  ;;  %v3925_v29 = vadd.f32 %v4596_v63, %v6497_v36 }
 0x4a1   :  { %v3406_v32 = vpop.permute.xlu1 %3405 }
 0x4a2   :  { %3535 = vst.msk [vmem:[#allocation3 + $0x1f8] sm:$0xff] %vm3471_vm9, %v3406_v32  ;;  %v1821_v4 = vpop.permute.xlu0 %1820 }
 0x4a3   :  { %1972 = vst.msk [vmem:[#allocation3 + $0x148] sm:$0xff] %vm1930_vm5, %v1821_v4  ;;  %v3920_v4 = vadd.f32 %v6497_v36, %v3919_v14 }
 0x4a5   :  { %v2204_v18 = vpop.permute.xlu1 %2203 }
 0x4a6   :  { %2356 = vst.msk [vmem:[#allocation3 + $0x140] sm:$0xff] %vm2315_vm6, %v2204_v18  ;;  %v3358_v49 = vpop.permute.xlu0 %3357  ;;  %v3574_v5 = vld [vmem:[#allocation3 + $0x130] sm:$0xff] }
 0x4a7   :  { %3511 = vst.msk [vmem:[#allocation3 + $0x138] sm:$0xff] %vm3471_vm9, %v3358_v49  ;;  %4582 = vmatprep.mubr.f32.mxu0 %v3574_v5 }
 0x4a9   :  { %v2206_v7 = vpop.permute.xlu1 %2205  ;;  %v3599_v11 = vld [vmem:[#allocation3 + $0x1f8] sm:$0xff] }
 0x4aa   :  { %2357 = vst.msk [vmem:[#allocation3 + $0x148] sm:$0xff] %vm2315_vm6, %v2206_v7  ;;  %4619 = vmatmul.mubr.f32.gmra.mxu1 %v3599_v11  ;;  %v2590_v51 = vpop.permute.xlu0 %2589  ;;  %v4608_v60 = vpop.f32.mrf.mxu1  ;;  %v3915_v11 = vadd.f32 %v4593_v40, %v6497_v36 }
 0x4ab   :  { %2742 = vst.msk [vmem:[#allocation3 + $0x140] sm:$0xff] %vm2701_vm7, %v2590_v51  ;;  %4159 = vmatprep.mubr.f32.mxu1 %v4089_v47  ;;  %v4055_v51 = vmax.f32 %v3925_v29, 0.0  ;;  %v3950_v29 = vadd.f32 %v6497_v36, %v6668_v15 }
 0x4ac   :  { %v6670_v55 = vpop.f32.mrf.mxu1 }
 0x4ad   :  { %v1438_v48 = vpop.permute.xlu1 %1437  ;;  %v3960_v14 = vadd.f32 %v6497_v36, %v6670_v55 }
 0x4ae   :  { %1588 = vst.msk [vmem:[#allocation3 + $0x150] sm:$0xff] %vm1545_vm4, %v1438_v48  ;;  %v2592_v54 = vpop.permute.xlu0 %2591  ;;  %v3575_v8 = vld [vmem:[#allocation3 + $0x138] sm:$0xff]  ;;  %4160 = vmatmul.mubr.f32.vlgmr.msra.gmra.mxu1 %v4081_v42 }
 0x4af   :  { %2743 = vst.msk [vmem:[#allocation3 + $0x148] sm:$0xff] %vm2701_vm7, %v2592_v54  ;;  %4583 = vmatmul.mubr.f32.gmra.mxu0 %v3575_v8  ;;  %4229 = vmatprep.mubr.f32.mxu1 %v4090_v10  ;;  %v3910_v8 = vadd.f32 %v6497_v36, %v3909_v26  ;;  %v3965_v10 = vadd.f32 %v4608_v60, %v6497_v36 }
 0x4b1   :  { %v2975_v12 = vpop.permute.xlu1 %2974 }
 0x4b2   :  { %3127 = vst.msk [vmem:[#allocation3 + $0x140] sm:$0xff] %vm3086_vm8, %v2975_v12  ;;  %v1440_v21 = vpop.permute.xlu0 %1439  ;;  %v4054_v12 = vmax.f32 %v3920_v4, 0.0  ;;  %v3945_v4 = vadd.f32 %v6662_v38, %v6497_v36 }
 0x4b3   :  { %1589 = vst.msk [vmem:[#allocation3 + $0x158] sm:$0xff] %vm1545_vm4, %v1440_v21 }
 0x4b5   :  { %v1823_v9 = vpop.permute.xlu1 %1822 }
 0x4b6   :  { %1973 = vst.msk [vmem:[#allocation3 + $0x150] sm:$0xff] %vm1930_vm5, %v1823_v9  ;;  %v2977_v13 = vpop.permute.xlu0 %2976 }
 0x4b7   :  { %3128 = vst.msk [vmem:[#allocation3 + $0x148] sm:$0xff] %vm3086_vm8, %v2977_v13  ;;  %v4053_v13 = vmax.f32 %v3915_v11, 0.0 }
 0x4b9   :  { %v3360_v37 = vpop.permute.xlu1 %3359 }
 0x4ba   :  { %3512 = vst.msk [vmem:[#allocation3 + $0x140] sm:$0xff] %vm3471_vm9, %v3360_v37  ;;  %v1825_v19 = vpop.permute.xlu0 %1824 }
 0x4bb   :  { %1974 = vst.msk [vmem:[#allocation3 + $0x158] sm:$0xff] %vm1930_vm5, %v1825_v19  ;;  %v4052_v19 = vmax.f32 %v3910_v8, 0.0  ;;  %v3930_v8 = vadd.f32 %v6497_v36, %v6660_v56  ;;  %v4237_v56 = vld [vmem:[%s6742_s4 + $0x10] sm:$0xff] }
 0x4bd   :  { %v2208_v17 = vpop.permute.xlu1 %2207 }
 0x4be   :  { %2358 = vst.msk [vmem:[#allocation3 + $0x150] sm:$0xff] %vm2315_vm6, %v2208_v17  ;;  %v3362_v31 = vpop.permute.xlu0 %3361 }
 0x4bf   :  { %3513 = vst.msk [vmem:[#allocation3 + $0x148] sm:$0xff] %vm3471_vm9, %v3362_v31 }
 0x4c1   :  { %v3576_v3 = vld [vmem:[#allocation3 + $0x140] sm:$0xff]  ;;  %v2210_v50 = vpop.permute.xlu1 %2209 }
 0x4c2   :  { %4585 = vmatprep.mubr.f32.mxu0 %v3576_v3  ;;  %2359 = vst.msk [vmem:[#allocation3 + $0x158] sm:$0xff] %vm2315_vm6, %v2210_v50  ;;  %v2594_v45 = vpop.permute.xlu0 %2593 }
 0x4c3   :  { %2744 = vst.msk [vmem:[#allocation3 + $0x150] sm:$0xff] %vm2701_vm7, %v2594_v45 }
 0x4c5   :  { %v2596_v16 = vpop.permute.xlu1 %2595 }
 0x4c6   :  { %2745 = vst.msk [vmem:[#allocation3 + $0x158] sm:$0xff] %vm2701_vm7, %v2596_v16  ;;  %v3577_v24 = vld [vmem:[#allocation3 + $0x148] sm:$0xff]  ;;  %v2979_v46 = vpop.permute.xlu0 %2978 }
 0x4c7   :  { %4586 = vmatmul.mubr.f32.gmra.mxu0 %v3577_v24  ;;  %3129 = vst.msk [vmem:[#allocation3 + $0x150] sm:$0xff] %vm3086_vm8, %v2979_v46 }
 0x4c9   :  { %v2981_v25 = vpop.permute.xlu1 %2980 }
 0x4ca   :  { %3130 = vst.msk [vmem:[#allocation3 + $0x158] sm:$0xff] %vm3086_vm8, %v2981_v25  ;;  %v3364_v34 = vpop.permute.xlu0 %3363 }
 0x4cb   :  { %3514 = vst.msk [vmem:[#allocation3 + $0x150] sm:$0xff] %vm3471_vm9, %v3364_v34 }
 0x4cd   :  { %v3366_v0 = vpop.permute.xlu1 %3365 }
 0x4ce   :  { %3515 = vst.msk [vmem:[#allocation3 + $0x158] sm:$0xff] %vm3471_vm9, %v3366_v0 }
 0x4d2   :  { %v3578_v33 = vld [vmem:[#allocation3 + $0x150] sm:$0xff] }
 0x4d3   :  { %4588 = vmatprep.mubr.f32.mxu0 %v3578_v33 }
 0x4d5   :  { %v3579_v35 = vld [vmem:[#allocation3 + $0x158] sm:$0xff] }
 0x4d6   :  { %4589 = vmatmul.mubr.f32.gmra.mxu0 %v3579_v35 }
 0x4db   :  { %v4611_v20 = vpop.f32.mrf.mxu1 }
 0x4dc   :  { %v3975_v39 = vadd.f32 %v4611_v20, %v6497_v36 }
 0x4dd   :  { %v3969_v61 = vpop.f32.mrf.mxu1 }
 0x4de   :  { %v3970_v23 = vadd.f32 %v6497_v36, %v3969_v61  ;;  %v4065_v40 = vmax.f32 %v3975_v39, 0.0 }
 0x4e0   :  { %v4064_v20 = vmax.f32 %v3970_v23, 0.0 }
 0x4e7   :  { %v4575_v31 = vpop.f32.mrf.mxu0 }
 0x4e8   :  { %v3855_v38 = vadd.f32 %v4575_v31, %v6497_v36 }
 0x4e9   :  { %v6681_v3 = vpop.f32.mrf.mxu0 }
 0x511   :  { %v4614_v57 = vpop.f32.mrf.mxu1 }
 0x512   :  { %v3985_v21 = vadd.f32 %v4614_v57, %v6497_v36 }
 0x513   :  { %v3979_v62 = vpop.f32.mrf.mxu1 }
 0x514   :  { %v4067_v17 = vmax.f32 %v3985_v21, 0.0  ;;  %v3980_v33 = vadd.f32 %v6497_v36, %v3979_v62  ;;  %v3955_v62 = vadd.f32 %v6666_v59, %v6497_v36 }
 0x516   :  { %v4066_v42 = vmax.f32 %v3980_v33, 0.0 }
 0x51c   :  { %v4578_v50 = vpop.f32.mrf.mxu0 }
 0x51d   :  { %v3865_v59 = vadd.f32 %v4578_v50, %v6497_v36 }
 0x51e   :  { %v3859_v45 = vpop.f32.mrf.mxu0 }
 0x51f   :  { %v3860_v15 = vadd.f32 %v6497_v36, %v3859_v45 }
 0x521   :  { %v4042_v21 = vmax.f32 %v3860_v15, 0.0 }
 0x543   :  { %v4617_v1 = vpop.f32.mrf.mxu1 }
 0x544   :  { %v3995_v49 = vadd.f32 %v4617_v1, %v6497_v36  ;;  %v4063_v1 = vmax.f32 %v3965_v10, 0.0 }
 0x545   :  { %v3989_v58 = vpop.f32.mrf.mxu1 }
 0x546   :  { %v3990_v48 = vadd.f32 %v6497_v36, %v3989_v58  ;;  %v4069_v9 = vmax.f32 %v3995_v49, 0.0 }
 0x548   :  { %v4068_v37 = vmax.f32 %v3990_v48, 0.0  ;;  %v4059_v48 = vmax.f32 %v3945_v4, 0.0 }
 0x54e   :  { %v4581_v16 = vpop.f32.mrf.mxu0 }
 0x54f   :  { %v3875_v60 = vadd.f32 %v4581_v16, %v6497_v36 }
 0x550   :  { %v3869_v24 = vpop.f32.mrf.mxu0 }
 0x551   :  { %v3870_v55 = vadd.f32 %v6497_v36, %v3869_v24  ;;  %v4045_v49 = vmax.f32 %v3875_v60, 0.0 }
 0x553   :  { %v4044_v11 = vmax.f32 %v3870_v55, 0.0 }
 0x56a   :  { %v4620_v22 = vpop.f32.mrf.mxu1 }
 0x56b   :  { %v4005_v32 = vadd.f32 %v4620_v22, %v6497_v36  ;;  %v4062_v22 = vmax.f32 %v3960_v14, 0.0 }
 0x56c   :  { %v3999_v18 = vpop.f32.mrf.mxu1 }
 0x56d   :  { %v4071_v5 = vmax.f32 %v4005_v32, 0.0  ;;  %v4000_v7 = vadd.f32 %v6497_v36, %v3999_v18  ;;  %v4061_v18 = vmax.f32 %v3955_v62, 0.0 }
 0x56f   :  { %v4070_v54 = vmax.f32 %v4000_v7, 0.0  ;;  %4453 = vmatprep.subr.mxu1 %v4071_v5  ;;  %v4584_v46 = vpop.f32.mrf.mxu0  ;;  %v3940_v5 = vadd.f32 %v6497_v36, %v6664_v27  ;;  %v4060_v7 = vmax.f32 %v3950_v29, 0.0  ;;  %v3850_v27 = vadd.f32 %v6497_v36, %v6681_v3 }
 0x570   :  { %4454 = vmatpush3.msra.mxu1 %v4055_v51  ;;  %v3885_v26 = vadd.f32 %v4584_v46, %v6497_v36  ;;  %v3935_v51 = vadd.f32 %v6658_v44, %v6497_v36  ;;  %v4056_v44 = vmax.f32 %v3930_v8, 0.0  ;;  %v4336_v46 = vld [vmem:[%s6743_s5] ss:$0 sm:$0xff] }
 0x571   :  { %4455 = vmatprep.subr.mxu1 %v4070_v54  ;;  %v3879_v25 = vpop.f32.mrf.mxu0  ;;  %v4043_v54 = vmax.f32 %v3865_v59, 0.0 }
 0x572   :  { %4456 = vmatpush3.msra.mxu1 %v4054_v12  ;;  %v3880_v61 = vadd.f32 %v6497_v36, %v3879_v25  ;;  %v4047_v58 = vmax.f32 %v3885_v26, 0.0  ;;  %v4058_v12 = vmax.f32 %v3940_v5, 0.0 }
 0x573   :  { %4457 = vmatprep.subr.mxu1 %v4069_v9  ;;  %v4057_v9 = vmax.f32 %v3935_v51, 0.0 }
 0x574   :  { %4458 = vmatpush3.msra.mxu1 %v4053_v13  ;;  %v4046_v32 = vmax.f32 %v3880_v61, 0.0  ;;  %v4041_v13 = vmax.f32 %v3855_v38, 0.0 }
 0x575   :  { %4459 = vmatprep.subr.mxu1 %v4068_v37  ;;  %v4040_v37 = vmax.f32 %v3850_v27, 0.0 }
 0x576   :  { %4460 = vmatpush3.msra.mxu1 %v4052_v19  ;;  %v4235_v19 = vld [vmem:[%s6742_s4] sm:$0xff] }
 0x577   :  { %4461 = vmatprep.subr.mxu1 %v4067_v17  ;;  %v4450_v17 = vpop.f32.mrf.mxu1 }
 0x579   :  { %v4451_v31 = vpop.f32.mrf.mxu1 }
 0x57a   :  { %v4452_v45 = vadd.f32 %v4451_v31, %v4450_v17 }
 0x587   :  { %v4587_v34 = vpop.f32.mrf.mxu0 }
 0x588   :  { %v3895_v41 = vadd.f32 %v4587_v34, %v6497_v36 }
 0x589   :  { %v3889_v0 = vpop.f32.mrf.mxu0 }
 0x58a   :  { %v3890_v47 = vadd.f32 %v6497_v36, %v3889_v0  ;;  %v4049_v63 = vmax.f32 %v3895_v41, 0.0 }
 0x58c   :  { %v4048_v57 = vmax.f32 %v3890_v47, 0.0 }
 0x596   :  { %v4590_v35 = vpop.f32.mrf.mxu0 }
 0x597   :  { %v3905_v28 = vadd.f32 %v4590_v35, %v6497_v36 }
 0x598   :  { %v3899_v6 = vpop.f32.mrf.mxu0 }
 0x599   :  { %v4051_v30 = vmax.f32 %v3905_v28, 0.0  ;;  %v3900_v43 = vadd.f32 %v6497_v36, %v3899_v6  ;;  %v4238_v36 = vld [vmem:[%s6742_s4 + $0x18] sm:$0xff] }
 0x59b   :  { %v4050_v52 = vmax.f32 %v3900_v43, 0.0  ;;  %4462 = vmatpush3.msra.mxu1 %v4051_v30 }
 0x59c   :  { %4463 = vmatprep.subr.mxu1 %v4066_v42 }
 0x59d   :  { %4464 = vmatpush3.msra.mxu1 %v4050_v52 }
 0x59e   :  { %4465 = vmatprep.subr.mxu1 %v4065_v40 }
 0x59f   :  { %4466 = vmatpush3.msra.mxu1 %v4049_v63 }
 0x5a0   :  { %4467 = vmatprep.subr.mxu1 %v4064_v20 }
 0x5a1   :  { %4468 = vmatpush3.msra.mxu1 %v4048_v57 }
 0x5a2   :  { %4469 = vmatprep.subr.mxu1 %v4063_v1 }
 0x5a3   :  { %4470 = vmatpush3.msra.mxu1 %v4047_v58 }
 0x5a4   :  { %4471 = vmatprep.subr.mxu1 %v4062_v22 }
 0x5a5   :  { %4472 = vmatpush3.msra.mxu1 %v4046_v32 }
 0x5a6   :  { %4473 = vmatprep.subr.mxu1 %v4061_v18 }
 0x5a7   :  { %4474 = vmatpush3.msra.mxu1 %v4045_v49 }
 0x5a8   :  { %4475 = vmatprep.subr.mxu1 %v4060_v7 }
 0x5a9   :  { %4476 = vmatpush3.msra.mxu1 %v4044_v11 }
 0x5aa   :  { %4477 = vmatprep.subr.mxu1 %v4059_v48 }
 0x5ab   :  { %4478 = vmatpush3.msra.mxu1 %v4043_v54 }
 0x5ac   :  { %4479 = vmatprep.subr.mxu1 %v4058_v12 }
 0x5ad   :  { %4480 = vmatpush3.msra.mxu1 %v4042_v21 }
 0x5ae   :  { %4481 = vmatprep.subr.mxu1 %v4057_v9 }
 0x5af   :  { %4482 = vmatpush3.msra.mxu1 %v4041_v13 }
 0x5b0   :  { %4483 = vmatprep.subr.mxu1 %v4056_v44 }
 0x5b1   :  { %4484 = vmatpush3.msra.mxu1 %v4040_v37 }
 0x5b2   :  { %4230 = vmatmul.mubr.f32.vlgmr.msra.gmra.mxu1 %v6654_v53  ;;  %4621 = vmatprep.subr.mxu1 %v4699_v2  ;;  %v4236_v53 = vld [vmem:[%s6742_s4 + $0x8] sm:$0xff]  ;;  %s4677_s4 = scalar_lea.vmem %s4328_s13, 32 }
 0x5b3   :  { %4622 = vmatpush3.msra.mxu1 %v4238_v36  ;;  %4629 = vmatprep.mubr.msk.f32.mxu1 %vm4709_vm10, %v4699_v2  ;;  %p4678_p0 = scmp.ne.s32.totalorder %s4328_s13, %s4677_s4  ;;  %p4683_p2 = scmp.lt.s32.totalorder %s4677_s4, %s4677_s4 }
 0x5b4   :  { %4623 = vmatprep.subr.mxu1 %v4699_v2 }
 0x5b5   :  { %4624 = vmatpush3.msra.mxu1 %v4237_v56  ;;  %p4684_p3 = por %p4683_p2, %p4682_p1 }
 0x5b6   :  { %4625 = vmatprep.subr.mxu1 %v4699_v2 }
 0x5b7   :  { %4626 = vmatpush3.msra.mxu1 %v4236_v53  ;;  %p4685_p4 = pnand %p4684_p3, %p4678_p0 }
 0x5b8   :  { %4627 = vmatprep.subr.mxu1 %v4699_v2 }
 0x5b9   :  { %4628 = vmatpush3.msra.mxu1 %v4235_v19 }
 0x672   :  { %v4485_v3 = vpop.f32.mrf.mxu1 }
 0x674   :  { %v4486_v50 = vpop.f32.mrf.mxu1 }
 0x675   :  { %v4487_v16 = vadd.f32 %v4486_v50, %v4485_v3 }
 0x677   :  { %v4232_v24 = vadd.f32 %v4487_v16, %v4452_v45 }
 0x679   :  { %4630 = vmatmul.mubr.msk.f32.vlgmr.msra.gmra.mxu1 %vm4246_vm11, %v4232_v24 }
 0x739   :  { %v4316_v25 = vpop.f32.mrf.mxu1 }
 0x73a   :  { %v4317_v34 = vadd.f32 %v4336_v46, %v4316_v25 }
 0x73b   :  { %v4631_v0 = vpop.f32.mrf.mxu1 }
 0x73c   :  { %4320 = vst [vmem:[#allocation4] sm:$0x3] %v4317_v34 }
 0x73d   :  { %4688 = shalt.err (!%p4685_p4)
}
 0x73e   :  { %4330 = dma.vmem_to_hbm [thread:$0]  %s4328_s13, 32, %s6744_s6, [#allocation5]  }
 0x73f   :  { %4697 = dma.done.wait [#allocation5], 32  }
 0x740   :  { %4698 = vsyncadd [#allocation5], 4294967264 }
 0x741   :  { %4334 = vsyncpa [#allocation5], 1 }

</bundles_post_ra>
